<compile_context>
chip_gen: v7x
topology: tpu7x:2x2x1
jax: 0.10.0
libtpu: 0.0.40
codegen_flags: <defaults>
</compile_context>

<pallas_src>
import functools

import jax
import jax.numpy as jnp
from jax.experimental import pallas as pl
from jax.experimental.pallas import tpu as pltpu

BN_EPS = 1e-5


# ---------------------------------------------------------------------------
# Fused Pallas kernel: deconv1+BN+ReLU -> deconv2+BN+ReLU -> (deconv5 @ final)
# + sigmoid, all on one M-tile with intermediates kept in VMEM.
# ---------------------------------------------------------------------------
def _fused_head_kernel(x_ref, w1_ref, s1_ref, w2_ref, s2_ref, w3_ref, s3_ref,
                       o_ref, y1_ref, y2_ref, *, c_mid, n_final):
    # ---- Layer 1: deconv1 (+ folded BN) + ReLU ----------------------------
    # x is f32 in HBM; cast to bf16 in-kernel (VPU work hidden under the MXU).
    y1 = jnp.dot(x_ref[...].astype(jnp.bfloat16), w1_ref[...],
                 preferred_element_type=jnp.float32)
    y1 = jnp.maximum(y1 + s1_ref[...], 0.0)
    y1_ref[...] = y1.astype(jnp.bfloat16)            # (tm, 4*c_mid), taps g1

    for g1 in range(4):
        # ---- Layer 2 on tap g1: deconv2 (+ folded BN) + ReLU --------------
        y2 = jnp.dot(y1_ref[:, g1 * c_mid:(g1 + 1) * c_mid], w2_ref[...],
                     preferred_element_type=jnp.float32)
        y2 = jnp.maximum(y2 + s2_ref[...], 0.0)
        y2_ref[...] = y2.astype(jnp.bfloat16)         # (tm, 4*c_mid), taps g2

        for g2 in range(4):
            # ---- Layer 3 on tap (g1, g2): deconv5 fused with final 1x1 ----
            y3 = jnp.dot(y2_ref[:, g2 * c_mid:(g2 + 1) * c_mid], w3_ref[...],
                         preferred_element_type=jnp.float32)
            y3 = y3 + s3_ref[...]
            # sigmoid = 1 / (1 + exp(-y)); exp and reciprocal both on the EUP.
            y3 = pl.reciprocal(1.0 + jnp.exp(-y3), approx=True)
            col = (g1 * 4 + g2) * n_final
            o_ref[:, col:col + n_final] = y3.astype(o_ref.dtype)


def _choose_tm(m):
    # Largest tile <= 256 that still yields >= 8 grid steps (v7x: 2 TCs x >=4
    # pipelined steps each; v6e: deep prefetch/writeback overlap).  256 caps
    # the fused per-tile working set well inside v7x's 64 MiB VMEM.
    for cand in (256, 128, 64, 32, 16):
        if m >= 8 * cand:
            return cand
    return 16


def _fused_head_call(x2, w1, s1, w2, s2, w3, s3, c_mid):
    """x2: (M, Cin) f32 -> (Mp, 16*n_final) bf16, rows in input-pixel order,
    columns ordered (a1, b1, a2, b2, a3, b3, padded-out-channel)."""
    m, cin = x2.shape
    n1 = w1.shape[1]            # 4 * c_mid
    n2 = w2.shape[1]            # 4 * c_mid
    n3 = w3.shape[1]            # 4 * cpad  (128 for 21 out channels)
    n_out = 16 * n3

    tm = _choose_tm(m)
    mp = pl.cdiv(m, tm) * tm
    if mp != m:
        # Single upfront pad on the (smallest) input tensor; pad rows carried
        # through all layers and dropped once at the end.
        x2 = jnp.pad(x2, ((0, mp - m), (0, 0)))
    grid = (mp // tm,)

    cost = pl.CostEstimate(
        flops=2 * mp * (cin * n1 + 4 * c_mid * n2 + 16 * c_mid * n3),
        transcendentals=16 * mp * n3,
        bytes_accessed=(mp * cin * 4
                        + (cin * n1 + c_mid * n2 + c_mid * n3) * 2
                        + mp * n_out * 2),
    )

    kernel = functools.partial(_fused_head_kernel, c_mid=c_mid, n_final=n3)
    out = pl.pallas_call(
        kernel,
        out_shape=jax.ShapeDtypeStruct((mp, n_out), jnp.bfloat16),
        grid_spec=pltpu.PrefetchScalarGridSpec(
            num_scalar_prefetch=0,
            grid=grid,
            in_specs=[
                pl.BlockSpec((tm, cin), lambda i: (i, 0)),     # activations
                pl.BlockSpec((cin, n1), lambda i: (0, 0)),     # W1 (resident)
                pl.BlockSpec((1, n1), lambda i: (0, 0)),       # shift1
                pl.BlockSpec((c_mid, n2), lambda i: (0, 0)),   # W2 (resident)
                pl.BlockSpec((1, n2), lambda i: (0, 0)),       # shift2
                pl.BlockSpec((c_mid, n3), lambda i: (0, 0)),   # W3 (resident)
                pl.BlockSpec((1, n3), lambda i: (0, 0)),       # shift3
            ],
            out_specs=pl.BlockSpec((tm, n_out), lambda i: (i, 0)),
            scratch_shapes=[
                pltpu.VMEM((tm, n1), jnp.bfloat16),   # layer-1 activations
                pltpu.VMEM((tm, n2), jnp.bfloat16),   # layer-2 activations
            ],
        ),
        compiler_params=pltpu.CompilerParams(
            dimension_semantics=("parallel",),
            vmem_limit_bytes=48 * 1024 * 1024,
        ),
        cost_estimate=cost,
    )(x2, w1, s1, w2, s2, w3, s3)
    return out, mp


# ---------------------------------------------------------------------------
# Parameter folding (plain JAX on tiny weight tensors)
# ---------------------------------------------------------------------------
def _fold_deconv_bn(p):
    """ConvTranspose2d(k=2,s=2) weight with inference BN folded in.
    Returns W (Cin, 4*Cout) bf16 and shift (1, 4*Cout) f32; columns are
    ordered (a, b, cout) = kernel-tap major."""
    wt = p["weight"]                                   # (Cin, Cout, 2, 2)
    cin, cout = wt.shape[0], wt.shape[1]
    w_mat = jnp.transpose(wt, (0, 2, 3, 1)).reshape(cin, 4 * cout)
    s = p["gamma"] / jnp.sqrt(p["running_var"] + BN_EPS)
    shift = (p["bias"] - p["running_mean"]) * s + p["beta"]
    w_mat = (w_mat * jnp.tile(s, 4)[None, :]).astype(jnp.bfloat16)
    shift = jnp.tile(shift, 4).reshape(1, 4 * cout).astype(jnp.float32)
    return w_mat, shift


def _fuse_deconv5_final(p5, pf):
    """deconv5 (k=2,s=2, no norm) composed with the final 1x1 conv.
    Returns W (Cmid, 4*cpad) bf16, shift (1, 4*cpad) f32, cout_f, cpad."""
    w5, b5 = p5["weight"], p5["bias"]                  # (Cmid, Cmid, 2, 2)
    wf, bf = pf["weight"], pf["bias"]                  # (Cout_f, Cmid, 1, 1)
    cmid = w5.shape[0]
    cout_f = wf.shape[0]
    wf2 = wf.reshape(cout_f, -1)                       # (Cout_f, Cmid)

    # W_fused[i, a, b, o] = sum_c W5[i, c, a, b] * Wf[o, c]
    w_fused = jnp.einsum("icab,oc->iabo", w5, wf2)     # (Cmid, 2, 2, Cout_f)
    shift = wf2 @ b5 + bf                              # (Cout_f,)

    # Zero-pad out-channels so each tap block is 32 wide (4*32 = 128 lanes).
    cpad = ((cout_f + 31) // 32) * 32
    w_fused = jnp.pad(w_fused, ((0, 0), (0, 0), (0, 0), (0, cpad - cout_f)))
    shift = jnp.pad(shift, (0, cpad - cout_f))

    w_mat = w_fused.reshape(cmid, 4 * cpad).astype(jnp.bfloat16)
    shift = jnp.tile(shift, 4).reshape(1, 4 * cpad).astype(jnp.float32)
    return w_mat, shift, cout_f, cpad


def simple_head50_forward(x_nhwc, params):
    n, h, w, cin = x_nhwc.shape
    m = n * h * w
    c_mid = params["deconv1"]["weight"].shape[1]

    w1, s1 = _fold_deconv_bn(params["deconv1"])
    w2, s2 = _fold_deconv_bn(params["deconv2"])
    w3, s3, cout_f, cpad = _fuse_deconv5_final(params["deconv5"],
                                               params["final"])

    x2 = x_nhwc.reshape(m, cin)
    y, mp = _fused_head_call(x2, w1, s1, w2, s2, w3, s3, c_mid)

    # Drop pad rows (must happen before the spatial reshape), then a single
    # deferred interleave on the narrow bf16 output rebuilds the NHWC image.
    if mp != m:
        y = y[:m]
    y = y.reshape(n, h, w, 2, 2, 2, 2, 2, 2, cpad)
    #            n  h  w a1 b1 a2 b2 a3 b3  c
    y = jnp.transpose(y, (0, 1, 3, 5, 7, 2, 4, 6, 8, 9))
    y = y.reshape(n, 8 * h, 8 * w, cpad)
    return y[..., :cout_f]


# ---------------------------------------------------------------------------
# Pure-JAX f32 reference (original per-layer math) for a correctness check
# ---------------------------------------------------------------------------
def _ref_forward(x_nhwc, params):
    def deconv(x, p, last):
        n, h, w, cin = x.shape
        wt = p["weight"]
        cout = wt.shape[1]
        w_mat = jnp.transpose(wt, (0, 2, 3, 1)).reshape(cin, 4 * cout)
        y = x.reshape(-1, cin) @ w_mat
        if last:
            y = y + jnp.tile(p["bias"], 4)
        else:
            s = p["gamma"] / jnp.sqrt(p["running_var"] + BN_EPS)
            sh = (p["bias"] - p["running_mean"]) * s + p["beta"]
            y = y * jnp.tile(s, 4) + jnp.tile(sh, 4)
            y = jnp.maximum(y, 0.0)
        y = y.reshape(n, h, w, 2, 2, cout)
        y = jnp.transpose(y, (0, 1, 3, 2, 4, 5)).reshape(n, 2 * h, 2 * w, cout)
        return y

    x = deconv(x_nhwc, params["deconv1"], False)
    x = deconv(x, params["deconv2"], False)
    x = deconv(x, params["deconv5"], True)
    wt = params["final"]["weight"]
    cout, cin = wt.shape[0], wt.shape[1]
    y = x.reshape(-1, cin) @ jnp.transpose(wt.reshape(cout, cin), (1, 0))
    y = jax.nn.sigmoid(y + params["final"]["bias"])
    return y.reshape(x.shape[0], x.shape[1], x.shape[2], cout)


# ---------------------------------------------------------------------------
# Deterministic parameter init (shapes follow the PyTorch __init__)
# ---------------------------------------------------------------------------
def init_params(key, in_channels, mid_channels=256, out_channels=21):
    keys = jax.random.split(key, 16)
    ki = iter(range(16))

    def deconv_params(cin, cout, with_bn):
        p = {
            "weight": 0.05 * jax.random.normal(
                keys[next(ki)], (cin, cout, 2, 2), jnp.float32),
            "bias": 0.02 * jax.random.normal(
                keys[next(ki)], (cout,), jnp.float32),
        }
        if with_bn:
            p["gamma"] = 1.0 + 0.1 * jax.random.normal(
                keys[next(ki)], (cout,), jnp.float32)
            p["beta"] = 0.05 * jax.random.normal(
                keys[next(ki)], (cout,), jnp.float32)
            p["running_mean"] = 0.05 * jax.random.normal(
                keys[next(ki)], (cout,), jnp.float32)
            p["running_var"] = 1.0 + 0.1 * jnp.abs(jax.random.normal(
                keys[next(ki)], (cout,), jnp.float32))
        return p

    return {
        "deconv1": deconv_params(in_channels, mid_channels, True),
        "deconv2": deconv_params(mid_channels, mid_channels, True),
        "deconv5": deconv_params(mid_channels, mid_channels, False),
        "final": {
            "weight": 0.05 * jax.random.normal(
                keys[next(ki)], (out_channels, mid_channels, 1, 1),
                jnp.float32),
            "bias": 0.02 * jax.random.normal(
                keys[next(ki)], (out_channels,), jnp.float32),
        },
    }


if __name__ == "__main__":
    # Small shapes consistent with the module (module default Cin=1280 scaled
    # down to 128 to keep the example small; mid=256 / out=21 are fixed by the
    # module definition).
    batch, cin, spatial = 2, 128, 8
    key = jax.random.PRNGKey(0)
    kx, kp = jax.random.split(key)

    params = init_params(kp, in_channels=cin)
    x_nchw = jax.random.normal(kx, (batch, cin, spatial, spatial), jnp.float32)
    x_nhwc = jnp.transpose(x_nchw, (0, 2, 3, 1))   # layout: NCHW -> NHWC

    fwd = jax.jit(simple_head50_forward)
    out = jax.block_until_ready(fwd(x_nhwc, params))
    assert out.shape == (batch, spatial * 8, spatial * 8, 21), out.shape
    assert out.dtype == jnp.bfloat16, out.dtype

    ref = jax.block_until_ready(_ref_forward(x_nhwc, params))
    # bf16 MXU path + bf16 output vs f32 reference; sigmoid-bounded in (0, 1).
    max_err = float(jnp.max(jnp.abs(out.astype(jnp.float32) - ref)))
    assert max_err < 2.5e-2, max_err

    print("KERNEL_OK")
</pallas_src>

<mosaic_0001>
module attributes {stable_mosaic.version = 11 : i64} {
  func.func @_fused_head_kernel(%arg0: i32, %arg1: memref<16x128xf32, #tpu.memory_space<vmem>>, %arg2: memref<128x1024xbf16, #tpu.memory_space<vmem>>, %arg3: memref<1x1024xf32, #tpu.memory_space<vmem>>, %arg4: memref<256x1024xbf16, #tpu.memory_space<vmem>>, %arg5: memref<1x1024xf32, #tpu.memory_space<vmem>>, %arg6: memref<256x128xbf16, #tpu.memory_space<vmem>>, %arg7: memref<1x128xf32, #tpu.memory_space<vmem>>, %arg8: memref<16x2048xbf16, #tpu.memory_space<vmem>>, %arg9: memref<16x1024xbf16, #tpu.memory_space<vmem>>, %arg10: memref<16x1024xbf16, #tpu.memory_space<vmem>>) attributes {dimension_semantics = [#tpu.dimension_semantics<parallel>], iteration_bounds = array<i64: 8>, scalar_prefetch = 0 : i64, scratch_operands = 2 : i64, tpu.core_type = #tpu.core_type<tc>, window_params = [{transform_indices = @transform_0, window_bounds = array<i64: 16, 128>}, {pipeline_mode = #tpu.pipeline_mode<synchronous>, transform_indices = @transform_1, window_bounds = array<i64: 128, 1024>}, {pipeline_mode = #tpu.pipeline_mode<synchronous>, transform_indices = @transform_2, window_bounds = array<i64: 1, 1024>}, {pipeline_mode = #tpu.pipeline_mode<synchronous>, transform_indices = @transform_3, window_bounds = array<i64: 256, 1024>}, {pipeline_mode = #tpu.pipeline_mode<synchronous>, transform_indices = @transform_4, window_bounds = array<i64: 1, 1024>}, {pipeline_mode = #tpu.pipeline_mode<synchronous>, transform_indices = @transform_5, window_bounds = array<i64: 256, 128>}, {pipeline_mode = #tpu.pipeline_mode<synchronous>, transform_indices = @transform_6, window_bounds = array<i64: 1, 128>}, {transform_indices = @transform_7, window_bounds = array<i64: 16, 2048>}]} {
    %c0 = arith.constant 0 : index
    %c0_0 = arith.constant 0 : index
    %0 = vector.load %arg1[%c0, %c0_0] : memref<16x128xf32, #tpu.memory_space<vmem>>, vector<16x128xf32>
    %1 = arith.truncf %0 : vector<16x128xf32> to vector<16x128xbf16>
    %c0_1 = arith.constant 0 : index
    %c0_2 = arith.constant 0 : index
    %2 = vector.load %arg2[%c0_1, %c0_2] : memref<128x1024xbf16, #tpu.memory_space<vmem>>, vector<128x1024xbf16>
    %cst = arith.constant dense<0.000000e+00> : vector<16x1024xf32>
    %3 = tpu.matmul %1, %2, %cst {dimension_numbers = #tpu.dot_dimension_numbers<[1], [0], [0], [1], [0, 0, 1, 1], [], []>} : vector<16x128xbf16>, vector<128x1024xbf16>, vector<16x1024xf32> -> vector<16x1024xf32>
    %c0_3 = arith.constant 0 : index
    %c0_4 = arith.constant 0 : index
    %4 = vector.load %arg3[%c0_3, %c0_4] : memref<1x1024xf32, #tpu.memory_space<vmem>>, vector<1x1024xf32>
    %5 = vector.broadcast %4 : vector<1x1024xf32> to vector<16x1024xf32>
    %6 = arith.addf %3, %5 : vector<16x1024xf32>
    %cst_5 = arith.constant 0.000000e+00 : f32
    %7 = vector.broadcast %cst_5 : f32 to vector<16x1024xf32>
    %8 = arith.maximumf %6, %7 : vector<16x1024xf32>
    %9 = arith.truncf %8 : vector<16x1024xf32> to vector<16x1024xbf16>
    %c0_6 = arith.constant 0 : index
    %c0_7 = arith.constant 0 : index
    %10 = vector.load %arg9[%c0_6, %c0_7] : memref<16x1024xbf16, #tpu.memory_space<vmem>>, vector<16x1024xbf16>
    tpu.vector_store %arg9[%c0_6, %c0_7], %9 {strides = array<i32>} : memref<16x1024xbf16, #tpu.memory_space<vmem>>, vector<16x1024xbf16>,
    %c0_8 = arith.constant 0 : index
    %c0_9 = arith.constant 0 : index
    %11 = vector.load %arg9[%c0_8, %c0_9] : memref<16x1024xbf16, #tpu.memory_space<vmem>>, vector<16x256xbf16>
    %c0_10 = arith.constant 0 : index
    %c0_11 = arith.constant 0 : index
    %12 = vector.load %arg4[%c0_10, %c0_11] : memref<256x1024xbf16, #tpu.memory_space<vmem>>, vector<256x1024xbf16>
    %cst_12 = arith.constant dense<0.000000e+00> : vector<16x1024xf32>
    %13 = tpu.matmul %11, %12, %cst_12 {dimension_numbers = #tpu.dot_dimension_numbers<[1], [0], [0], [1], [0, 0, 1, 1], [], []>} : vector<16x256xbf16>, vector<256x1024xbf16>, vector<16x1024xf32> -> vector<16x1024xf32>
    %c0_13 = arith.constant 0 : index
    %c0_14 = arith.constant 0 : index
    %14 = vector.load %arg5[%c0_13, %c0_14] : memref<1x1024xf32, #tpu.memory_space<vmem>>, vector<1x1024xf32>
    %15 = vector.broadcast %14 : vector<1x1024xf32> to vector<16x1024xf32>
    %16 = arith.addf %13, %15 : vector<16x1024xf32>
    %cst_15 = arith.constant 0.000000e+00 : f32
    %17 = vector.broadcast %cst_15 : f32 to vector<16x1024xf32>
    %18 = arith.maximumf %16, %17 : vector<16x1024xf32>
    %19 = arith.truncf %18 : vector<16x1024xf32> to vector<16x1024xbf16>
    %c0_16 = arith.constant 0 : index
    %c0_17 = arith.constant 0 : index
    %20 = vector.load %arg10[%c0_16, %c0_17] : memref<16x1024xbf16, #tpu.memory_space<vmem>>, vector<16x1024xbf16>
    tpu.vector_store %arg10[%c0_16, %c0_17], %19 {strides = array<i32>} : memref<16x1024xbf16, #tpu.memory_space<vmem>>, vector<16x1024xbf16>,
    %c0_18 = arith.constant 0 : index
    %c0_19 = arith.constant 0 : index
    %21 = vector.load %arg10[%c0_18, %c0_19] : memref<16x1024xbf16, #tpu.memory_space<vmem>>, vector<16x256xbf16>
    %c0_20 = arith.constant 0 : index
    %c0_21 = arith.constant 0 : index
    %22 = vector.load %arg6[%c0_20, %c0_21] : memref<256x128xbf16, #tpu.memory_space<vmem>>, vector<256x128xbf16>
    %cst_22 = arith.constant dense<0.000000e+00> : vector<16x128xf32>
    %23 = tpu.matmul %21, %22, %cst_22 {dimension_numbers = #tpu.dot_dimension_numbers<[1], [0], [0], [1], [0, 0, 1, 1], [], []>} : vector<16x256xbf16>, vector<256x128xbf16>, vector<16x128xf32> -> vector<16x128xf32>
    %c0_23 = arith.constant 0 : index
    %c0_24 = arith.constant 0 : index
    %24 = vector.load %arg7[%c0_23, %c0_24] : memref<1x128xf32, #tpu.memory_space<vmem>>, vector<1x128xf32>
    %25 = vector.broadcast %24 : vector<1x128xf32> to vector<16x128xf32>
    %26 = arith.addf %23, %25 : vector<16x128xf32>
    %cst_25 = arith.constant 0.000000e+00 : f32
    %27 = vector.broadcast %cst_25 : f32 to vector<16x128xf32>
    %28 = arith.subf %27, %26 : vector<16x128xf32>
    %29 = math.exp %28 : vector<16x128xf32>
    %cst_26 = arith.constant 1.000000e+00 : f32
    %30 = vector.broadcast %cst_26 : f32 to vector<16x128xf32>
    %31 = arith.addf %30, %29 : vector<16x128xf32>
    %32 = tpu.reciprocal %31 {approx = true} : vector<16x128xf32> -> vector<16x128xf32>
    %33 = arith.truncf %32 : vector<16x128xf32> to vector<16x128xbf16>
    %c0_27 = arith.constant 0 : index
    %c0_28 = arith.constant 0 : index
    %34 = vector.load %arg8[%c0_27, %c0_28] : memref<16x2048xbf16, #tpu.memory_space<vmem>>, vector<16x128xbf16>
    tpu.vector_store %arg8[%c0_27, %c0_28], %33 {strides = array<i32>} : memref<16x2048xbf16, #tpu.memory_space<vmem>>, vector<16x128xbf16>,
    %c0_29 = arith.constant 0 : index
    %c256 = arith.constant 256 : index
    %35 = vector.load %arg10[%c0_29, %c256] : memref<16x1024xbf16, #tpu.memory_space<vmem>>, vector<16x256xbf16>
    %c0_30 = arith.constant 0 : index
    %c0_31 = arith.constant 0 : index
    %36 = vector.load %arg6[%c0_30, %c0_31] : memref<256x128xbf16, #tpu.memory_space<vmem>>, vector<256x128xbf16>
    %cst_32 = arith.constant dense<0.000000e+00> : vector<16x128xf32>
    %37 = tpu.matmul %35, %36, %cst_32 {dimension_numbers = #tpu.dot_dimension_numbers<[1], [0], [0], [1], [0, 0, 1, 1], [], []>} : vector<16x256xbf16>, vector<256x128xbf16>, vector<16x128xf32> -> vector<16x128xf32>
    %c0_33 = arith.constant 0 : index
    %c0_34 = arith.constant 0 : index
    %38 = vector.load %arg7[%c0_33, %c0_34] : memref<1x128xf32, #tpu.memory_space<vmem>>, vector<1x128xf32>
    %39 = vector.broadcast %38 : vector<1x128xf32> to vector<16x128xf32>
    %40 = arith.addf %37, %39 : vector<16x128xf32>
    %cst_35 = arith.constant 0.000000e+00 : f32
    %41 = vector.broadcast %cst_35 : f32 to vector<16x128xf32>
    %42 = arith.subf %41, %40 : vector<16x128xf32>
    %43 = math.exp %42 : vector<16x128xf32>
    %cst_36 = arith.constant 1.000000e+00 : f32
    %44 = vector.broadcast %cst_36 : f32 to vector<16x128xf32>
    %45 = arith.addf %44, %43 : vector<16x128xf32>
    %46 = tpu.reciprocal %45 {approx = true} : vector<16x128xf32> -> vector<16x128xf32>
    %47 = arith.truncf %46 : vector<16x128xf32> to vector<16x128xbf16>
    %c0_37 = arith.constant 0 : index
    %c128 = arith.constant 128 : index
    %48 = vector.load %arg8[%c0_37, %c128] : memref<16x2048xbf16, #tpu.memory_space<vmem>>, vector<16x128xbf16>
    tpu.vector_store %arg8[%c0_37, %c128], %47 {strides = array<i32>} : memref<16x2048xbf16, #tpu.memory_space<vmem>>, vector<16x128xbf16>,
    %c0_38 = arith.constant 0 : index
    %c512 = arith.constant 512 : index
    %49 = vector.load %arg10[%c0_38, %c512] : memref<16x1024xbf16, #tpu.memory_space<vmem>>, vector<16x256xbf16>
    %c0_39 = arith.constant 0 : index
    %c0_40 = arith.constant 0 : index
    %50 = vector.load %arg6[%c0_39, %c0_40] : memref<256x128xbf16, #tpu.memory_space<vmem>>, vector<256x128xbf16>
    %cst_41 = arith.constant dense<0.000000e+00> : vector<16x128xf32>
    %51 = tpu.matmul %49, %50, %cst_41 {dimension_numbers = #tpu.dot_dimension_numbers<[1], [0], [0], [1], [0, 0, 1, 1], [], []>} : vector<16x256xbf16>, vector<256x128xbf16>, vector<16x128xf32> -> vector<16x128xf32>
    %c0_42 = arith.constant 0 : index
    %c0_43 = arith.constant 0 : index
    %52 = vector.load %arg7[%c0_42, %c0_43] : memref<1x128xf32, #tpu.memory_space<vmem>>, vector<1x128xf32>
    %53 = vector.broadcast %52 : vector<1x128xf32> to vector<16x128xf32>
    %54 = arith.addf %51, %53 : vector<16x128xf32>
    %cst_44 = arith.constant 0.000000e+00 : f32
    %55 = vector.broadcast %cst_44 : f32 to vector<16x128xf32>
    %56 = arith.subf %55, %54 : vector<16x128xf32>
    %57 = math.exp %56 : vector<16x128xf32>
    %cst_45 = arith.constant 1.000000e+00 : f32
    %58 = vector.broadcast %cst_45 : f32 to vector<16x128xf32>
    %59 = arith.addf %58, %57 : vector<16x128xf32>
    %60 = tpu.reciprocal %59 {approx = true} : vector<16x128xf32> -> vector<16x128xf32>
    %61 = arith.truncf %60 : vector<16x128xf32> to vector<16x128xbf16>
    %c0_46 = arith.constant 0 : index
    %c256_47 = arith.constant 256 : index
    %62 = vector.load %arg8[%c0_46, %c256_47] : memref<16x2048xbf16, #tpu.memory_space<vmem>>, vector<16x128xbf16>
    tpu.vector_store %arg8[%c0_46, %c256_47], %61 {strides = array<i32>} : memref<16x2048xbf16, #tpu.memory_space<vmem>>, vector<16x128xbf16>,
    %c0_48 = arith.constant 0 : index
    %c768 = arith.constant 768 : index
    %63 = vector.load %arg10[%c0_48, %c768] : memref<16x1024xbf16, #tpu.memory_space<vmem>>, vector<16x256xbf16>
    %c0_49 = arith.constant 0 : index
    %c0_50 = arith.constant 0 : index
    %64 = vector.load %arg6[%c0_49, %c0_50] : memref<256x128xbf16, #tpu.memory_space<vmem>>, vector<256x128xbf16>
    %cst_51 = arith.constant dense<0.000000e+00> : vector<16x128xf32>
    %65 = tpu.matmul %63, %64, %cst_51 {dimension_numbers = #tpu.dot_dimension_numbers<[1], [0], [0], [1], [0, 0, 1, 1], [], []>} : vector<16x256xbf16>, vector<256x128xbf16>, vector<16x128xf32> -> vector<16x128xf32>
    %c0_52 = arith.constant 0 : index
    %c0_53 = arith.constant 0 : index
    %66 = vector.load %arg7[%c0_52, %c0_53] : memref<1x128xf32, #tpu.memory_space<vmem>>, vector<1x128xf32>
    %67 = vector.broadcast %66 : vector<1x128xf32> to vector<16x128xf32>
    %68 = arith.addf %65, %67 : vector<16x128xf32>
    %cst_54 = arith.constant 0.000000e+00 : f32
    %69 = vector.broadcast %cst_54 : f32 to vector<16x128xf32>
    %70 = arith.subf %69, %68 : vector<16x128xf32>
    %71 = math.exp %70 : vector<16x128xf32>
    %cst_55 = arith.constant 1.000000e+00 : f32
    %72 = vector.broadcast %cst_55 : f32 to vector<16x128xf32>
    %73 = arith.addf %72, %71 : vector<16x128xf32>
    %74 = tpu.reciprocal %73 {approx = true} : vector<16x128xf32> -> vector<16x128xf32>
    %75 = arith.truncf %74 : vector<16x128xf32> to vector<16x128xbf16>
    %c0_56 = arith.constant 0 : index
    %c384 = arith.constant 384 : index
    %76 = vector.load %arg8[%c0_56, %c384] : memref<16x2048xbf16, #tpu.memory_space<vmem>>, vector<16x128xbf16>
    tpu.vector_store %arg8[%c0_56, %c384], %75 {strides = array<i32>} : memref<16x2048xbf16, #tpu.memory_space<vmem>>, vector<16x128xbf16>,
    %c0_57 = arith.constant 0 : index
    %c256_58 = arith.constant 256 : index
    %77 = vector.load %arg9[%c0_57, %c256_58] : memref<16x1024xbf16, #tpu.memory_space<vmem>>, vector<16x256xbf16>
    %c0_59 = arith.constant 0 : index
    %c0_60 = arith.constant 0 : index
    %78 = vector.load %arg4[%c0_59, %c0_60] : memref<256x1024xbf16, #tpu.memory_space<vmem>>, vector<256x1024xbf16>
    %cst_61 = arith.constant dense<0.000000e+00> : vector<16x1024xf32>
    %79 = tpu.matmul %77, %78, %cst_61 {dimension_numbers = #tpu.dot_dimension_numbers<[1], [0], [0], [1], [0, 0, 1, 1], [], []>} : vector<16x256xbf16>, vector<256x1024xbf16>, vector<16x1024xf32> -> vector<16x1024xf32>
    %c0_62 = arith.constant 0 : index
    %c0_63 = arith.constant 0 : index
    %80 = vector.load %arg5[%c0_62, %c0_63] : memref<1x1024xf32, #tpu.memory_space<vmem>>, vector<1x1024xf32>
    %81 = vector.broadcast %80 : vector<1x1024xf32> to vector<16x1024xf32>
    %82 = arith.addf %79, %81 : vector<16x1024xf32>
    %cst_64 = arith.constant 0.000000e+00 : f32
    %83 = vector.broadcast %cst_64 : f32 to vector<16x1024xf32>
    %84 = arith.maximumf %82, %83 : vector<16x1024xf32>
    %85 = arith.truncf %84 : vector<16x1024xf32> to vector<16x1024xbf16>
    %c0_65 = arith.constant 0 : index
    %c0_66 = arith.constant 0 : index
    %86 = vector.load %arg10[%c0_65, %c0_66] : memref<16x1024xbf16, #tpu.memory_space<vmem>>, vector<16x1024xbf16>
    tpu.vector_store %arg10[%c0_65, %c0_66], %85 {strides = array<i32>} : memref<16x1024xbf16, #tpu.memory_space<vmem>>, vector<16x1024xbf16>,
    %c0_67 = arith.constant 0 : index
    %c0_68 = arith.constant 0 : index
    %87 = vector.load %arg10[%c0_67, %c0_68] : memref<16x1024xbf16, #tpu.memory_space<vmem>>, vector<16x256xbf16>
    %c0_69 = arith.constant 0 : index
    %c0_70 = arith.constant 0 : index
    %88 = vector.load %arg6[%c0_69, %c0_70] : memref<256x128xbf16, #tpu.memory_space<vmem>>, vector<256x128xbf16>
    %cst_71 = arith.constant dense<0.000000e+00> : vector<16x128xf32>
    %89 = tpu.matmul %87, %88, %cst_71 {dimension_numbers = #tpu.dot_dimension_numbers<[1], [0], [0], [1], [0, 0, 1, 1], [], []>} : vector<16x256xbf16>, vector<256x128xbf16>, vector<16x128xf32> -> vector<16x128xf32>
    %c0_72 = arith.constant 0 : index
    %c0_73 = arith.constant 0 : index
    %90 = vector.load %arg7[%c0_72, %c0_73] : memref<1x128xf32, #tpu.memory_space<vmem>>, vector<1x128xf32>
    %91 = vector.broadcast %90 : vector<1x128xf32> to vector<16x128xf32>
    %92 = arith.addf %89, %91 : vector<16x128xf32>
    %cst_74 = arith.constant 0.000000e+00 : f32
    %93 = vector.broadcast %cst_74 : f32 to vector<16x128xf32>
    %94 = arith.subf %93, %92 : vector<16x128xf32>
    %95 = math.exp %94 : vector<16x128xf32>
    %cst_75 = arith.constant 1.000000e+00 : f32
    %96 = vector.broadcast %cst_75 : f32 to vector<16x128xf32>
    %97 = arith.addf %96, %95 : vector<16x128xf32>
    %98 = tpu.reciprocal %97 {approx = true} : vector<16x128xf32> -> vector<16x128xf32>
    %99 = arith.truncf %98 : vector<16x128xf32> to vector<16x128xbf16>
    %c0_76 = arith.constant 0 : index
    %c512_77 = arith.constant 512 : index
    %100 = vector.load %arg8[%c0_76, %c512_77] : memref<16x2048xbf16, #tpu.memory_space<vmem>>, vector<16x128xbf16>
    tpu.vector_store %arg8[%c0_76, %c512_77], %99 {strides = array<i32>} : memref<16x2048xbf16, #tpu.memory_space<vmem>>, vector<16x128xbf16>,
    %c0_78 = arith.constant 0 : index
    %c256_79 = arith.constant 256 : index
    %101 = vector.load %arg10[%c0_78, %c256_79] : memref<16x1024xbf16, #tpu.memory_space<vmem>>, vector<16x256xbf16>
    %c0_80 = arith.constant 0 : index
    %c0_81 = arith.constant 0 : index
    %102 = vector.load %arg6[%c0_80, %c0_81] : memref<256x128xbf16, #tpu.memory_space<vmem>>, vector<256x128xbf16>
    %cst_82 = arith.constant dense<0.000000e+00> : vector<16x128xf32>
    %103 = tpu.matmul %101, %102, %cst_82 {dimension_numbers = #tpu.dot_dimension_numbers<[1], [0], [0], [1], [0, 0, 1, 1], [], []>} : vector<16x256xbf16>, vector<256x128xbf16>, vector<16x128xf32> -> vector<16x128xf32>
    %c0_83 = arith.constant 0 : index
    %c0_84 = arith.constant 0 : index
    %104 = vector.load %arg7[%c0_83, %c0_84] : memref<1x128xf32, #tpu.memory_space<vmem>>, vector<1x128xf32>
    %105 = vector.broadcast %104 : vector<1x128xf32> to vector<16x128xf32>
    %106 = arith.addf %103, %105 : vector<16x128xf32>
    %cst_85 = arith.constant 0.000000e+00 : f32
    %107 = vector.broadcast %cst_85 : f32 to vector<16x128xf32>
    %108 = arith.subf %107, %106 : vector<16x128xf32>
    %109 = math.exp %108 : vector<16x128xf32>
    %cst_86 = arith.constant 1.000000e+00 : f32
    %110 = vector.broadcast %cst_86 : f32 to vector<16x128xf32>
    %111 = arith.addf %110, %109 : vector<16x128xf32>
    %112 = tpu.reciprocal %111 {approx = true} : vector<16x128xf32> -> vector<16x128xf32>
    %113 = arith.truncf %112 : vector<16x128xf32> to vector<16x128xbf16>
    %c0_87 = arith.constant 0 : index
    %c640 = arith.constant 640 : index
    %114 = vector.load %arg8[%c0_87, %c640] : memref<16x2048xbf16, #tpu.memory_space<vmem>>, vector<16x128xbf16>
    tpu.vector_store %arg8[%c0_87, %c640], %113 {strides = array<i32>} : memref<16x2048xbf16, #tpu.memory_space<vmem>>, vector<16x128xbf16>,
    %c0_88 = arith.constant 0 : index
    %c512_89 = arith.constant 512 : index
    %115 = vector.load %arg10[%c0_88, %c512_89] : memref<16x1024xbf16, #tpu.memory_space<vmem>>, vector<16x256xbf16>
    %c0_90 = arith.constant 0 : index
    %c0_91 = arith.constant 0 : index
    %116 = vector.load %arg6[%c0_90, %c0_91] : memref<256x128xbf16, #tpu.memory_space<vmem>>, vector<256x128xbf16>
    %cst_92 = arith.constant dense<0.000000e+00> : vector<16x128xf32>
    %117 = tpu.matmul %115, %116, %cst_92 {dimension_numbers = #tpu.dot_dimension_numbers<[1], [0], [0], [1], [0, 0, 1, 1], [], []>} : vector<16x256xbf16>, vector<256x128xbf16>, vector<16x128xf32> -> vector<16x128xf32>
    %c0_93 = arith.constant 0 : index
    %c0_94 = arith.constant 0 : index
    %118 = vector.load %arg7[%c0_93, %c0_94] : memref<1x128xf32, #tpu.memory_space<vmem>>, vector<1x128xf32>
    %119 = vector.broadcast %118 : vector<1x128xf32> to vector<16x128xf32>
    %120 = arith.addf %117, %119 : vector<16x128xf32>
    %cst_95 = arith.constant 0.000000e+00 : f32
    %121 = vector.broadcast %cst_95 : f32 to vector<16x128xf32>
    %122 = arith.subf %121, %120 : vector<16x128xf32>
    %123 = math.exp %122 : vector<16x128xf32>
    %cst_96 = arith.constant 1.000000e+00 : f32
    %124 = vector.broadcast %cst_96 : f32 to vector<16x128xf32>
    %125 = arith.addf %124, %123 : vector<16x128xf32>
    %126 = tpu.reciprocal %125 {approx = true} : vector<16x128xf32> -> vector<16x128xf32>
    %127 = arith.truncf %126 : vector<16x128xf32> to vector<16x128xbf16>
    %c0_97 = arith.constant 0 : index
    %c768_98 = arith.constant 768 : index
    %128 = vector.load %arg8[%c0_97, %c768_98] : memref<16x2048xbf16, #tpu.memory_space<vmem>>, vector<16x128xbf16>
    tpu.vector_store %arg8[%c0_97, %c768_98], %127 {strides = array<i32>} : memref<16x2048xbf16, #tpu.memory_space<vmem>>, vector<16x128xbf16>,
    %c0_99 = arith.constant 0 : index
    %c768_100 = arith.constant 768 : index
    %129 = vector.load %arg10[%c0_99, %c768_100] : memref<16x1024xbf16, #tpu.memory_space<vmem>>, vector<16x256xbf16>
    %c0_101 = arith.constant 0 : index
    %c0_102 = arith.constant 0 : index
    %130 = vector.load %arg6[%c0_101, %c0_102] : memref<256x128xbf16, #tpu.memory_space<vmem>>, vector<256x128xbf16>
    %cst_103 = arith.constant dense<0.000000e+00> : vector<16x128xf32>
    %131 = tpu.matmul %129, %130, %cst_103 {dimension_numbers = #tpu.dot_dimension_numbers<[1], [0], [0], [1], [0, 0, 1, 1], [], []>} : vector<16x256xbf16>, vector<256x128xbf16>, vector<16x128xf32> -> vector<16x128xf32>
    %c0_104 = arith.constant 0 : index
    %c0_105 = arith.constant 0 : index
    %132 = vector.load %arg7[%c0_104, %c0_105] : memref<1x128xf32, #tpu.memory_space<vmem>>, vector<1x128xf32>
    %133 = vector.broadcast %132 : vector<1x128xf32> to vector<16x128xf32>
    %134 = arith.addf %131, %133 : vector<16x128xf32>
    %cst_106 = arith.constant 0.000000e+00 : f32
    %135 = vector.broadcast %cst_106 : f32 to vector<16x128xf32>
    %136 = arith.subf %135, %134 : vector<16x128xf32>
    %137 = math.exp %136 : vector<16x128xf32>
    %cst_107 = arith.constant 1.000000e+00 : f32
    %138 = vector.broadcast %cst_107 : f32 to vector<16x128xf32>
    %139 = arith.addf %138, %137 : vector<16x128xf32>
    %140 = tpu.reciprocal %139 {approx = true} : vector<16x128xf32> -> vector<16x128xf32>
    %141 = arith.truncf %140 : vector<16x128xf32> to vector<16x128xbf16>
    %c0_108 = arith.constant 0 : index
    %c896 = arith.constant 896 : index
    %142 = vector.load %arg8[%c0_108, %c896] : memref<16x2048xbf16, #tpu.memory_space<vmem>>, vector<16x128xbf16>
    tpu.vector_store %arg8[%c0_108, %c896], %141 {strides = array<i32>} : memref<16x2048xbf16, #tpu.memory_space<vmem>>, vector<16x128xbf16>,
    %c0_109 = arith.constant 0 : index
    %c512_110 = arith.constant 512 : index
    %143 = vector.load %arg9[%c0_109, %c512_110] : memref<16x1024xbf16, #tpu.memory_space<vmem>>, vector<16x256xbf16>
    %c0_111 = arith.constant 0 : index
    %c0_112 = arith.constant 0 : index
    %144 = vector.load %arg4[%c0_111, %c0_112] : memref<256x1024xbf16, #tpu.memory_space<vmem>>, vector<256x1024xbf16>
    %cst_113 = arith.constant dense<0.000000e+00> : vector<16x1024xf32>
    %145 = tpu.matmul %143, %144, %cst_113 {dimension_numbers = #tpu.dot_dimension_numbers<[1], [0], [0], [1], [0, 0, 1, 1], [], []>} : vector<16x256xbf16>, vector<256x1024xbf16>, vector<16x1024xf32> -> vector<16x1024xf32>
    %c0_114 = arith.constant 0 : index
    %c0_115 = arith.constant 0 : index
    %146 = vector.load %arg5[%c0_114, %c0_115] : memref<1x1024xf32, #tpu.memory_space<vmem>>, vector<1x1024xf32>
    %147 = vector.broadcast %146 : vector<1x1024xf32> to vector<16x1024xf32>
    %148 = arith.addf %145, %147 : vector<16x1024xf32>
    %cst_116 = arith.constant 0.000000e+00 : f32
    %149 = vector.broadcast %cst_116 : f32 to vector<16x1024xf32>
    %150 = arith.maximumf %148, %149 : vector<16x1024xf32>
    %151 = arith.truncf %150 : vector<16x1024xf32> to vector<16x1024xbf16>
    %c0_117 = arith.constant 0 : index
    %c0_118 = arith.constant 0 : index
    %152 = vector.load %arg10[%c0_117, %c0_118] : memref<16x1024xbf16, #tpu.memory_space<vmem>>, vector<16x1024xbf16>
    tpu.vector_store %arg10[%c0_117, %c0_118], %151 {strides = array<i32>} : memref<16x1024xbf16, #tpu.memory_space<vmem>>, vector<16x1024xbf16>,
    %c0_119 = arith.constant 0 : index
    %c0_120 = arith.constant 0 : index
    %153 = vector.load %arg10[%c0_119, %c0_120] : memref<16x1024xbf16, #tpu.memory_space<vmem>>, vector<16x256xbf16>
    %c0_121 = arith.constant 0 : index
    %c0_122 = arith.constant 0 : index
    %154 = vector.load %arg6[%c0_121, %c0_122] : memref<256x128xbf16, #tpu.memory_space<vmem>>, vector<256x128xbf16>
    %cst_123 = arith.constant dense<0.000000e+00> : vector<16x128xf32>
    %155 = tpu.matmul %153, %154, %cst_123 {dimension_numbers = #tpu.dot_dimension_numbers<[1], [0], [0], [1], [0, 0, 1, 1], [], []>} : vector<16x256xbf16>, vector<256x128xbf16>, vector<16x128xf32> -> vector<16x128xf32>
    %c0_124 = arith.constant 0 : index
    %c0_125 = arith.constant 0 : index
    %156 = vector.load %arg7[%c0_124, %c0_125] : memref<1x128xf32, #tpu.memory_space<vmem>>, vector<1x128xf32>
    %157 = vector.broadcast %156 : vector<1x128xf32> to vector<16x128xf32>
    %158 = arith.addf %155, %157 : vector<16x128xf32>
    %cst_126 = arith.constant 0.000000e+00 : f32
    %159 = vector.broadcast %cst_126 : f32 to vector<16x128xf32>
    %160 = arith.subf %159, %158 : vector<16x128xf32>
    %161 = math.exp %160 : vector<16x128xf32>
    %cst_127 = arith.constant 1.000000e+00 : f32
    %162 = vector.broadcast %cst_127 : f32 to vector<16x128xf32>
    %163 = arith.addf %162, %161 : vector<16x128xf32>
    %164 = tpu.reciprocal %163 {approx = true} : vector<16x128xf32> -> vector<16x128xf32>
    %165 = arith.truncf %164 : vector<16x128xf32> to vector<16x128xbf16>
    %c0_128 = arith.constant 0 : index
    %c1024 = arith.constant 1024 : index
    %166 = vector.load %arg8[%c0_128, %c1024] : memref<16x2048xbf16, #tpu.memory_space<vmem>>, vector<16x128xbf16>
    tpu.vector_store %arg8[%c0_128, %c1024], %165 {strides = array<i32>} : memref<16x2048xbf16, #tpu.memory_space<vmem>>, vector<16x128xbf16>,
    %c0_129 = arith.constant 0 : index
    %c256_130 = arith.constant 256 : index
    %167 = vector.load %arg10[%c0_129, %c256_130] : memref<16x1024xbf16, #tpu.memory_space<vmem>>, vector<16x256xbf16>
    %c0_131 = arith.constant 0 : index
    %c0_132 = arith.constant 0 : index
    %168 = vector.load %arg6[%c0_131, %c0_132] : memref<256x128xbf16, #tpu.memory_space<vmem>>, vector<256x128xbf16>
    %cst_133 = arith.constant dense<0.000000e+00> : vector<16x128xf32>
    %169 = tpu.matmul %167, %168, %cst_133 {dimension_numbers = #tpu.dot_dimension_numbers<[1], [0], [0], [1], [0, 0, 1, 1], [], []>} : vector<16x256xbf16>, vector<256x128xbf16>, vector<16x128xf32> -> vector<16x128xf32>
    %c0_134 = arith.constant 0 : index
    %c0_135 = arith.constant 0 : index
    %170 = vector.load %arg7[%c0_134, %c0_135] : memref<1x128xf32, #tpu.memory_space<vmem>>, vector<1x128xf32>
    %171 = vector.broadcast %170 : vector<1x128xf32> to vector<16x128xf32>
    %172 = arith.addf %169, %171 : vector<16x128xf32>
    %cst_136 = arith.constant 0.000000e+00 : f32
    %173 = vector.broadcast %cst_136 : f32 to vector<16x128xf32>
    %174 = arith.subf %173, %172 : vector<16x128xf32>
    %175 = math.exp %174 : vector<16x128xf32>
    %cst_137 = arith.constant 1.000000e+00 : f32
    %176 = vector.broadcast %cst_137 : f32 to vector<16x128xf32>
    %177 = arith.addf %176, %175 : vector<16x128xf32>
    %178 = tpu.reciprocal %177 {approx = true} : vector<16x128xf32> -> vector<16x128xf32>
    %179 = arith.truncf %178 : vector<16x128xf32> to vector<16x128xbf16>
    %c0_138 = arith.constant 0 : index
    %c1152 = arith.constant 1152 : index
    %180 = vector.load %arg8[%c0_138, %c1152] : memref<16x2048xbf16, #tpu.memory_space<vmem>>, vector<16x128xbf16>
    tpu.vector_store %arg8[%c0_138, %c1152], %179 {strides = array<i32>} : memref<16x2048xbf16, #tpu.memory_space<vmem>>, vector<16x128xbf16>,
    %c0_139 = arith.constant 0 : index
    %c512_140 = arith.constant 512 : index
    %181 = vector.load %arg10[%c0_139, %c512_140] : memref<16x1024xbf16, #tpu.memory_space<vmem>>, vector<16x256xbf16>
    %c0_141 = arith.constant 0 : index
    %c0_142 = arith.constant 0 : index
    %182 = vector.load %arg6[%c0_141, %c0_142] : memref<256x128xbf16, #tpu.memory_space<vmem>>, vector<256x128xbf16>
    %cst_143 = arith.constant dense<0.000000e+00> : vector<16x128xf32>
    %183 = tpu.matmul %181, %182, %cst_143 {dimension_numbers = #tpu.dot_dimension_numbers<[1], [0], [0], [1], [0, 0, 1, 1], [], []>} : vector<16x256xbf16>, vector<256x128xbf16>, vector<16x128xf32> -> vector<16x128xf32>
    %c0_144 = arith.constant 0 : index
    %c0_145 = arith.constant 0 : index
    %184 = vector.load %arg7[%c0_144, %c0_145] : memref<1x128xf32, #tpu.memory_space<vmem>>, vector<1x128xf32>
    %185 = vector.broadcast %184 : vector<1x128xf32> to vector<16x128xf32>
    %186 = arith.addf %183, %185 : vector<16x128xf32>
    %cst_146 = arith.constant 0.000000e+00 : f32
    %187 = vector.broadcast %cst_146 : f32 to vector<16x128xf32>
    %188 = arith.subf %187, %186 : vector<16x128xf32>
    %189 = math.exp %188 : vector<16x128xf32>
    %cst_147 = arith.constant 1.000000e+00 : f32
    %190 = vector.broadcast %cst_147 : f32 to vector<16x128xf32>
    %191 = arith.addf %190, %189 : vector<16x128xf32>
    %192 = tpu.reciprocal %191 {approx = true} : vector<16x128xf32> -> vector<16x128xf32>
    %193 = arith.truncf %192 : vector<16x128xf32> to vector<16x128xbf16>
    %c0_148 = arith.constant 0 : index
    %c1280 = arith.constant 1280 : index
    %194 = vector.load %arg8[%c0_148, %c1280] : memref<16x2048xbf16, #tpu.memory_space<vmem>>, vector<16x128xbf16>
    tpu.vector_store %arg8[%c0_148, %c1280], %193 {strides = array<i32>} : memref<16x2048xbf16, #tpu.memory_space<vmem>>, vector<16x128xbf16>,
    %c0_149 = arith.constant 0 : index
    %c768_150 = arith.constant 768 : index
    %195 = vector.load %arg10[%c0_149, %c768_150] : memref<16x1024xbf16, #tpu.memory_space<vmem>>, vector<16x256xbf16>
    %c0_151 = arith.constant 0 : index
    %c0_152 = arith.constant 0 : index
    %196 = vector.load %arg6[%c0_151, %c0_152] : memref<256x128xbf16, #tpu.memory_space<vmem>>, vector<256x128xbf16>
    %cst_153 = arith.constant dense<0.000000e+00> : vector<16x128xf32>
    %197 = tpu.matmul %195, %196, %cst_153 {dimension_numbers = #tpu.dot_dimension_numbers<[1], [0], [0], [1], [0, 0, 1, 1], [], []>} : vector<16x256xbf16>, vector<256x128xbf16>, vector<16x128xf32> -> vector<16x128xf32>
    %c0_154 = arith.constant 0 : index
    %c0_155 = arith.constant 0 : index
    %198 = vector.load %arg7[%c0_154, %c0_155] : memref<1x128xf32, #tpu.memory_space<vmem>>, vector<1x128xf32>
    %199 = vector.broadcast %198 : vector<1x128xf32> to vector<16x128xf32>
    %200 = arith.addf %197, %199 : vector<16x128xf32>
    %cst_156 = arith.constant 0.000000e+00 : f32
    %201 = vector.broadcast %cst_156 : f32 to vector<16x128xf32>
    %202 = arith.subf %201, %200 : vector<16x128xf32>
    %203 = math.exp %202 : vector<16x128xf32>
    %cst_157 = arith.constant 1.000000e+00 : f32
    %204 = vector.broadcast %cst_157 : f32 to vector<16x128xf32>
    %205 = arith.addf %204, %203 : vector<16x128xf32>
    %206 = tpu.reciprocal %205 {approx = true} : vector<16x128xf32> -> vector<16x128xf32>
    %207 = arith.truncf %206 : vector<16x128xf32> to vector<16x128xbf16>
    %c0_158 = arith.constant 0 : index
    %c1408 = arith.constant 1408 : index
    %208 = vector.load %arg8[%c0_158, %c1408] : memref<16x2048xbf16, #tpu.memory_space<vmem>>, vector<16x128xbf16>
    tpu.vector_store %arg8[%c0_158, %c1408], %207 {strides = array<i32>} : memref<16x2048xbf16, #tpu.memory_space<vmem>>, vector<16x128xbf16>,
    %c0_159 = arith.constant 0 : index
    %c768_160 = arith.constant 768 : index
    %209 = vector.load %arg9[%c0_159, %c768_160] : memref<16x1024xbf16, #tpu.memory_space<vmem>>, vector<16x256xbf16>
    %c0_161 = arith.constant 0 : index
    %c0_162 = arith.constant 0 : index
    %210 = vector.load %arg4[%c0_161, %c0_162] : memref<256x1024xbf16, #tpu.memory_space<vmem>>, vector<256x1024xbf16>
    %cst_163 = arith.constant dense<0.000000e+00> : vector<16x1024xf32>
    %211 = tpu.matmul %209, %210, %cst_163 {dimension_numbers = #tpu.dot_dimension_numbers<[1], [0], [0], [1], [0, 0, 1, 1], [], []>} : vector<16x256xbf16>, vector<256x1024xbf16>, vector<16x1024xf32> -> vector<16x1024xf32>
    %c0_164 = arith.constant 0 : index
    %c0_165 = arith.constant 0 : index
    %212 = vector.load %arg5[%c0_164, %c0_165] : memref<1x1024xf32, #tpu.memory_space<vmem>>, vector<1x1024xf32>
    %213 = vector.broadcast %212 : vector<1x1024xf32> to vector<16x1024xf32>
    %214 = arith.addf %211, %213 : vector<16x1024xf32>
    %cst_166 = arith.constant 0.000000e+00 : f32
    %215 = vector.broadcast %cst_166 : f32 to vector<16x1024xf32>
    %216 = arith.maximumf %214, %215 : vector<16x1024xf32>
    %217 = arith.truncf %216 : vector<16x1024xf32> to vector<16x1024xbf16>
    %c0_167 = arith.constant 0 : index
    %c0_168 = arith.constant 0 : index
    %218 = vector.load %arg10[%c0_167, %c0_168] : memref<16x1024xbf16, #tpu.memory_space<vmem>>, vector<16x1024xbf16>
    tpu.vector_store %arg10[%c0_167, %c0_168], %217 {strides = array<i32>} : memref<16x1024xbf16, #tpu.memory_space<vmem>>, vector<16x1024xbf16>,
    %c0_169 = arith.constant 0 : index
    %c0_170 = arith.constant 0 : index
    %219 = vector.load %arg10[%c0_169, %c0_170] : memref<16x1024xbf16, #tpu.memory_space<vmem>>, vector<16x256xbf16>
    %c0_171 = arith.constant 0 : index
    %c0_172 = arith.constant 0 : index
    %220 = vector.load %arg6[%c0_171, %c0_172] : memref<256x128xbf16, #tpu.memory_space<vmem>>, vector<256x128xbf16>
    %cst_173 = arith.constant dense<0.000000e+00> : vector<16x128xf32>
    %221 = tpu.matmul %219, %220, %cst_173 {dimension_numbers = #tpu.dot_dimension_numbers<[1], [0], [0], [1], [0, 0, 1, 1], [], []>} : vector<16x256xbf16>, vector<256x128xbf16>, vector<16x128xf32> -> vector<16x128xf32>
    %c0_174 = arith.constant 0 : index
    %c0_175 = arith.constant 0 : index
    %222 = vector.load %arg7[%c0_174, %c0_175] : memref<1x128xf32, #tpu.memory_space<vmem>>, vector<1x128xf32>
    %223 = vector.broadcast %222 : vector<1x128xf32> to vector<16x128xf32>
    %224 = arith.addf %221, %223 : vector<16x128xf32>
    %cst_176 = arith.constant 0.000000e+00 : f32
    %225 = vector.broadcast %cst_176 : f32 to vector<16x128xf32>
    %226 = arith.subf %225, %224 : vector<16x128xf32>
    %227 = math.exp %226 : vector<16x128xf32>
    %cst_177 = arith.constant 1.000000e+00 : f32
    %228 = vector.broadcast %cst_177 : f32 to vector<16x128xf32>
    %229 = arith.addf %228, %227 : vector<16x128xf32>
    %230 = tpu.reciprocal %229 {approx = true} : vector<16x128xf32> -> vector<16x128xf32>
    %231 = arith.truncf %230 : vector<16x128xf32> to vector<16x128xbf16>
    %c0_178 = arith.constant 0 : index
    %c1536 = arith.constant 1536 : index
    %232 = vector.load %arg8[%c0_178, %c1536] : memref<16x2048xbf16, #tpu.memory_space<vmem>>, vector<16x128xbf16>
    tpu.vector_store %arg8[%c0_178, %c1536], %231 {strides = array<i32>} : memref<16x2048xbf16, #tpu.memory_space<vmem>>, vector<16x128xbf16>,
    %c0_179 = arith.constant 0 : index
    %c256_180 = arith.constant 256 : index
    %233 = vector.load %arg10[%c0_179, %c256_180] : memref<16x1024xbf16, #tpu.memory_space<vmem>>, vector<16x256xbf16>
    %c0_181 = arith.constant 0 : index
    %c0_182 = arith.constant 0 : index
    %234 = vector.load %arg6[%c0_181, %c0_182] : memref<256x128xbf16, #tpu.memory_space<vmem>>, vector<256x128xbf16>
    %cst_183 = arith.constant dense<0.000000e+00> : vector<16x128xf32>
    %235 = tpu.matmul %233, %234, %cst_183 {dimension_numbers = #tpu.dot_dimension_numbers<[1], [0], [0], [1], [0, 0, 1, 1], [], []>} : vector<16x256xbf16>, vector<256x128xbf16>, vector<16x128xf32> -> vector<16x128xf32>
    %c0_184 = arith.constant 0 : index
    %c0_185 = arith.constant 0 : index
    %236 = vector.load %arg7[%c0_184, %c0_185] : memref<1x128xf32, #tpu.memory_space<vmem>>, vector<1x128xf32>
    %237 = vector.broadcast %236 : vector<1x128xf32> to vector<16x128xf32>
    %238 = arith.addf %235, %237 : vector<16x128xf32>
    %cst_186 = arith.constant 0.000000e+00 : f32
    %239 = vector.broadcast %cst_186 : f32 to vector<16x128xf32>
    %240 = arith.subf %239, %238 : vector<16x128xf32>
    %241 = math.exp %240 : vector<16x128xf32>
    %cst_187 = arith.constant 1.000000e+00 : f32
    %242 = vector.broadcast %cst_187 : f32 to vector<16x128xf32>
    %243 = arith.addf %242, %241 : vector<16x128xf32>
    %244 = tpu.reciprocal %243 {approx = true} : vector<16x128xf32> -> vector<16x128xf32>
    %245 = arith.truncf %244 : vector<16x128xf32> to vector<16x128xbf16>
    %c0_188 = arith.constant 0 : index
    %c1664 = arith.constant 1664 : index
    %246 = vector.load %arg8[%c0_188, %c1664] : memref<16x2048xbf16, #tpu.memory_space<vmem>>, vector<16x128xbf16>
    tpu.vector_store %arg8[%c0_188, %c1664], %245 {strides = array<i32>} : memref<16x2048xbf16, #tpu.memory_space<vmem>>, vector<16x128xbf16>,
    %c0_189 = arith.constant 0 : index
    %c512_190 = arith.constant 512 : index
    %247 = vector.load %arg10[%c0_189, %c512_190] : memref<16x1024xbf16, #tpu.memory_space<vmem>>, vector<16x256xbf16>
    %c0_191 = arith.constant 0 : index
    %c0_192 = arith.constant 0 : index
    %248 = vector.load %arg6[%c0_191, %c0_192] : memref<256x128xbf16, #tpu.memory_space<vmem>>, vector<256x128xbf16>
    %cst_193 = arith.constant dense<0.000000e+00> : vector<16x128xf32>
    %249 = tpu.matmul %247, %248, %cst_193 {dimension_numbers = #tpu.dot_dimension_numbers<[1], [0], [0], [1], [0, 0, 1, 1], [], []>} : vector<16x256xbf16>, vector<256x128xbf16>, vector<16x128xf32> -> vector<16x128xf32>
    %c0_194 = arith.constant 0 : index
    %c0_195 = arith.constant 0 : index
    %250 = vector.load %arg7[%c0_194, %c0_195] : memref<1x128xf32, #tpu.memory_space<vmem>>, vector<1x128xf32>
    %251 = vector.broadcast %250 : vector<1x128xf32> to vector<16x128xf32>
    %252 = arith.addf %249, %251 : vector<16x128xf32>
    %cst_196 = arith.constant 0.000000e+00 : f32
    %253 = vector.broadcast %cst_196 : f32 to vector<16x128xf32>
    %254 = arith.subf %253, %252 : vector<16x128xf32>
    %255 = math.exp %254 : vector<16x128xf32>
    %cst_197 = arith.constant 1.000000e+00 : f32
    %256 = vector.broadcast %cst_197 : f32 to vector<16x128xf32>
    %257 = arith.addf %256, %255 : vector<16x128xf32>
    %258 = tpu.reciprocal %257 {approx = true} : vector<16x128xf32> -> vector<16x128xf32>
    %259 = arith.truncf %258 : vector<16x128xf32> to vector<16x128xbf16>
    %c0_198 = arith.constant 0 : index
    %c1792 = arith.constant 1792 : index
    %260 = vector.load %arg8[%c0_198, %c1792] : memref<16x2048xbf16, #tpu.memory_space<vmem>>, vector<16x128xbf16>
    tpu.vector_store %arg8[%c0_198, %c1792], %259 {strides = array<i32>} : memref<16x2048xbf16, #tpu.memory_space<vmem>>, vector<16x128xbf16>,
    %c0_199 = arith.constant 0 : index
    %c768_200 = arith.constant 768 : index
    %261 = vector.load %arg10[%c0_199, %c768_200] : memref<16x1024xbf16, #tpu.memory_space<vmem>>, vector<16x256xbf16>
    %c0_201 = arith.constant 0 : index
    %c0_202 = arith.constant 0 : index
    %262 = vector.load %arg6[%c0_201, %c0_202] : memref<256x128xbf16, #tpu.memory_space<vmem>>, vector<256x128xbf16>
    %cst_203 = arith.constant dense<0.000000e+00> : vector<16x128xf32>
    %263 = tpu.matmul %261, %262, %cst_203 {dimension_numbers = #tpu.dot_dimension_numbers<[1], [0], [0], [1], [0, 0, 1, 1], [], []>} : vector<16x256xbf16>, vector<256x128xbf16>, vector<16x128xf32> -> vector<16x128xf32>
    %c0_204 = arith.constant 0 : index
    %c0_205 = arith.constant 0 : index
    %264 = vector.load %arg7[%c0_204, %c0_205] : memref<1x128xf32, #tpu.memory_space<vmem>>, vector<1x128xf32>
    %265 = vector.broadcast %264 : vector<1x128xf32> to vector<16x128xf32>
    %266 = arith.addf %263, %265 : vector<16x128xf32>
    %cst_206 = arith.constant 0.000000e+00 : f32
    %267 = vector.broadcast %cst_206 : f32 to vector<16x128xf32>
    %268 = arith.subf %267, %266 : vector<16x128xf32>
    %269 = math.exp %268 : vector<16x128xf32>
    %cst_207 = arith.constant 1.000000e+00 : f32
    %270 = vector.broadcast %cst_207 : f32 to vector<16x128xf32>
    %271 = arith.addf %270, %269 : vector<16x128xf32>
    %272 = tpu.reciprocal %271 {approx = true} : vector<16x128xf32> -> vector<16x128xf32>
    %273 = arith.truncf %272 : vector<16x128xf32> to vector<16x128xbf16>
    %c0_208 = arith.constant 0 : index
    %c1920 = arith.constant 1920 : index
    %274 = vector.load %arg8[%c0_208, %c1920] : memref<16x2048xbf16, #tpu.memory_space<vmem>>, vector<16x128xbf16>
    tpu.vector_store %arg8[%c0_208, %c1920], %273 {strides = array<i32>} : memref<16x2048xbf16, #tpu.memory_space<vmem>>, vector<16x128xbf16>,
    return
  }
  func.func @transform_0(%arg0: i32) -> (i32, i32) {
    %c0_i32 = arith.constant 0 : i32
    %c0_i32_0 = arith.constant 0 : i32
    return %arg0, %c0_i32 : i32, i32
  }
  func.func @transform_1(%arg0: i32) -> (i32, i32) {
    %c0_i32 = arith.constant 0 : i32
    %c0_i32_0 = arith.constant 0 : i32
    %c0_i32_1 = arith.constant 0 : i32
    return %c0_i32, %c0_i32_0 : i32, i32
  }
  func.func @transform_2(%arg0: i32) -> (i32, i32) {
    %c0_i32 = arith.constant 0 : i32
    %c0_i32_0 = arith.constant 0 : i32
    %c0_i32_1 = arith.constant 0 : i32
    return %c0_i32, %c0_i32_0 : i32, i32
  }
  func.func @transform_3(%arg0: i32) -> (i32, i32) {
    %c0_i32 = arith.constant 0 : i32
    %c0_i32_0 = arith.constant 0 : i32
    %c0_i32_1 = arith.constant 0 : i32
    return %c0_i32, %c0_i32_0 : i32, i32
  }
  func.func @transform_4(%arg0: i32) -> (i32, i32) {
    %c0_i32 = arith.constant 0 : i32
    %c0_i32_0 = arith.constant 0 : i32
    %c0_i32_1 = arith.constant 0 : i32
    return %c0_i32, %c0_i32_0 : i32, i32
  }
  func.func @transform_5(%arg0: i32) -> (i32, i32) {
    %c0_i32 = arith.constant 0 : i32
    %c0_i32_0 = arith.constant 0 : i32
    %c0_i32_1 = arith.constant 0 : i32
    return %c0_i32, %c0_i32_0 : i32, i32
  }
  func.func @transform_6(%arg0: i32) -> (i32, i32) {
    %c0_i32 = arith.constant 0 : i32
    %c0_i32_0 = arith.constant 0 : i32
    %c0_i32_1 = arith.constant 0 : i32
    return %c0_i32, %c0_i32_0 : i32, i32
  }
  func.func @transform_7(%arg0: i32) -> (i32, i32) {
    %c0_i32 = arith.constant 0 : i32
    %c0_i32_0 = arith.constant 0 : i32
    return %arg0, %c0_i32 : i32, i32
  }
}

</mosaic_0001>

<bundles_post_ra>
// kernel: tile.48
= control target key start
LH: loop header
LB: loop body
LE: loop exit
PB: predicated region body
PF: predicated region fallthrough
CT: control target
= control target key end

     0   :  { %s22_s0 = inlined_call_operand.vmem [shape: f32[32], index: 0, kind: input, shape index: {}]   ;;  %s23_s1 = inlined_call_operand.vmem [shape: f32[4,32], index: 1, kind: output, shape index: {}]  }
   0x1   :  { %v4_v0 = vld [vmem:[%s22_s0] ss:$0 sm:$0xff] }
   0x2   :  { %5 = vst [vmem:[%s23_s1] sm:$0xf] %v4_v0 }

// kernel: tile.49
= control target key start
LH: loop header
LB: loop body
LE: loop exit
PB: predicated region body
PF: predicated region fallthrough
CT: control target
= control target key end

     0   :  { %vm7_vm0 = vcmask 261120   ;;  %s37_s8 = smov 32   ;;  %s38_s9 = smov 64   ;;  %vm13_vm1 = vcmask 1048320   ;;  %vm19_vm2 = vcmask 785920   ;;  %vm25_vm3 = vcmask 523520   ;;  %s55_s0 = inlined_call_operand.vmem [shape: f32[4,32], index: 0, kind: input, shape index: {}]   ;;  %s56_s1 = inlined_call_operand.vmem [shape: f32[1,128], index: 1, kind: output, shape index: {}]  }
   0x1   :  { %v4_v0 = vld [vmem:[%s55_s0] sm:$0xf]  ;;  %s36_s0 = smov 96  }
   0x2   :  { %5 = vst [vmem:[#allocation1] sm:$0xf] %v4_v0 }
   0x9   :  { %v10_v1 = vld [vmem:[#allocation1 + $0x3] sm:$0x1]   ;;  %v22_v2 = vld [vmem:[#allocation1 + $0x1] sm:$0x1]   ;;  %v6_v3 = vld [vmem:[#allocation1] sm:$0x1]  }
   0xa   :  { %11 = vrot.lane.b32.xlu0 %v10_v1, %s36_s0  ;;  %23 = vrot.lane.b32.xlu1 %v22_v2, %s37_s8  ;;  %v16_v4 = vld [vmem:[#allocation1 + $0x2] sm:$0x1]   ;;  %8 = vst.msk [vmem:[#allocation0] sm:$0x1] %vm7_vm0, %v6_v3  }
   0xe   :  { %17 = vrot.lane.b32.xlu0 %v16_v4, %s38_s9 }
  0x7c   :  { %v12_v5 = vpop.permute.xlu0 %11   ;;  %v24_v6 = vpop.permute.xlu1 %23  }
  0x7d   :  { %14 = vst.msk [vmem:[#allocation0] sm:$0x1] %vm13_vm1, %v12_v5  }
  0x80   :  { %v18_v7 = vpop.permute.xlu0 %17  }
  0x81   :  { %20 = vst.msk [vmem:[#allocation0] sm:$0x1] %vm19_vm2, %v18_v7  }
  0x82   :  { %26 = vst.msk [vmem:[#allocation0] sm:$0x1] %vm25_vm3, %v24_v6  }
  0x89   :  { %v30_v8 = vld [vmem:[#allocation0] sm:$0x1] }
  0x8a   :  { %32 = vst [vmem:[%s56_s1] sm:$0x1] %v30_v8 }

// kernel: simple_head50_forward.1
= control target key start
LH: loop header
LB: loop body
LE: loop exit
PB: predicated region body
PF: predicated region fallthrough
CT: control target
= control target key end

     0   :  { %s9927_s24 = smov 0   ;;  %s12770_s0 = inlined_call_operand.vmem [shape: f32[128,128], index: 0, kind: input, shape index: {}]   ;;  %s12771_s1 = inlined_call_operand.vmem [shape: bf16[128,1024], index: 1, kind: input, shape index: {}]   ;;  %s12772_s2 = inlined_call_operand.vmem [shape: f32[1,1024], index: 2, kind: input, shape index: {}]   ;;  %s12773_s3 = inlined_call_operand.vmem [shape: bf16[256,1024], index: 3, kind: input, shape index: {}]   ;;  %s12774_s4 = inlined_call_operand.vmem [shape: f32[1,1024], index: 4, kind: input, shape index: {}]   ;;  %s12775_s5 = inlined_call_operand.vmem [shape: bf16[256,128], index: 5, kind: input, shape index: {}]   ;;  %s12776_s6 = inlined_call_operand.vmem [shape: f32[1,128], index: 6, kind: input, shape index: {}]   ;;  %s12777_s7 = inlined_call_operand.vmem [shape: bf16[128,2048], index: 7, kind: output, shape index: {}]  }
   0x1 LB: > { %s8208_s25 = sadd.s32 4294967295, %s9884_s24   ;;  %p8212_p0 = scmp.ge.s32.totalorder %s9884_s24, 1  ;;  %s9884_s24 = sphi %s9927_s24, %s17_s24  }
   0x2   : > { %p238_p1 = scmp.lt.s32.totalorder %s9884_s24, 9 }
   0x4   : > { %p239_p2 = pnand %p8212_p0, %p238_p1 }
   0x5   : > { %v288_v0 = vld [vmem:[%s12771_s1] sm:$0xff] (!%p239_p2)  ;;  %v9886_v6 = vmov (!%p239_p2), 0   ;;  %v289_v13 = vld [vmem:[%s12771_s1 + $0x8] sm:$0xff] (!%p239_p2)  ;;  %s8213_s14 = sshll.u32 (!%p239_p2), %s8208_s25, 1  ;;  %v290_v59 = vld [vmem:[%s12771_s1 + $0x10] sm:$0xff] (!%p239_p2) }
   0x6   : > { %242 = sbr.rel (%p239_p2) target bundleno = 1850 (0x73a), region = 48  ;;  %v292_v1 = vld [vmem:[%s12771_s1 + $0x20] sm:$0xff] (!%p239_p2)  ;;  %746 = vmatprep.mubr.bf16.mxu0 (!%p239_p2), %v9886_v6  ;;  %789 = vmatprep.mubr.bf16.mxu1 (!%p239_p2), %v9886_v6  ;;  %v293_v14 = vld [vmem:[%s12771_s1 + $0x28] sm:$0xff] (!%p239_p2)  ;;  %p272_p3 = scmp.lt.s32.totalorder (!%p239_p2), %s8213_s14, 15  ;;  %v294_v60 = vld [vmem:[%s12771_s1 + $0x30] sm:$0xff] (!%p239_p2) }
   0x7   : > { %v296_v2 = vld [vmem:[%s12771_s1 + $0x40] sm:$0xff] (!%p239_p2)  ;;  %v8219_v3 = vcombine.high (!%p239_p2), %v288_v0, %v292_v1  ;;  %v8218_v4 = vcombine.low (!%p239_p2), %v288_v0, %v292_v1  ;;  %v8221_v16 = vcombine.high (!%p239_p2), %v289_v13, %v293_v14  ;;  %v8220_v17 = vcombine.low (!%p239_p2), %v289_v13, %v293_v14  ;;  %v297_v18 = vld [vmem:[%s12771_s1 + $0x48] sm:$0xff] (!%p239_p2) }
   0x8   : > { %v300_v5 = vld [vmem:[%s12771_s1 + $0x60] sm:$0xff] (!%p239_p2)  ;;  %v301_v19 = vld [vmem:[%s12771_s1 + $0x68] sm:$0xff] (!%p239_p2) }
   0x9   : > { %v8227_v7 = vcombine.high (!%p239_p2), %v296_v2, %v300_v5  ;;  %v304_v8 = vld [vmem:[%s12771_s1 + $0x80] sm:$0xff] (!%p239_p2)  ;;  %714 = vmatprep.subr.bf16.mxu0 (!%p239_p2), %v8219_v3  ;;  %v8226_v10 = vcombine.low (!%p239_p2), %v296_v2, %v300_v5  ;;  %v8229_v20 = vcombine.high (!%p239_p2), %v297_v18, %v301_v19  ;;  %v305_v21 = vld [vmem:[%s12771_s1 + $0x88] sm:$0xff] (!%p239_p2)  ;;  %757 = vmatprep.subr.bf16.mxu1 (!%p239_p2), %v8221_v16  ;;  %v298_v5 = vld [vmem:[%s12771_s1 + $0x50] sm:$0xff] (!%p239_p2) }
   0xa   : > { %v308_v9 = vld [vmem:[%s12771_s1 + $0xa0] sm:$0xff] (!%p239_p2)  ;;  %715 = vmatpush1.bf16.msra.mxu0 (!%p239_p2), %v8218_v4  ;;  %v309_v22 = vld [vmem:[%s12771_s1 + $0xa8] sm:$0xff] (!%p239_p2)  ;;  %758 = vmatpush1.bf16.msra.mxu1 (!%p239_p2), %v8220_v17  ;;  %v8228_v25 = vcombine.low (!%p239_p2), %v297_v18, %v301_v19  ;;  %v8223_v3 = vcombine.high (!%p239_p2), %v290_v59, %v294_v60  ;;  %v310_v16 = vld [vmem:[%s12771_s1 + $0xb0] sm:$0xff] (!%p239_p2) }
   0xb   : > { %716 = vmatprep.subr.bf16.mxu0 (!%p239_p2), %v8227_v7  ;;  %v8235_v11 = vcombine.high (!%p239_p2), %v304_v8, %v308_v9  ;;  %v312_v12 = vld [vmem:[%s12771_s1 + $0xc0] sm:$0xff] (!%p239_p2)  ;;  %v8234_v23 = vcombine.low (!%p239_p2), %v304_v8, %v308_v9  ;;  %759 = vmatprep.subr.bf16.mxu1 (!%p239_p2), %v8229_v20  ;;  %v8237_v28 = vcombine.high (!%p239_p2), %v305_v21, %v309_v22  ;;  %v313_v29 = vld [vmem:[%s12771_s1 + $0xc8] sm:$0xff] (!%p239_p2)  ;;  %v302_v7 = vld [vmem:[%s12771_s1 + $0x70] sm:$0xff] (!%p239_p2) }
   0xc   : > { %v316_v15 = vld [vmem:[%s12771_s1 + $0xe0] sm:$0xff] (!%p239_p2)  ;;  %v317_v30 = vld [vmem:[%s12771_s1 + $0xe8] sm:$0xff] (!%p239_p2)  ;;  %v8236_v33 = vcombine.low (!%p239_p2), %v305_v21, %v309_v22  ;;  %v291_v9 = vld [vmem:[%s12771_s1 + $0x18] sm:$0xff] (!%p239_p2)  ;;  %v8231_v13 = vcombine.high (!%p239_p2), %v298_v5, %v302_v7  ;;  %v8230_v19 = vcombine.low (!%p239_p2), %v298_v5, %v302_v7 }
   0xd   : > { %v8243_v24 = vcombine.high %v312_v12, %v316_v15  ;;  %v320_v26 = vld [vmem:[%s12771_s1 + $0x100] sm:$0xff]  ;;  %v8242_v31 = vcombine.low %v312_v12, %v316_v15  ;;  %v8245_v36 = vcombine.high %v313_v29, %v317_v30  ;;  %v321_v37 = vld [vmem:[%s12771_s1 + $0x108] sm:$0xff]  ;;  %v8244_v41 = vcombine.low %v313_v29, %v317_v30  ;;  %s12779_s14 = smov (!%p272_p3, %s8213_s14), 15  ;;  %v306_v15 = vld [vmem:[%s12771_s1 + $0x90] sm:$0xff] }
   0xe   : > { %717 = vmatpush1.bf16.msra.mxu0 %v8226_v10  ;;  %v324_v27 = vld [vmem:[%s12771_s1 + $0x120] sm:$0xff]  ;;  %760 = vmatpush1.bf16.msra.mxu1 %v8228_v25  ;;  %v325_v38 = vld [vmem:[%s12771_s1 + $0x128] sm:$0xff]  ;;  %s8214_s18 = sshll.u32 %s12779_s14, 3  ;;  %v295_v10 = vld [vmem:[%s12771_s1 + $0x38] sm:$0xff]  ;;  %v8239_v21 = vcombine.high %v306_v15, %v310_v16  ;;  %s9100_s9 = sshll.u32 %s12779_s14, 6 }
   0xf   : > { %718 = vmatprep.subr.bf16.mxu0 %v8235_v11  ;;  %v8251_v32 = vcombine.high %v320_v26, %v324_v27  ;;  %v328_v34 = vld [vmem:[%s12771_s1 + $0x140] sm:$0xff]  ;;  %761 = vmatprep.subr.bf16.mxu1 %v8237_v28  ;;  %v8250_v39 = vcombine.low %v320_v26, %v324_v27  ;;  %v8253_v44 = vcombine.high %v321_v37, %v325_v38  ;;  %v329_v45 = vld [vmem:[%s12771_s1 + $0x148] sm:$0xff]  ;;  %s275_s26 = scalar_lea.vmem %s12770_s0, %s8214_s18  ;;  %v299_v17 = vld [vmem:[%s12771_s1 + $0x58] sm:$0xff]  ;;  %s11342_s12 = scalar_lea.vmem %s12777_s7, %s9100_s9 }
  0x10   : > { %v332_v35 = vld [vmem:[%s12771_s1 + $0x160] sm:$0xff]  ;;  %v333_v46 = vld [vmem:[%s12771_s1 + $0x168] sm:$0xff]  ;;  %v8252_v49 = vcombine.low %v321_v37, %v325_v38  ;;  %v8222_v11 = vcombine.low %v290_v59, %v294_v60  ;;  %v8225_v14 = vcombine.high %v291_v9, %v295_v10  ;;  %v303_v18 = vld [vmem:[%s12771_s1 + $0x78] sm:$0xff]  ;;  %v8224_v20 = vcombine.low %v291_v9, %v295_v10 }
  0x11   : > { %v8259_v40 = vcombine.high %v328_v34, %v332_v35  ;;  %v336_v42 = vld [vmem:[%s12771_s1 + $0x180] sm:$0xff]  ;;  %v8258_v47 = vcombine.low %v328_v34, %v332_v35  ;;  %v8261_v52 = vcombine.high %v329_v45, %v333_v46  ;;  %v337_v53 = vld [vmem:[%s12771_s1 + $0x188] sm:$0xff]  ;;  %v8260_v57 = vcombine.low %v329_v45, %v333_v46  ;;  %v307_v25 = vld [vmem:[%s12771_s1 + $0x98] sm:$0xff] }
  0x12   : > { %719 = vmatpush1.bf16.msra.mxu0 %v8234_v23  ;;  %762 = vmatpush1.bf16.msra.mxu1 %v8236_v33  ;;  %v340_v43 = vld [vmem:[%s12771_s1 + $0x1a0] sm:$0xff]  ;;  %v341_v54 = vld [vmem:[%s12771_s1 + $0x1a8] sm:$0xff]  ;;  %v8233_v22 = vcombine.high %v299_v17, %v303_v18  ;;  %v314_v23 = vld [vmem:[%s12771_s1 + $0xd0] sm:$0xff]  ;;  %v8238_v27 = vcombine.low %v306_v15, %v310_v16  ;;  %v8232_v30 = vcombine.low %v299_v17, %v303_v18 }
  0x13   : > { %720 = vmatprep.subr.bf16.mxu0 %v8243_v24  ;;  %763 = vmatprep.subr.bf16.mxu1 %v8245_v36  ;;  %v8267_v48 = vcombine.high %v336_v42, %v340_v43  ;;  %v344_v50 = vld [vmem:[%s12771_s1 + $0x1c0] sm:$0xff]  ;;  %v8266_v55 = vcombine.low %v336_v42, %v340_v43  ;;  %v8269_v58 = vcombine.high %v337_v53, %v341_v54  ;;  %v345_v61 = vld [vmem:[%s12771_s1 + $0x1c8] sm:$0xff]  ;;  %v318_v24 = vld [vmem:[%s12771_s1 + $0xf0] sm:$0xff] }
  0x14   : > { %v348_v51 = vld [vmem:[%s12771_s1 + $0x1e0] sm:$0xff]  ;;  %v349_v62 = vld [vmem:[%s12771_s1 + $0x1e8] sm:$0xff]  ;;  %v8268_v2 = vcombine.low %v337_v53, %v341_v54  ;;  %v311_v26 = vld [vmem:[%s12771_s1 + $0xb8] sm:$0xff]  ;;  %v8246_v35 = vcombine.low %v314_v23, %v318_v24 }
  0x15   : > { %v8275_v56 = vcombine.high %v344_v50, %v348_v51  ;;  %v8274_v63 = vcombine.low %v344_v50, %v348_v51  ;;  %v285_v0 = vld [vmem:[%s275_s26] sm:$0xff]  ;;  %v286_v1 = vld [vmem:[%s275_s26 + $0x8] sm:$0xff]  ;;  %v8277_v4 = vcombine.high %v345_v61, %v349_v62  ;;  %v8276_v12 = vcombine.low %v345_v61, %v349_v62  ;;  %v322_v28 = vld [vmem:[%s12771_s1 + $0x110] sm:$0xff] }
  0x16   : > { %721 = vmatpush1.bf16.msra.mxu0 %v8242_v31  ;;  %764 = vmatpush1.bf16.msra.mxu1 %v8244_v41  ;;  %v10053_v8 = vpack.c.bf16 %v286_v1, %v285_v0  ;;  %v326_v29 = vld [vmem:[%s12771_s1 + $0x130] sm:$0xff]  ;;  %v8247_v31 = vcombine.high %v314_v23, %v318_v24  ;;  %v319_v33 = vld [vmem:[%s12771_s1 + $0xf8] sm:$0xff]  ;;  %v8241_v34 = vcombine.high %v307_v25, %v311_v26  ;;  %v920_v59 = vld [vmem:[%s12773_s3] sm:$0xff] }
  0x17   : > { %722 = vmatprep.subr.bf16.mxu0 %v8251_v32  ;;  %765 = vmatprep.subr.bf16.mxu1 %v8253_v44  ;;  %v315_v32 = vld [vmem:[%s12771_s1 + $0xd8] sm:$0xff]  ;;  %v330_v36 = vld [vmem:[%s12771_s1 + $0x150] sm:$0xff]  ;;  %v8240_v38 = vcombine.low %v307_v25, %v311_v26  ;;  %v8254_v42 = vcombine.low %v322_v28, %v326_v29  ;;  %v924_v60 = vld [vmem:[%s12773_s3 + $0x20] sm:$0xff] }
  0x18   : > { %v334_v37 = vld [vmem:[%s12771_s1 + $0x170] sm:$0xff]  ;;  %v8249_v41 = vcombine.high %v315_v32, %v319_v33  ;;  %v8248_v45 = vcombine.low %v315_v32, %v319_v33  ;;  %v351_v0 = vld [vmem:[%s12771_s1 + $0x1f8] sm:$0xff]  ;;  %v8283_v7 = vcombine.high %v920_v59, %v924_v60  ;;  %v921_v9 = vld [vmem:[%s12773_s3 + $0x8] sm:$0xff] }
  0x19   : > { %v338_v43 = vld [vmem:[%s12771_s1 + $0x190] sm:$0xff]  ;;  %v8263_v46 = vcombine.high %v330_v36, %v334_v37  ;;  %v8262_v50 = vcombine.low %v330_v36, %v334_v37  ;;  %v925_v10 = vld [vmem:[%s12773_s3 + $0x28] sm:$0xff]  ;;  %v960_v36 = vld [vmem:[%s12773_s3 + $0x140] sm:$0xff] }
  0x1a   : > { %723 = vmatpush1.bf16.msra.mxu0 %v8250_v39  ;;  %766 = vmatpush1.bf16.msra.mxu1 %v8252_v49  ;;  %v8255_v39 = vcombine.high %v322_v28, %v326_v29  ;;  %v342_v44 = vld [vmem:[%s12771_s1 + $0x1b0] sm:$0xff]  ;;  %v929_v17 = vld [vmem:[%s12773_s3 + $0x48] sm:$0xff]  ;;  %v8284_v23 = vcombine.low %v921_v9, %v925_v10  ;;  %v952_v29 = vld [vmem:[%s12773_s3 + $0x100] sm:$0xff] }
  0x1b   : > { %724 = vmatprep.subr.bf16.mxu0 %v8259_v40  ;;  %767 = vmatprep.subr.bf16.mxu1 %v8261_v52  ;;  %v323_v40 = vld [vmem:[%s12771_s1 + $0x118] sm:$0xff]  ;;  %v346_v51 = vld [vmem:[%s12771_s1 + $0x1d0] sm:$0xff]  ;;  %v8271_v54 = vcombine.high %v338_v43, %v342_v44  ;;  %v933_v18 = vld [vmem:[%s12773_s3 + $0x68] sm:$0xff] }
  0x1c   : > { %v350_v52 = vld [vmem:[%s12771_s1 + $0x1f0] sm:$0xff]  ;;  %v937_v25 = vld [vmem:[%s12773_s3 + $0x88] sm:$0xff]  ;;  %v964_v37 = vld [vmem:[%s12773_s3 + $0x160] sm:$0xff] }
  0x1d   : > { %v8279_v62 = vcombine.high %v346_v51, %v350_v52  ;;  %v941_v26 = vld [vmem:[%s12773_s3 + $0xa8] sm:$0xff] }
  0x1e   : > { %725 = vmatpush1.bf16.msra.mxu0 %v8258_v47  ;;  %768 = vmatpush1.bf16.msra.mxu1 %v8260_v57  ;;  %v331_v47 = vld [vmem:[%s12771_s1 + $0x158] sm:$0xff]  ;;  %v945_v33 = vld [vmem:[%s12773_s3 + $0xc8] sm:$0xff] }
  0x1f   : > { %726 = vmatprep.subr.bf16.mxu0 %v8267_v48  ;;  %769 = vmatprep.subr.bf16.mxu1 %v8269_v58  ;;  %v335_v48 = vld [vmem:[%s12771_s1 + $0x178] sm:$0xff]  ;;  %v8270_v58 = vcombine.low %v338_v43, %v342_v44  ;;  %v968_v43 = vld [vmem:[%s12773_s3 + $0x180] sm:$0xff] }
  0x20   : > { %v8265_v57 = vcombine.high %v331_v47, %v335_v48  ;;  %v8264_v61 = vcombine.low %v331_v47, %v335_v48  ;;  %v972_v44 = vld [vmem:[%s12773_s3 + $0x1a0] sm:$0xff]  ;;  %v961_v47 = vld [vmem:[%s12773_s3 + $0x148] sm:$0xff] }
  0x21   : > { %v965_v48 = vld [vmem:[%s12773_s3 + $0x168] sm:$0xff] }
  0x22   : > { %727 = vmatpush1.bf16.msra.mxu0 %v8266_v55  ;;  %770 = vmatpush1.bf16.msra.mxu1 %v8268_v2  ;;  %v339_v55 = vld [vmem:[%s12771_s1 + $0x198] sm:$0xff]  ;;  %v8278_v2 = vcombine.low %v346_v51, %v350_v52  ;;  %v976_v51 = vld [vmem:[%s12773_s3 + $0x1c0] sm:$0xff] }
  0x23   : > { %728 = vmatprep.subr.bf16.mxu0 %v8275_v56  ;;  %771 = vmatprep.subr.bf16.mxu1 %v8277_v4  ;;  %v343_v56 = vld [vmem:[%s12771_s1 + $0x1b8] sm:$0xff]  ;;  %v932_v4 = vld [vmem:[%s12773_s3 + $0x60] sm:$0xff] }
  0x24   : > { %v8273_v1 = vcombine.high %v339_v55, %v343_v56  ;;  %v8272_v5 = vcombine.low %v339_v55, %v343_v56  ;;  %v980_v52 = vld [vmem:[%s12773_s3 + $0x1e0] sm:$0xff]  ;;  %v969_v55 = vld [vmem:[%s12773_s3 + $0x188] sm:$0xff] }
  0x25   : > { %v973_v56 = vld [vmem:[%s12773_s3 + $0x1a8] sm:$0xff] }
  0x26   : > { %729 = vmatpush1.bf16.msra.mxu0 %v8274_v63  ;;  %772 = vmatpush1.bf16.msra.mxu1 %v8276_v12  ;;  %v347_v63 = vld [vmem:[%s12771_s1 + $0x1d8] sm:$0xff]  ;;  %v8282_v12 = vcombine.low %v920_v59, %v924_v60  ;;  %v984_v59 = vld [vmem:[%s12773_s3 + $0x200] sm:$0xff] }
  0x27   : > { %800 = vmatprep.subr.bf16.mxu0 %v8223_v3  ;;  %843 = vmatprep.subr.bf16.mxu1 %v8225_v14  ;;  %v928_v3 = vld [vmem:[%s12773_s3 + $0x40] sm:$0xff]  ;;  %v8280_v15 = vcombine.low %v347_v63, %v351_v0 }
  0x28   : > { %v940_v14 = vld [vmem:[%s12773_s3 + $0xa0] sm:$0xff]  ;;  %v8291_v16 = vcombine.high %v928_v3, %v932_v4 }
  0x29   : > { %747 = vmatmul.mubr.bf16.vlgmr.msra.gmra.mrb[0].mxu0 %v10053_v8  ;;  %790 = vmatmul.mubr.bf16.vlgmr.msra.gmra.mrb[0].mxu1 %v10053_v8  ;;  %v988_v60 = vld [vmem:[%s12773_s3 + $0x220] sm:$0xff] }
  0x2a   : > { %801 = vmatpush1.bf16.msra.mxu0 %v8222_v11  ;;  %832 = vmatprep.mubr.bf16.mxu0 %v9886_v6  ;;  %v8281_v11 = vcombine.high %v347_v63, %v351_v0  ;;  %v977_v63 = vld [vmem:[%s12773_s3 + $0x1c8] sm:$0xff] }
  0x2b   : > { %802 = vmatprep.subr.bf16.mxu0 %v8231_v13  ;;  %844 = vmatpush1.bf16.msra.mxu1 %v8224_v20  ;;  %v936_v13 = vld [vmem:[%s12773_s3 + $0x80] sm:$0xff]  ;;  %v8290_v20 = vcombine.low %v928_v3, %v932_v4  ;;  %v981_v0 = vld [vmem:[%s12773_s3 + $0x1e8] sm:$0xff] }
  0x2c   : > { %845 = vmatprep.subr.bf16.mxu1 %v8233_v22  ;;  %875 = vmatprep.mubr.bf16.mxu1 %v9886_v6  ;;  %v327_v6 = vld [vmem:[%s12771_s1 + $0x138] sm:$0xff]  ;;  %v948_v22 = vld [vmem:[%s12773_s3 + $0xe0] sm:$0xff]  ;;  %v8299_v24 = vcombine.high %v936_v13, %v940_v14  ;;  %v8298_v28 = vcombine.low %v936_v13, %v940_v14 }
  0x2d   : > { %v8257_v49 = vcombine.high %v323_v40, %v327_v6  ;;  %v8256_v53 = vcombine.low %v323_v40, %v327_v6  ;;  %v953_v40 = vld [vmem:[%s12773_s3 + $0x108] sm:$0xff]  ;;  %v992_v3 = vld [vmem:[%s12773_s3 + $0x240] sm:$0xff] }
  0x2e   : > { %803 = vmatpush1.bf16.msra.mxu0 %v8230_v19  ;;  %v8285_v19 = vcombine.high %v921_v9, %v925_v10  ;;  %v957_v6 = vld [vmem:[%s12773_s3 + $0x128] sm:$0xff]  ;;  %v996_v4 = vld [vmem:[%s12773_s3 + $0x260] sm:$0xff] }
  0x2f   : > { %804 = vmatprep.subr.bf16.mxu0 %v8239_v21  ;;  %846 = vmatpush1.bf16.msra.mxu1 %v8232_v30  ;;  %v944_v21 = vld [vmem:[%s12773_s3 + $0xc0] sm:$0xff]  ;;  %v985_v9 = vld [vmem:[%s12773_s3 + $0x208] sm:$0xff] }
  0x30   : > { %847 = vmatprep.subr.bf16.mxu1 %v8241_v34  ;;  %v956_v30 = vld [vmem:[%s12773_s3 + $0x120] sm:$0xff]  ;;  %v8307_v32 = vcombine.high %v944_v21, %v948_v22  ;;  %v8301_v34 = vcombine.high %v937_v25, %v941_v26  ;;  %v989_v10 = vld [vmem:[%s12773_s3 + $0x228] sm:$0xff] }
  0x31   : > { %v1000_v13 = vld [vmem:[%s12773_s3 + $0x280] sm:$0xff] }
  0x32   : > { %805 = vmatpush1.bf16.msra.mxu0 %v8238_v27  ;;  %v8293_v27 = vcombine.high %v929_v17, %v933_v18  ;;  %v1004_v14 = vld [vmem:[%s12773_s3 + $0x2a0] sm:$0xff] }
  0x33   : > { %806 = vmatprep.subr.bf16.mxu0 %v8247_v31  ;;  %848 = vmatpush1.bf16.msra.mxu1 %v8240_v38  ;;  %v8292_v31 = vcombine.low %v929_v17, %v933_v18  ;;  %v8300_v38 = vcombine.low %v937_v25, %v941_v26  ;;  %v993_v17 = vld [vmem:[%s12773_s3 + $0x248] sm:$0xff] }
  0x34   : > { %849 = vmatprep.subr.bf16.mxu1 %v8249_v41  ;;  %v997_v18 = vld [vmem:[%s12773_s3 + $0x268] sm:$0xff] }
  0x35   : > { %v1001_v25 = vld [vmem:[%s12773_s3 + $0x288] sm:$0xff] }
  0x36   : > { %807 = vmatpush1.bf16.msra.mxu0 %v8246_v35  ;;  %v8306_v35 = vcombine.low %v944_v21, %v948_v22  ;;  %v1008_v21 = vld [vmem:[%s12773_s3 + $0x2c0] sm:$0xff]  ;;  %v1005_v26 = vld [vmem:[%s12773_s3 + $0x2a8] sm:$0xff] }
  0x37   : > { %808 = vmatprep.subr.bf16.mxu0 %v8255_v39  ;;  %850 = vmatpush1.bf16.msra.mxu1 %v8248_v45  ;;  %v8315_v39 = vcombine.high %v952_v29, %v956_v30  ;;  %v1012_v22 = vld [vmem:[%s12773_s3 + $0x2e0] sm:$0xff] }
  0x38   : > { %851 = vmatprep.subr.bf16.mxu1 %v8257_v49  ;;  %v8317_v49 = vcombine.high %v953_v40, %v957_v6 }
  0x3a   : > { %809 = vmatpush1.bf16.msra.mxu0 %v8254_v42  ;;  %v8314_v42 = vcombine.low %v952_v29, %v956_v30  ;;  %v1016_v29 = vld [vmem:[%s12773_s3 + $0x300] sm:$0xff] }
  0x3b   : > { %810 = vmatprep.subr.bf16.mxu0 %v8263_v46  ;;  %852 = vmatpush1.bf16.msra.mxu1 %v8256_v53  ;;  %v8323_v46 = vcombine.high %v960_v36, %v964_v37  ;;  %v8316_v53 = vcombine.low %v953_v40, %v957_v6  ;;  %v1020_v30 = vld [vmem:[%s12773_s3 + $0x320] sm:$0xff]  ;;  %v1017_v40 = vld [vmem:[%s12773_s3 + $0x308] sm:$0xff] }
  0x3c   : > { %853 = vmatprep.subr.bf16.mxu1 %v8265_v57  ;;  %v8325_v57 = vcombine.high %v961_v47, %v965_v48  ;;  %v1021_v6 = vld [vmem:[%s12773_s3 + $0x328] sm:$0xff] }
  0x3e   : > { %811 = vmatpush1.bf16.msra.mxu0 %v8262_v50  ;;  %v8322_v50 = vcombine.low %v960_v36, %v964_v37  ;;  %v1024_v36 = vld [vmem:[%s12773_s3 + $0x340] sm:$0xff] }
  0x3f   : > { %812 = vmatprep.subr.bf16.mxu0 %v8271_v54  ;;  %854 = vmatpush1.bf16.msra.mxu1 %v8264_v61  ;;  %v8331_v54 = vcombine.high %v968_v43, %v972_v44  ;;  %v8324_v61 = vcombine.low %v961_v47, %v965_v48  ;;  %v1028_v37 = vld [vmem:[%s12773_s3 + $0x360] sm:$0xff]  ;;  %v8381_v47 = vcombine.high %v1017_v40, %v1021_v6 }
  0x40   : > { %855 = vmatprep.subr.bf16.mxu1 %v8273_v1  ;;  %v8333_v1 = vcombine.high %v969_v55, %v973_v56  ;;  %v8386_v48 = vcombine.low %v1024_v36, %v1028_v37 }
  0x42   : > { %813 = vmatpush1.bf16.msra.mxu0 %v8270_v58  ;;  %v8330_v58 = vcombine.low %v968_v43, %v972_v44  ;;  %v8387_v44 = vcombine.high %v1024_v36, %v1028_v37  ;;  %v930_v37 = vld [vmem:[%s12773_s3 + $0x50] sm:$0xff] }
  0x43   : > { %814 = vmatprep.subr.bf16.mxu0 %v8279_v62  ;;  %856 = vmatpush1.bf16.msra.mxu1 %v8272_v5  ;;  %v8339_v62 = vcombine.high %v976_v51, %v980_v52  ;;  %v8332_v5 = vcombine.low %v969_v55, %v973_v56  ;;  %v1037_v55 = vld [vmem:[%s12773_s3 + $0x3a8] sm:$0xff] }
  0x44   : > { %857 = vmatprep.subr.bf16.mxu1 %v8281_v11  ;;  %v8341_v11 = vcombine.high %v977_v63, %v981_v0 }
  0x46   : > { %815 = vmatpush1.bf16.msra.mxu0 %v8278_v2  ;;  %v8338_v2 = vcombine.low %v976_v51, %v980_v52  ;;  %v1036_v51 = vld [vmem:[%s12773_s3 + $0x3a0] sm:$0xff]  ;;  %v1033_v52 = vld [vmem:[%s12773_s3 + $0x388] sm:$0xff] }
  0x47   : > { %1730 = vmatprep.subr.bf16.mxu0 %v8283_v7  ;;  %858 = vmatpush1.bf16.msra.mxu1 %v8280_v15  ;;  %v8347_v7 = vcombine.high %v984_v59, %v988_v60  ;;  %v8340_v15 = vcombine.low %v977_v63, %v981_v0  ;;  %v1045_v63 = vld [vmem:[%s12773_s3 + $0x3e8] sm:$0xff] }
  0x48   : > { %1773 = vmatprep.subr.bf16.mxu1 %v8285_v19  ;;  %v8349_v19 = vcombine.high %v985_v9, %v989_v10 }
  0x49   : > { %833 = vmatmul.mubr.bf16.vlgmr.msra.gmra.mrb[4].mxu0 %v10053_v8 }
  0x4a   : > { %1731 = vmatpush1.bf16.msra.mxu0 %v8282_v12  ;;  %876 = vmatmul.mubr.bf16.vlgmr.msra.gmra.mrb[4].mxu1 %v10053_v8  ;;  %v949_v8 = vld [vmem:[%s12773_s3 + $0xe8] sm:$0xff]  ;;  %v8346_v12 = vcombine.low %v984_v59, %v988_v60  ;;  %v1044_v59 = vld [vmem:[%s12773_s3 + $0x3e0] sm:$0xff] }
  0x4b   : > { %1732 = vmatprep.subr.bf16.mxu0 %v8291_v16  ;;  %1774 = vmatpush1.bf16.msra.mxu1 %v8284_v23  ;;  %v8309_v41 = vcombine.high %v945_v33, %v949_v8  ;;  %v8308_v45 = vcombine.low %v945_v33, %v949_v8  ;;  %v8355_v16 = vcombine.high %v992_v3, %v996_v4  ;;  %v1009_v33 = vld [vmem:[%s12773_s3 + $0x2c8] sm:$0xff] }
  0x4c   : > { %1775 = vmatprep.subr.bf16.mxu1 %v8293_v27  ;;  %v8348_v23 = vcombine.low %v985_v9, %v989_v10  ;;  %v8357_v27 = vcombine.high %v993_v17, %v997_v18  ;;  %v1013_v8 = vld [vmem:[%s12773_s3 + $0x2e8] sm:$0xff]  ;;  %v10357_v9 = vld [vmem:[%s12773_s3 + $0x38] sm:$0xff] }
  0x4d   : > { %v8372_v43 = vcombine.low %v1009_v33, %v1013_v8  ;;  %v1041_v60 = vld [vmem:[%s12773_s3 + $0x3c8] sm:$0xff] }
  0x4e   : > { %1733 = vmatpush1.bf16.msra.mxu0 %v8290_v20  ;;  %v8354_v20 = vcombine.low %v992_v3, %v996_v4  ;;  %v10345_v3 = vld [vmem:[%s12773_s3 + $0x30] sm:$0xff]  ;;  %v10350_v4 = vld [vmem:[%s12773_s3 + $0x18] sm:$0xff] }
  0x4f   : > { %1734 = vmatprep.subr.bf16.mxu0 %v8299_v24  ;;  %1776 = vmatpush1.bf16.msra.mxu1 %v8292_v31  ;;  %v8363_v24 = vcombine.high %v1000_v13, %v1004_v14  ;;  %v8356_v31 = vcombine.low %v993_v17, %v997_v18  ;;  %v10376_v18 = vld [vmem:[%s12772_s2] sm:$0xff] }
  0x50   : > { %1777 = vmatprep.subr.bf16.mxu1 %v8301_v34  ;;  %v8365_v34 = vcombine.high %v1001_v25, %v1005_v26 }
  0x52   : > { %1735 = vmatpush1.bf16.msra.mxu0 %v8298_v28  ;;  %v8362_v28 = vcombine.low %v1000_v13, %v1004_v14  ;;  %v8289_v13 = vcombine.high %v10350_v4, %v10357_v9  ;;  %v354_v14 = vlaneseq }
  0x53   : > { %1736 = vmatprep.subr.bf16.mxu0 %v8307_v32  ;;  %1778 = vmatpush1.bf16.msra.mxu1 %v8300_v38  ;;  %v8371_v32 = vcombine.high %v1008_v21, %v1012_v22  ;;  %v8364_v38 = vcombine.low %v1001_v25, %v1005_v26 }
  0x54   : > { %1779 = vmatprep.subr.bf16.mxu1 %v8309_v41  ;;  %v8373_v41 = vcombine.high %v1009_v33, %v1013_v8 }
  0x56   : > { %1737 = vmatpush1.bf16.msra.mxu0 %v8306_v35  ;;  %v8370_v35 = vcombine.low %v1008_v21, %v1012_v22 }
  0x57   : > { %1738 = vmatprep.subr.bf16.mxu0 %v8315_v39  ;;  %1780 = vmatpush1.bf16.msra.mxu1 %v8308_v45  ;;  %v8379_v39 = vcombine.high %v1016_v29, %v1020_v30  ;;  %v1025_v45 = vld [vmem:[%s12773_s3 + $0x348] sm:$0xff] }
  0x58   : > { %1781 = vmatprep.subr.bf16.mxu1 %v8317_v49  ;;  %v8380_v49 = vcombine.low %v1017_v40, %v1021_v6  ;;  %v934_v6 = vld [vmem:[%s12773_s3 + $0x70] sm:$0xff] }
  0x5a   : > { %1739 = vmatpush1.bf16.msra.mxu0 %v8314_v42  ;;  %v8378_v42 = vcombine.low %v1016_v29, %v1020_v30 }
  0x5b   : > { %1740 = vmatprep.subr.bf16.mxu0 %v8323_v46  ;;  %1782 = vmatpush1.bf16.msra.mxu1 %v8316_v53  ;;  %v1029_v46 = vld [vmem:[%s12773_s3 + $0x368] sm:$0xff] }
  0x5c   : > { %1783 = vmatprep.subr.bf16.mxu1 %v8325_v57  ;;  %v8389_v53 = vcombine.high %v1025_v45, %v1029_v46  ;;  %v8388_v57 = vcombine.low %v1025_v45, %v1029_v46 }
  0x5e   : > { %1741 = vmatpush1.bf16.msra.mxu0 %v8322_v50  ;;  %v1032_v50 = vld [vmem:[%s12773_s3 + $0x380] sm:$0xff] }
  0x5f   : > { %1742 = vmatprep.subr.bf16.mxu0 %v8331_v54  ;;  %1784 = vmatpush1.bf16.msra.mxu1 %v8324_v61  ;;  %v8395_v54 = vcombine.high %v1032_v50, %v1036_v51  ;;  %v8394_v56 = vcombine.low %v1032_v50, %v1036_v51  ;;  %v8397_v61 = vcombine.high %v1033_v52, %v1037_v55 }
  0x60   : > { %1785 = vmatprep.subr.bf16.mxu1 %v8333_v1  ;;  %v8396_v1 = vcombine.low %v1033_v52, %v1037_v55  ;;  %v8295_v52 = vcombine.high %v930_v37, %v934_v6  ;;  %v939_v55 = vld [vmem:[%s12773_s3 + $0x98] sm:$0xff] }
  0x62   : > { %1743 = vmatpush1.bf16.msra.mxu0 %v8330_v58  ;;  %v1040_v58 = vld [vmem:[%s12773_s3 + $0x3c0] sm:$0xff] }
  0x63   : > { %1744 = vmatprep.subr.bf16.mxu0 %v8339_v62  ;;  %1786 = vmatpush1.bf16.msra.mxu1 %v8332_v5  ;;  %v8403_v62 = vcombine.high %v1040_v58, %v1044_v59  ;;  %v8402_v0 = vcombine.low %v1040_v58, %v1044_v59  ;;  %v8405_v5 = vcombine.high %v1041_v60, %v1045_v63 }
  0x64   : > { %1787 = vmatprep.subr.bf16.mxu1 %v8341_v11  ;;  %v8288_v11 = vcombine.low %v10350_v4, %v10357_v9  ;;  %v8294_v59 = vcombine.low %v930_v37, %v934_v6  ;;  %v951_v4 = vld [vmem:[%s12773_s3 + $0xf8] sm:$0xff] }
  0x66   : > { %1745 = vmatpush1.bf16.msra.mxu0 %v8338_v2  ;;  %v10340_v2 = vld [vmem:[%s12773_s3 + $0x10] sm:$0xff] }
  0x67   : > { %1746 = vmatprep.subr.bf16.mxu0 %v8347_v7  ;;  %1788 = vmatpush1.bf16.msra.mxu1 %v8340_v15  ;;  %v8287_v7 = vcombine.high %v10340_v2, %v10345_v3  ;;  %v8286_v10 = vcombine.low %v10340_v2, %v10345_v3  ;;  %v10365_v15 = vshrl.u32 %v354_v14, 7  ;;  %v950_v2 = vld [vmem:[%s12773_s3 + $0xf0] sm:$0xff]  ;;  %v947_v3 = vld [vmem:[%s12773_s3 + $0xd8] sm:$0xff] }
  0x68   : > { %1789 = vmatprep.subr.bf16.mxu1 %v8349_v19  ;;  %v959_v14 = vld [vmem:[%s12773_s3 + $0x138] sm:$0xff] }
  0x69   : > { %v10371_v17 = vsub.s32 1, %v10365_v15  ;;  %v10383_v21 = vsub.s32 2, %v10365_v15  ;;  %v10386_v22 = vsub.s32 3, %v10365_v15  ;;  %v10476_v37 = vsub.s32 5, %v10365_v15 }
  0x6a   : > { %1747 = vmatpush1.bf16.msra.mxu0 %v8346_v12  ;;  %v8404_v12 = vcombine.low %v1041_v60, %v1045_v63 }
  0x6b   : > { %1748 = vmatprep.subr.bf16.mxu0 %v8355_v16  ;;  %1790 = vmatpush1.bf16.msra.mxu1 %v8348_v23  ;;  %v10368_v16 = vsub.s32 0, %v10365_v15 }
  0x6c   : > { %1791 = vmatprep.subr.bf16.mxu1 %v8357_v27 }
  0x6d   : > { %v357_v19 = vrot.slane %v10376_v18, %v10368_v16 }
  0x6e   : > { %1749 = vmatpush1.bf16.msra.mxu0 %v8354_v20  ;;  %v361_v20 = vrot.slane %v10376_v18, %v10371_v17 }
  0x6f   : > { %1750 = vmatprep.subr.bf16.mxu0 %v8363_v24  ;;  %1792 = vmatpush1.bf16.msra.mxu1 %v8356_v31  ;;  %v369_v31 = vrot.slane %v10376_v18, %v10386_v22 }
  0x70   : > { %1793 = vmatprep.subr.bf16.mxu1 %v8365_v34 }
  0x72   : > { %1751 = vmatpush1.bf16.msra.mxu0 %v8362_v28  ;;  %v365_v28 = vrot.slane %v10376_v18, %v10383_v21 }
  0x73   : > { %1752 = vmatprep.subr.bf16.mxu0 %v8371_v32  ;;  %1794 = vmatpush1.bf16.msra.mxu1 %v8364_v38 }
  0x74   : > { %1795 = vmatprep.subr.bf16.mxu1 %v8373_v41  ;;  %v931_v41 = vld [vmem:[%s12773_s3 + $0x58] sm:$0xff] }
  0x76   : > { %1753 = vmatpush1.bf16.msra.mxu0 %v8370_v35 }
  0x77   : > { %1754 = vmatprep.subr.bf16.mxu0 %v8379_v39  ;;  %1796 = vmatpush1.bf16.msra.mxu1 %v8372_v43 }
  0x78   : > { %1797 = vmatprep.subr.bf16.mxu1 %v8381_v47 }
  0x7a   : > { %1755 = vmatpush1.bf16.msra.mxu0 %v8378_v42  ;;  %v935_v42 = vld [vmem:[%s12773_s3 + $0x78] sm:$0xff] }
  0x7b   : > { %1756 = vmatprep.subr.bf16.mxu0 %v8387_v44  ;;  %1798 = vmatpush1.bf16.msra.mxu1 %v8380_v49  ;;  %v938_v49 = vld [vmem:[%s12773_s3 + $0x90] sm:$0xff]  ;;  %v8296_v60 = vcombine.low %v931_v41, %v935_v42 }
  0x7c   : > { %1799 = vmatprep.subr.bf16.mxu1 %v8389_v53  ;;  %v8297_v53 = vcombine.high %v931_v41, %v935_v42  ;;  %v978_v42 = vld [vmem:[%s12773_s3 + $0x1d0] sm:$0xff] }
  0x7e   : > { %1757 = vmatpush1.bf16.msra.mxu0 %v8386_v48 }
  0x7f   : > { %1758 = vmatprep.subr.bf16.mxu0 %v8395_v54  ;;  %1800 = vmatpush1.bf16.msra.mxu1 %v8388_v57  ;;  %v942_v54 = vld [vmem:[%s12773_s3 + $0xb0] sm:$0xff] }
  0x80   : > { %1801 = vmatprep.subr.bf16.mxu1 %v8397_v61 }
  0x82   : > { %1759 = vmatpush1.bf16.msra.mxu0 %v8394_v56  ;;  %v943_v56 = vld [vmem:[%s12773_s3 + $0xb8] sm:$0xff] }
  0x83   : > { %1760 = vmatprep.subr.bf16.mxu0 %v8403_v62  ;;  %1802 = vmatpush1.bf16.msra.mxu1 %v8396_v1  ;;  %v8303_v62 = vcombine.high %v938_v49, %v942_v54  ;;  %v8305_v63 = vcombine.high %v939_v55, %v943_v56 }
  0x84   : > { %1803 = vmatprep.subr.bf16.mxu1 %v8405_v5  ;;  %v8302_v5 = vcombine.low %v938_v49, %v942_v54  ;;  %v10498_v49 = vsub.s32 7, %v10365_v15 }
  0x86   : > { %1761 = vmatpush1.bf16.msra.mxu0 %v8402_v0  ;;  %v946_v0 = vld [vmem:[%s12773_s3 + $0xd0] sm:$0xff] }
  0x87   : > { %1816 = vmatprep.subr.bf16.mxu0 %v8287_v7  ;;  %1804 = vmatpush1.bf16.msra.mxu1 %v8404_v12  ;;  %v8304_v7 = vcombine.low %v939_v55, %v943_v56  ;;  %v8311_v9 = vcombine.high %v946_v0, %v950_v2  ;;  %v958_v12 = vld [vmem:[%s12773_s3 + $0x130] sm:$0xff] }
  0x88   : > { %1859 = vmatprep.subr.bf16.mxu1 %v8289_v13  ;;  %v955_v13 = vld [vmem:[%s12773_s3 + $0x118] sm:$0xff]  ;;  %v986_v55 = vld [vmem:[%s12773_s3 + $0x210] sm:$0xff] }
  0xfc   : > { %v748_v23 = vpop.f32.mrb[0].mxu0  ;;  %v791_v34 = vpop.f32.mrb[0].mxu1 }
  0xfd   : > { %v749_v24 = vadd.f32 %v748_v23, %v357_v19  ;;  %v750_v25 = vpop.f32.mrb[1].mxu0  ;;  %v792_v38 = vadd.f32 %v791_v34, %v365_v28  ;;  %v793_v39 = vpop.f32.mrb[1].mxu1  ;;  %v974_v34 = vld [vmem:[%s12773_s3 + $0x1b0] sm:$0xff] }
  0xfe   : > { %v751_v26 = vadd.f32 %v750_v25, %v361_v20  ;;  %v752_v27 = vpop.f32.mrb[2].mxu0  ;;  %v794_v43 = vadd.f32 %v793_v39, %v369_v31  ;;  %v795_v44 = vpop.f32.mrb[2].mxu1  ;;  %v962_v25 = vld [vmem:[%s12773_s3 + $0x150] sm:$0xff] }
  0xff   : > { %v753_v29 = vadd.f32 %v752_v27, %v357_v19  ;;  %v754_v30 = vpop.f32.mrb[3].mxu0  ;;  %v886_v33 = vmax.f32 %v749_v24, 0.0  ;;  %v888_v46 = vmax.f32 %v792_v38, 0.0  ;;  %v796_v47 = vadd.f32 %v795_v44, %v365_v28  ;;  %v797_v48 = vpop.f32.mrb[3].mxu1  ;;  %v963_v27 = vld [vmem:[%s12773_s3 + $0x158] sm:$0xff]  ;;  %v982_v44 = vld [vmem:[%s12773_s3 + $0x1f0] sm:$0xff] }
 0x100   : > { %v755_v32 = vadd.f32 %v754_v30, %v361_v20  ;;  %v887_v35 = vmax.f32 %v751_v26, 0.0  ;;  %v889_v50 = vmax.f32 %v794_v43, 0.0  ;;  %v798_v51 = vadd.f32 %v797_v48, %v369_v31  ;;  %v966_v26 = vld [vmem:[%s12773_s3 + $0x170] sm:$0xff]  ;;  %v967_v28 = vld [vmem:[%s12773_s3 + $0x178] sm:$0xff] }
 0x101   : > { %v894_v8 = vmax.f32 %v753_v29, 0.0  ;;  %v896_v57 = vmax.f32 %v796_v47, 0.0  ;;  %v8310_v19 = vcombine.low %v946_v0, %v950_v2  ;;  %v8312_v20 = vcombine.low %v947_v3, %v951_v4 }
 0x102   : > { %v895_v36 = vmax.f32 %v755_v32, 0.0  ;;  %v897_v58 = vmax.f32 %v798_v51, 0.0  ;;  %v8321_v24 = vcombine.high %v955_v13, %v959_v14  ;;  %v8320_v30 = vcombine.low %v955_v13, %v959_v14  ;;  %v994_v13 = vld [vmem:[%s12773_s3 + $0x250] sm:$0xff] }
 0x103   : > { %v10395_v40 = vpack.c.bf16 %v894_v8, %v886_v33  ;;  %v10420_v61 = vpack.c.bf16 %v896_v57, %v888_v46  ;;  %v8327_v31 = vcombine.high %v962_v25, %v966_v26  ;;  %v8329_v32 = vcombine.high %v963_v27, %v967_v28  ;;  %v970_v33 = vld [vmem:[%s12773_s3 + $0x190] sm:$0xff]  ;;  %v983_v46 = vld [vmem:[%s12773_s3 + $0x1f8] sm:$0xff] }
 0x104   : > { %v903_v45 = vpack.c.bf16 %v895_v36, %v887_v35  ;;  %v10425_v1 = vpack.c.bf16 %v897_v58, %v889_v50  ;;  %v10464_v8 = vsub.s32 4, %v10365_v15  ;;  %v971_v35 = vld [vmem:[%s12773_s3 + $0x198] sm:$0xff]  ;;  %v8326_v38 = vcombine.low %v962_v25, %v966_v26 }
 0x105   : > { %v975_v36 = vld [vmem:[%s12773_s3 + $0x1b8] sm:$0xff]  ;;  %v8328_v39 = vcombine.low %v963_v27, %v967_v28  ;;  %v8335_v6 = vcombine.high %v970_v33, %v974_v34  ;;  %v10493_v47 = vsub.s32 6, %v10365_v15  ;;  %v377_v48 = vrot.slane %v10376_v18, %v10476_v37  ;;  %v990_v15 = vld [vmem:[%s12773_s3 + $0x230] sm:$0xff] }
 0x106   : > { %1762 = vmatprep.mubr.bf16.mxu0 %v903_v45  ;;  %1805 = vmatprep.mubr.bf16.mxu1 %v903_v45  ;;  %v8337_v41 = vcombine.high %v971_v35, %v975_v36  ;;  %v373_v43 = vrot.slane %v10376_v18, %v10464_v8  ;;  %v8334_v50 = vcombine.low %v970_v33, %v974_v34  ;;  %v987_v58 = vld [vmem:[%s12773_s3 + $0x218] sm:$0xff] }
 0x107   : > { %1763 = vmatmul.mubr.bf16.vlgmr.msra.gmra.mrb[8].mxu0 %v10395_v40  ;;  %1806 = vmatmul.mubr.bf16.vlgmr.msra.gmra.mrb[8].mxu1 %v10395_v40  ;;  %v8336_v51 = vcombine.low %v971_v35, %v975_v36  ;;  %v385_v2 = vrot.slane %v10376_v18, %v10498_v49  ;;  %v8350_v27 = vcombine.low %v986_v55, %v990_v15 }
 0x108   : > { %1817 = vmatpush1.bf16.msra.mxu0 %v8286_v10  ;;  %1860 = vmatpush1.bf16.msra.mxu1 %v8288_v11  ;;  %v8313_v10 = vcombine.high %v947_v3, %v951_v4  ;;  %v954_v11 = vld [vmem:[%s12773_s3 + $0x110] sm:$0xff] }
 0x109   : > { %1848 = vmatprep.mubr.bf16.mxu0 %v903_v45  ;;  %1891 = vmatprep.mubr.bf16.mxu1 %v903_v45  ;;  %v8319_v23 = vcombine.high %v954_v11, %v958_v12  ;;  %v8318_v29 = vcombine.low %v954_v11, %v958_v12  ;;  %v979_v45 = vld [vmem:[%s12773_s3 + $0x1d8] sm:$0xff]  ;;  %v8351_v11 = vcombine.high %v986_v55, %v990_v15 }
 0x10a   : > { %1818 = vmatprep.subr.bf16.mxu0 %v8295_v52  ;;  %1861 = vmatprep.subr.bf16.mxu1 %v8297_v53  ;;  %v8343_v53 = vcombine.high %v978_v42, %v982_v44  ;;  %v8345_v54 = vcombine.high %v979_v45, %v983_v46  ;;  %v1015_v15 = vld [vmem:[%s12773_s3 + $0x2f8] sm:$0xff] }
 0x10c   : > { %1819 = vmatpush1.bf16.msra.mxu0 %v8294_v59  ;;  %1862 = vmatpush1.bf16.msra.mxu1 %v8296_v60  ;;  %v991_v59 = vld [vmem:[%s12773_s3 + $0x238] sm:$0xff]  ;;  %v381_v60 = vrot.slane %v10376_v18, %v10493_v47  ;;  %v998_v18 = vld [vmem:[%s12773_s3 + $0x270] sm:$0xff] }
 0x10d   : > { %1820 = vmatprep.subr.bf16.mxu0 %v8303_v62  ;;  %1863 = vmatprep.subr.bf16.mxu1 %v8305_v63  ;;  %v8353_v12 = vcombine.high %v987_v58, %v991_v59  ;;  %v8359_v36 = vcombine.high %v994_v13, %v998_v18 }
 0x110   : > { %1821 = vmatpush1.bf16.msra.mxu0 %v8302_v5  ;;  %1864 = vmatpush1.bf16.msra.mxu1 %v8304_v7  ;;  %v8342_v5 = vcombine.low %v978_v42, %v982_v44  ;;  %v8344_v7 = vcombine.low %v979_v45, %v983_v46  ;;  %v1006_v42 = vld [vmem:[%s12773_s3 + $0x2b0] sm:$0xff]  ;;  %v1007_v44 = vld [vmem:[%s12773_s3 + $0x2b8] sm:$0xff] }
 0x111   : > { %1822 = vmatprep.subr.bf16.mxu0 %v8311_v9  ;;  %1865 = vmatprep.subr.bf16.mxu1 %v8313_v10 }
 0x114   : > { %1823 = vmatpush1.bf16.msra.mxu0 %v8310_v19  ;;  %1866 = vmatpush1.bf16.msra.mxu1 %v8312_v20  ;;  %v995_v20 = vld [vmem:[%s12773_s3 + $0x258] sm:$0xff] }
 0x115   : > { %1824 = vmatprep.subr.bf16.mxu0 %v8319_v23  ;;  %1867 = vmatprep.subr.bf16.mxu1 %v8321_v24  ;;  %v999_v23 = vld [vmem:[%s12773_s3 + $0x278] sm:$0xff] }
 0x118   : > { %1825 = vmatpush1.bf16.msra.mxu0 %v8318_v29  ;;  %1868 = vmatpush1.bf16.msra.mxu1 %v8320_v30 }
 0x119   : > { %1826 = vmatprep.subr.bf16.mxu0 %v8327_v31  ;;  %1869 = vmatprep.subr.bf16.mxu1 %v8329_v32  ;;  %v8352_v31 = vcombine.low %v987_v58, %v991_v59 }
 0x11c   : > { %1827 = vmatpush1.bf16.msra.mxu0 %v8326_v38  ;;  %1870 = vmatpush1.bf16.msra.mxu1 %v8328_v39  ;;  %v834_v52 = vpop.f32.mrb[4].mxu0  ;;  %v8361_v38 = vcombine.high %v995_v20, %v999_v23  ;;  %v1002_v39 = vld [vmem:[%s12773_s3 + $0x290] sm:$0xff] }
 0x11d   : > { %1828 = vmatprep.subr.bf16.mxu0 %v8335_v6  ;;  %1871 = vmatprep.subr.bf16.mxu1 %v8337_v41  ;;  %v835_v56 = vadd.f32 %v834_v52, %v373_v43  ;;  %v836_v57 = vpop.f32.mrb[5].mxu0  ;;  %v877_v14 = vpop.f32.mrb[4].mxu1  ;;  %v8367_v52 = vcombine.high %v1002_v39, %v1006_v42  ;;  %v8366_v58 = vcombine.low %v1002_v39, %v1006_v42 }
 0x11e   : > { %v837_v62 = vadd.f32 %v836_v57, %v377_v48  ;;  %v838_v63 = vpop.f32.mrb[6].mxu0  ;;  %v878_v24 = vadd.f32 %v877_v14, %v381_v60  ;;  %v879_v25 = vpop.f32.mrb[5].mxu1  ;;  %v1011_v57 = vld [vmem:[%s12773_s3 + $0x2d8] sm:$0xff] }
 0x11f   : > { %v890_v0 = vmax.f32 %v835_v56, 0.0  ;;  %v839_v3 = vadd.f32 %v838_v63, %v373_v43  ;;  %v840_v4 = vpop.f32.mrb[7].mxu0  ;;  %v880_v28 = vadd.f32 %v879_v25, %v385_v2  ;;  %v881_v30 = vpop.f32.mrb[6].mxu1  ;;  %v1003_v43 = vld [vmem:[%s12773_s3 + $0x298] sm:$0xff]  ;;  %v1014_v56 = vld [vmem:[%s12773_s3 + $0x2f0] sm:$0xff] }
 0x120   : > { %1829 = vmatpush1.bf16.msra.mxu0 %v8334_v50  ;;  %1872 = vmatpush1.bf16.msra.mxu1 %v8336_v51  ;;  %v891_v9 = vmax.f32 %v837_v62, 0.0  ;;  %v841_v10 = vadd.f32 %v840_v4, %v377_v48  ;;  %v892_v32 = vmax.f32 %v878_v24, 0.0  ;;  %v882_v33 = vadd.f32 %v881_v30, %v381_v60  ;;  %v883_v35 = vpop.f32.mrb[7].mxu1  ;;  %v1018_v63 = vld [vmem:[%s12773_s3 + $0x310] sm:$0xff]  ;;  %v1035_v25 = vld [vmem:[%s12773_s3 + $0x398] sm:$0xff] }
 0x121   : > { %1830 = vmatprep.subr.bf16.mxu0 %v8343_v53  ;;  %1873 = vmatprep.subr.bf16.mxu1 %v8345_v54  ;;  %v898_v19 = vmax.f32 %v839_v3, 0.0  ;;  %v893_v6 = vmax.f32 %v880_v28, 0.0  ;;  %v884_v41 = vadd.f32 %v883_v35, %v385_v2  ;;  %v8358_v48 = vcombine.low %v994_v13, %v998_v18  ;;  %v1010_v54 = vld [vmem:[%s12773_s3 + $0x2d0] sm:$0xff]  ;;  %v1019_v2 = vld [vmem:[%s12773_s3 + $0x318] sm:$0xff] }
 0x122   : > { %v899_v26 = vmax.f32 %v841_v10, 0.0  ;;  %v900_v45 = vmax.f32 %v882_v33, 0.0  ;;  %v8360_v50 = vcombine.low %v995_v20, %v999_v23  ;;  %v8369_v53 = vcombine.high %v1003_v43, %v1007_v44  ;;  %v1023_v3 = vld [vmem:[%s12773_s3 + $0x338] sm:$0xff]  ;;  %v1026_v10 = vld [vmem:[%s12773_s3 + $0x350] sm:$0xff] }
 0x123   : > { %v10528_v29 = vpack.c.bf16 %v898_v19, %v890_v0  ;;  %v901_v46 = vmax.f32 %v884_v41, 0.0  ;;  %v8368_v59 = vcombine.low %v1003_v43, %v1007_v44  ;;  %v8375_v60 = vcombine.high %v1010_v54, %v1014_v56  ;;  %v1022_v0 = vld [vmem:[%s12773_s3 + $0x330] sm:$0xff]  ;;  %v1031_v13 = vld [vmem:[%s12773_s3 + $0x378] sm:$0xff]  ;;  %v9494_v44 = vld [vmem:[%s12775_s5 + $0x40] sm:$0xff]  }
 0x124   : > { %1831 = vmatpush1.bf16.msra.mxu0 %v8342_v5  ;;  %1874 = vmatpush1.bf16.msra.mxu1 %v8344_v7  ;;  %v10530_v34 = vpack.c.bf16 %v899_v26, %v891_v9  ;;  %v10544_v51 = vpack.c.bf16 %v900_v45, %v892_v32  ;;  %v8377_v62 = vcombine.high %v1011_v57, %v1015_v15  ;;  %v1034_v23 = vld [vmem:[%s12773_s3 + $0x390] sm:$0xff]  ;;  %v1039_v26 = vld [vmem:[%s12773_s3 + $0x3b8] sm:$0xff]  ;;  %v9495_v45 = vld [vmem:[%s12775_s5 + $0x40] sm:$0xff]  }
 0x125   : > { %1832 = vmatprep.subr.bf16.mxu0 %v8351_v11  ;;  %1875 = vmatprep.subr.bf16.mxu1 %v8353_v12  ;;  %v10549_v55 = vpack.c.bf16 %v901_v46, %v893_v6  ;;  %v8374_v4 = vcombine.low %v1010_v54, %v1014_v56  ;;  %v8376_v5 = vcombine.low %v1011_v57, %v1015_v15  ;;  %v1030_v11 = vld [vmem:[%s12773_s3 + $0x370] sm:$0xff]  ;;  %v1027_v12 = vld [vmem:[%s12773_s3 + $0x358] sm:$0xff]  ;;  %v9496_v46 = vld [vmem:[%s12775_s5] sm:$0xff]  }
 0x126   : > { %v8383_v7 = vcombine.high %v1018_v63, %v1022_v0  ;;  %v8385_v9 = vcombine.high %v1019_v2, %v1023_v3  ;;  %v8382_v14 = vcombine.low %v1018_v63, %v1022_v0  ;;  %v8384_v19 = vcombine.low %v1019_v2, %v1023_v3  ;;  %v1038_v24 = vld [vmem:[%s12773_s3 + $0x3b0] sm:$0xff]  ;;  %v1043_v35 = vld [vmem:[%s12773_s3 + $0x3d8] sm:$0xff]  ;;  %v9501_v54 = vld [vmem:[%s12775_s5 + $0x8] sm:$0xff]  }
 0x127   : > { %v8391_v18 = vcombine.high %v1026_v10, %v1030_v11  ;;  %v8393_v20 = vcombine.high %v1027_v12, %v1031_v13  ;;  %v8392_v28 = vcombine.low %v1027_v12, %v1031_v13  ;;  %v8399_v30 = vcombine.high %v1034_v23, %v1038_v24  ;;  %v1042_v32 = vld [vmem:[%s12773_s3 + $0x3d0] sm:$0xff]  ;;  %v9510_v63 = vld [vmem:[%s12775_s5 + $0x60] sm:$0xff]  }
 0x128   : > { %1833 = vmatpush1.bf16.msra.mxu0 %v8350_v27  ;;  %1876 = vmatpush1.bf16.msra.mxu1 %v8352_v31  ;;  %v8390_v27 = vcombine.low %v1026_v10, %v1030_v11  ;;  %v8401_v31 = vcombine.high %v1035_v25, %v1039_v26  ;;  %v1046_v33 = vld [vmem:[%s12773_s3 + $0x3f0] sm:$0xff]  ;;  %v8400_v39 = vcombine.low %v1035_v25, %v1039_v26  ;;  %v9511_v0 = vld [vmem:[%s12775_s5 + $0x60] sm:$0xff]  }
 0x129   : > { %1834 = vmatprep.subr.bf16.mxu0 %v8359_v36  ;;  %1877 = vmatprep.subr.bf16.mxu1 %v8361_v38  ;;  %v1047_v36 = vld [vmem:[%s12773_s3 + $0x3f8] sm:$0xff]  ;;  %v8398_v38 = vcombine.low %v1034_v23, %v1038_v24  ;;  %v8407_v6 = vcombine.high %v1042_v32, %v1046_v33  ;;  %v8406_v42 = vcombine.low %v1042_v32, %v1046_v33  ;;  %v9502_v56 = vld [vmem:[%s12775_s5 + $0x50] sm:$0xff]   ;;  %v9512_v2 = vld [vmem:[%s12775_s5 + $0x20] sm:$0xff]  }
 0x12a   : > { %v8409_v41 = vcombine.high %v1043_v35, %v1047_v36  ;;  %v8408_v43 = vcombine.low %v1043_v35, %v1047_v36  ;;  %v9504_v57 = vld [vmem:[%s12775_s5 + $0x10] sm:$0xff]   ;;  %v9513_v3 = vld [vmem:[%s12775_s5 + $0x20] sm:$0xff]  }
 0x12b   : > { %v9505_v15 = vld [vmem:[%s12775_s5 + $0x10] sm:$0xff]   ;;  %v9526_v23 = vld [vmem:[%s12775_s5 + $0x40] sm:$0xff]  }
 0x12c   : > { %1835 = vmatpush1.bf16.msra.mxu0 %v8358_v48  ;;  %1878 = vmatpush1.bf16.msra.mxu1 %v8360_v50  ;;  %v9497_v48 = vld [vmem:[%s12775_s5] sm:$0xff]   ;;  %v9498_v50 = vld [vmem:[%s12775_s5 + $0x48] sm:$0xff]   ;;  %v9518_v10 = vld [vmem:[%s12775_s5 + $0x70] sm:$0xff]  }
 0x12d   : > { %1836 = vmatprep.subr.bf16.mxu0 %v8367_v52  ;;  %1879 = vmatprep.subr.bf16.mxu1 %v8369_v53  ;;  %v9499_v52 = vld [vmem:[%s12775_s5 + $0x48] sm:$0xff]   ;;  %v9519_v11 = vld [vmem:[%s12775_s5 + $0x70] sm:$0xff]   ;;  %v9527_v24 = vld [vmem:[%s12775_s5 + $0x40] sm:$0xff]  }
 0x12e   : > { %v9500_v53 = vld [vmem:[%s12775_s5 + $0x8] sm:$0xff]   ;;  %v9520_v12 = vld [vmem:[%s12775_s5 + $0x30] sm:$0xff]   ;;  %v10715_v25 = vld [vmem:[%s12774_s4] sm:$0xff] }
 0x12f   : > { %v9521_v13 = vld [vmem:[%s12775_s5 + $0x30] sm:$0xff]   ;;  %v1053_v26 = vrot.slane %v10715_v25, %v10368_v16 }
 0x130   : > { %1837 = vmatpush1.bf16.msra.mxu0 %v8366_v58  ;;  %1880 = vmatpush1.bf16.msra.mxu1 %v8368_v59  ;;  %v9506_v58 = vld [vmem:[%s12775_s5 + $0x58] sm:$0xff]  }
 0x131   : > { %1838 = vmatprep.subr.bf16.mxu0 %v8375_v60  ;;  %1881 = vmatprep.subr.bf16.mxu1 %v8377_v62  ;;  %v9507_v59 = vld [vmem:[%s12775_s5 + $0x58] sm:$0xff]  }
 0x132   : > { %v9508_v60 = vld [vmem:[%s12775_s5 + $0x18] sm:$0xff]  }
 0x133   : > { %v9509_v62 = vld [vmem:[%s12775_s5 + $0x18] sm:$0xff]  }
 0x134   : > { %1839 = vmatpush1.bf16.msra.mxu0 %v8374_v4  ;;  %1882 = vmatpush1.bf16.msra.mxu1 %v8376_v5  ;;  %v9514_v4 = vld [vmem:[%s12775_s5 + $0x68] sm:$0xff]  }
 0x135   : > { %1840 = vmatprep.subr.bf16.mxu0 %v8383_v7  ;;  %1883 = vmatprep.subr.bf16.mxu1 %v8385_v9  ;;  %v9515_v5 = vld [vmem:[%s12775_s5 + $0x68] sm:$0xff]  }
 0x136   : > { %v9516_v7 = vld [vmem:[%s12775_s5 + $0x28] sm:$0xff]  }
 0x137   : > { %v9517_v9 = vld [vmem:[%s12775_s5 + $0x28] sm:$0xff]  }
 0x138   : > { %1841 = vmatpush1.bf16.msra.mxu0 %v8382_v14  ;;  %1884 = vmatpush1.bf16.msra.mxu1 %v8384_v19  ;;  %v9522_v14 = vld [vmem:[%s12775_s5 + $0x78] sm:$0xff]  }
 0x139   : > { %1842 = vmatprep.subr.bf16.mxu0 %v8391_v18  ;;  %1885 = vmatprep.subr.bf16.mxu1 %v8393_v20  ;;  %v9523_v19 = vld [vmem:[%s12775_s5 + $0x78] sm:$0xff]  }
 0x13a   : > { %v9524_v18 = vld [vmem:[%s12775_s5 + $0x38] sm:$0xff]  }
 0x13b   : > { %v9525_v20 = vld [vmem:[%s12775_s5 + $0x38] sm:$0xff]  }
 0x13c   : > { %1843 = vmatpush1.bf16.msra.mxu0 %v8390_v27  ;;  %1886 = vmatpush1.bf16.msra.mxu1 %v8392_v28  ;;  %v1061_v27 = vrot.slane %v10715_v25, %v10383_v21  ;;  %v1057_v28 = vrot.slane %v10715_v25, %v10371_v17 }
 0x13d   : > { %1844 = vmatprep.subr.bf16.mxu0 %v8399_v30  ;;  %1887 = vmatprep.subr.bf16.mxu1 %v8401_v31  ;;  %v1065_v30 = vrot.slane %v10715_v25, %v10386_v22 }
 0x140   : > { %1845 = vmatpush1.bf16.msra.mxu0 %v8398_v38  ;;  %1888 = vmatpush1.bf16.msra.mxu1 %v8400_v39 }
 0x141   : > { %1846 = vmatprep.subr.bf16.mxu0 %v8407_v6  ;;  %1889 = vmatprep.subr.bf16.mxu1 %v8409_v41 }
 0x144   : > { %1847 = vmatpush1.bf16.msra.mxu0 %v8406_v42  ;;  %1890 = vmatpush1.bf16.msra.mxu1 %v8408_v43 }
 0x145   : > { %9133 = vmatprep.subr.bf16.mxu0 %v9494_v44  ;;  %9155 = vmatprep.subr.bf16.mxu1 %v9495_v45 }
 0x147   : > { %1849 = vmatmul.mubr.bf16.vlgmr.msra.gmra.mrb[12].mxu0 %v10395_v40  ;;  %1892 = vmatmul.mubr.bf16.vlgmr.msra.gmra.mrb[12].mxu1 %v10395_v40  ;;  %v9503_v40 = vld [vmem:[%s12775_s5 + $0x50] sm:$0xff]  }
 0x148   : > { %9134 = vmatpush3.bf16.msra.mxu0 %v9496_v46  ;;  %9156 = vmatpush3.bf16.msra.mxu1 %v9497_v48 }
 0x149   : > { %9135 = vmatprep.subr.bf16.mxu0 %v9498_v50  ;;  %9157 = vmatprep.subr.bf16.mxu1 %v9499_v52 }
 0x14c   : > { %9136 = vmatpush3.bf16.msra.mxu0 %v9500_v53  ;;  %9158 = vmatpush3.bf16.msra.mxu1 %v9501_v54 }
 0x14d   : > { %9137 = vmatprep.subr.bf16.mxu0 %v9502_v56  ;;  %9159 = vmatprep.subr.bf16.mxu1 %v9503_v40 }
 0x150   : > { %9138 = vmatpush3.bf16.msra.mxu0 %v9504_v57  ;;  %9160 = vmatpush3.bf16.msra.mxu1 %v9505_v15 }
 0x151   : > { %9139 = vmatprep.subr.bf16.mxu0 %v9506_v58  ;;  %9161 = vmatprep.subr.bf16.mxu1 %v9507_v59 }
 0x154   : > { %9140 = vmatpush3.bf16.msra.mxu0 %v9508_v60  ;;  %9162 = vmatpush3.bf16.msra.mxu1 %v9509_v62 }
 0x155   : > { %9141 = vmatprep.subr.bf16.mxu0 %v9510_v63  ;;  %9163 = vmatprep.subr.bf16.mxu1 %v9511_v0  ;;  %v9528_v0 = vld [vmem:[%s12775_s5] sm:$0xff]  }
 0x158   : > { %9142 = vmatpush3.bf16.msra.mxu0 %v9512_v2  ;;  %9164 = vmatpush3.bf16.msra.mxu1 %v9513_v3  ;;  %v9529_v2 = vld [vmem:[%s12775_s5] sm:$0xff]   ;;  %v9530_v3 = vld [vmem:[%s12775_s5 + $0x48] sm:$0xff]  }
 0x159   : > { %9143 = vmatprep.subr.bf16.mxu0 %v9514_v4  ;;  %9165 = vmatprep.subr.bf16.mxu1 %v9515_v5  ;;  %v9531_v4 = vld [vmem:[%s12775_s5 + $0x48] sm:$0xff]  }
 0x15a   : > { %v9532_v5 = vld [vmem:[%s12775_s5 + $0x8] sm:$0xff]  }
 0x15c   : > { %9144 = vmatpush3.bf16.msra.mxu0 %v9516_v7  ;;  %9166 = vmatpush3.bf16.msra.mxu1 %v9517_v9  ;;  %v9533_v7 = vld [vmem:[%s12775_s5 + $0x8] sm:$0xff]   ;;  %v9534_v9 = vld [vmem:[%s12775_s5 + $0x50] sm:$0xff]  }
 0x15d   : > { %9145 = vmatprep.subr.bf16.mxu0 %v9518_v10  ;;  %9167 = vmatprep.subr.bf16.mxu1 %v9519_v11  ;;  %v9535_v10 = vld [vmem:[%s12775_s5 + $0x50] sm:$0xff]  }
 0x15e   : > { %v9536_v11 = vld [vmem:[%s12775_s5 + $0x10] sm:$0xff]  }
 0x160   : > { %9146 = vmatpush3.bf16.msra.mxu0 %v9520_v12  ;;  %9168 = vmatpush3.bf16.msra.mxu1 %v9521_v13  ;;  %v9537_v12 = vld [vmem:[%s12775_s5 + $0x10] sm:$0xff]   ;;  %v9538_v13 = vld [vmem:[%s12775_s5 + $0x58] sm:$0xff]  }
 0x161   : > { %9147 = vmatprep.subr.bf16.mxu0 %v9522_v14  ;;  %9169 = vmatprep.subr.bf16.mxu1 %v9523_v19  ;;  %v9539_v14 = vld [vmem:[%s12775_s5 + $0x58] sm:$0xff]  }
 0x162   : > { %v9540_v19 = vld [vmem:[%s12775_s5 + $0x18] sm:$0xff]  }
 0x164   : > { %9148 = vmatpush3.bf16.msra.mxu0 %v9524_v18  ;;  %9170 = vmatpush3.bf16.msra.mxu1 %v9525_v20  ;;  %v9541_v18 = vld [vmem:[%s12775_s5 + $0x18] sm:$0xff]   ;;  %v9542_v20 = vld [vmem:[%s12775_s5 + $0x60] sm:$0xff]  }
 0x165   : > { %9177 = vmatprep.subr.bf16.mxu0 %v9526_v23  ;;  %9199 = vmatprep.subr.bf16.mxu1 %v9527_v24  ;;  %v9543_v23 = vld [vmem:[%s12775_s5 + $0x60] sm:$0xff]  }
 0x166   : > { %v9544_v24 = vld [vmem:[%s12775_s5 + $0x20] sm:$0xff]  }
 0x1da   : > { %v1764_v31 = vpop.f32.mrb[8].mxu0  ;;  %v1807_v32 = vpop.f32.mrb[8].mxu1 }
 0x1db   : > { %v1765_v33 = vadd.f32 %v1764_v31, %v1053_v26  ;;  %v1808_v35 = vadd.f32 %v1807_v32, %v1061_v27  ;;  %v1766_v36 = vpop.f32.mrb[9].mxu0  ;;  %v1809_v38 = vpop.f32.mrb[9].mxu1  ;;  %v9549_v31 = vld [vmem:[%s12775_s5 + $0x28] sm:$0xff]   ;;  %v9550_v32 = vld [vmem:[%s12775_s5 + $0x70] sm:$0xff]  }
 0x1dc   : > { %v1767_v39 = vadd.f32 %v1766_v36, %v1057_v28  ;;  %v1810_v6 = vadd.f32 %v1809_v38, %v1065_v30  ;;  %v1768_v41 = vpop.f32.mrb[10].mxu0  ;;  %v1811_v42 = vpop.f32.mrb[10].mxu1  ;;  %v9553_v36 = vld [vmem:[%s12775_s5 + $0x30] sm:$0xff]   ;;  %v9554_v38 = vld [vmem:[%s12775_s5 + $0x78] sm:$0xff]  }
 0x1dd   : > { %v1769_v43 = vadd.f32 %v1768_v41, %v1053_v26  ;;  %v1812_v44 = vadd.f32 %v1811_v42, %v1061_v27  ;;  %v1770_v45 = vpop.f32.mrb[11].mxu0  ;;  %v1813_v46 = vpop.f32.mrb[11].mxu1  ;;  %v1902_v52 = vmax.f32 %v1765_v33, 0.0  ;;  %v1904_v53 = vmax.f32 %v1808_v35, 0.0  ;;  %v9545_v26 = vld [vmem:[%s12775_s5 + $0x20] sm:$0xff]   ;;  %v9546_v27 = vld [vmem:[%s12775_s5 + $0x68] sm:$0xff]  }
 0x1de   : > { %v1771_v48 = vadd.f32 %v1770_v45, %v1057_v28  ;;  %v1814_v50 = vadd.f32 %v1813_v46, %v1065_v30  ;;  %v1903_v40 = vmax.f32 %v1767_v39, 0.0  ;;  %v1905_v57 = vmax.f32 %v1810_v6, 0.0  ;;  %v9547_v28 = vld [vmem:[%s12775_s5 + $0x68] sm:$0xff]   ;;  %v9551_v33 = vld [vmem:[%s12775_s5 + $0x70] sm:$0xff]   ;;  %v9555_v39 = vld [vmem:[%s12775_s5 + $0x78] sm:$0xff]  }
 0x1df   : > { %v1910_v54 = vmax.f32 %v1769_v43, 0.0  ;;  %v1912_v56 = vmax.f32 %v1812_v44, 0.0  ;;  %v9548_v30 = vld [vmem:[%s12775_s5 + $0x28] sm:$0xff]   ;;  %v9552_v35 = vld [vmem:[%s12775_s5 + $0x30] sm:$0xff]   ;;  %v10812_v6 = vld [vmem:[%s12773_s3] sm:$0xff] }
 0x1e0   : > { %v1911_v15 = vmax.f32 %v1771_v48, 0.0  ;;  %v1913_v58 = vmax.f32 %v1814_v50, 0.0  ;;  %v10817_v41 = vld [vmem:[%s12773_s3 + $0x20] sm:$0xff]  ;;  %v10822_v42 = vld [vmem:[%s12773_s3 + $0x8] sm:$0xff]  ;;  %v9556_v44 = vld [vmem:[%s12775_s5 + $0x38] sm:$0xff]   ;;  %v1069_v50 = vrot.slane %v10715_v25, %v10464_v8 }
 0x1e1   : > { %v1918_v59 = vpack.c.bf16 %v1910_v54, %v1902_v52  ;;  %v1920_v60 = vpack.c.bf16 %v1912_v56, %v1904_v53  ;;  %v2733_v43 = vld [vmem:[%s12773_s3 + $0x28] sm:$0xff]  ;;  %v9557_v45 = vld [vmem:[%s12775_s5 + $0x38] sm:$0xff]   ;;  %v8487_v46 = vcombine.high %v10812_v6, %v10817_v41  ;;  %v1077_v52 = vrot.slane %v10715_v25, %v10493_v47 }
 0x1e2   : > { %v1919_v62 = vpack.c.bf16 %v1911_v15, %v1903_v40  ;;  %v1921_v63 = vpack.c.bf16 %v1913_v58, %v1905_v57  ;;  %v8489_v48 = vcombine.high %v10822_v42, %v2733_v43  ;;  %v1073_v53 = vrot.slane %v10715_v25, %v10476_v37 }
 0x1e3   : > { %v1081_v54 = vrot.slane %v10715_v25, %v10498_v49 }
 0x1e4   : > { %2103 = vmatprep.mubr.bf16.mxu0 %v1919_v62  ;;  %2301 = vmatprep.mubr.bf16.mxu1 %v1921_v63 }
 0x1e5   : > { %2104 = vmatmul.mubr.bf16.vlgmr.msra.gmra.mrb[16].mxu0 %v1918_v59  ;;  %2302 = vmatmul.mubr.bf16.vlgmr.msra.gmra.mrb[16].mxu1 %v1920_v60 }
 0x1e6   : > { %9178 = vmatpush3.bf16.msra.mxu0 %v9528_v0  ;;  %9200 = vmatpush3.bf16.msra.mxu1 %v9529_v2 }
 0x1e7   : > { %9179 = vmatprep.subr.bf16.mxu0 %v9530_v3  ;;  %9201 = vmatprep.subr.bf16.mxu1 %v9531_v4 }
 0x1ea   : > { %9180 = vmatpush3.bf16.msra.mxu0 %v9532_v5  ;;  %9202 = vmatpush3.bf16.msra.mxu1 %v9533_v7 }
 0x1eb   : > { %9181 = vmatprep.subr.bf16.mxu0 %v9534_v9  ;;  %9203 = vmatprep.subr.bf16.mxu1 %v9535_v10 }
 0x1ee   : > { %9182 = vmatpush3.bf16.msra.mxu0 %v9536_v11  ;;  %9204 = vmatpush3.bf16.msra.mxu1 %v9537_v12 }
 0x1ef   : > { %9183 = vmatprep.subr.bf16.mxu0 %v9538_v13  ;;  %9205 = vmatprep.subr.bf16.mxu1 %v9539_v14 }
 0x1f2   : > { %9184 = vmatpush3.bf16.msra.mxu0 %v9540_v19  ;;  %9206 = vmatpush3.bf16.msra.mxu1 %v9541_v18 }
 0x1f3   : > { %9185 = vmatprep.subr.bf16.mxu0 %v9542_v20  ;;  %9207 = vmatprep.subr.bf16.mxu1 %v9543_v23  ;;  %v2736_v20 = vld [vmem:[%s12773_s3 + $0x40] sm:$0xff] }
 0x1f6   : > { %9186 = vmatpush3.bf16.msra.mxu0 %v9544_v24  ;;  %9208 = vmatpush3.bf16.msra.mxu1 %v9545_v26  ;;  %v2740_v26 = vld [vmem:[%s12773_s3 + $0x60] sm:$0xff] }
 0x1f7   : > { %9187 = vmatprep.subr.bf16.mxu0 %v9546_v27  ;;  %9209 = vmatprep.subr.bf16.mxu1 %v9547_v28  ;;  %v2737_v27 = vld [vmem:[%s12773_s3 + $0x48] sm:$0xff] }
 0x1f8   : > { %v2741_v28 = vld [vmem:[%s12773_s3 + $0x68] sm:$0xff] }
 0x1fa   : > { %9188 = vmatpush3.bf16.msra.mxu0 %v9548_v30  ;;  %9210 = vmatpush3.bf16.msra.mxu1 %v9549_v31 }
 0x1fb   : > { %9189 = vmatprep.subr.bf16.mxu0 %v9550_v32  ;;  %9211 = vmatprep.subr.bf16.mxu1 %v9551_v33  ;;  %v8486_v32 = vcombine.low %v10812_v6, %v10817_v41  ;;  %v8488_v33 = vcombine.low %v10822_v42, %v2733_v43  ;;  %v2749_v6 = vld [vmem:[%s12773_s3 + $0xa8] sm:$0xff]  ;;  %v8494_v41 = vcombine.low %v2736_v20, %v2740_v26 }
 0x1fc   : > { %v8496_v42 = vcombine.low %v2737_v27, %v2741_v28 }
 0x1fe   : > { %9190 = vmatpush3.bf16.msra.mxu0 %v9552_v35  ;;  %9212 = vmatpush3.bf16.msra.mxu1 %v9553_v36  ;;  %v2744_v35 = vld [vmem:[%s12773_s3 + $0x80] sm:$0xff]  ;;  %v8495_v36 = vcombine.high %v2736_v20, %v2740_v26 }
 0x1ff   : > { %9191 = vmatprep.subr.bf16.mxu0 %v9554_v38  ;;  %9213 = vmatprep.subr.bf16.mxu1 %v9555_v39  ;;  %v8497_v38 = vcombine.high %v2737_v27, %v2741_v28  ;;  %v2748_v39 = vld [vmem:[%s12773_s3 + $0xa0] sm:$0xff]  ;;  %v2785_v27 = vld [vmem:[%s12773_s3 + $0x1c8] sm:$0xff] }
 0x200   : > { %v8503_v43 = vcombine.high %v2744_v35, %v2748_v39  ;;  %v2788_v26 = vld [vmem:[%s12773_s3 + $0x1e0] sm:$0xff]  ;;  %v2789_v28 = vld [vmem:[%s12773_s3 + $0x1e8] sm:$0xff] }
 0x202   : > { %9192 = vmatpush3.bf16.msra.mxu0 %v9556_v44  ;;  %9214 = vmatpush3.bf16.msra.mxu1 %v9557_v45  ;;  %v2745_v44 = vld [vmem:[%s12773_s3 + $0x88] sm:$0xff] }
 0x203   : > { %3538 = vmatprep.subr.bf16.mxu0 %v8487_v46  ;;  %3581 = vmatprep.subr.bf16.mxu1 %v8489_v48  ;;  %v8505_v45 = vcombine.high %v2745_v44, %v2749_v6  ;;  %v2752_v46 = vld [vmem:[%s12773_s3 + $0xc0] sm:$0xff] }
 0x204   : > { %v2756_v48 = vld [vmem:[%s12773_s3 + $0xe0] sm:$0xff] }
 0x21a   : > { %v1850_v56 = vpop.f32.mrb[12].mxu0  ;;  %v1893_v40 = vpop.f32.mrb[12].mxu1 }
 0x21b   : > { %v1851_v57 = vadd.f32 %v1850_v56, %v1069_v50  ;;  %v1894_v15 = vadd.f32 %v1893_v40, %v1077_v52  ;;  %v1852_v58 = vpop.f32.mrb[13].mxu0  ;;  %v1895_v59 = vpop.f32.mrb[13].mxu1  ;;  %v8511_v56 = vcombine.high %v2752_v46, %v2756_v48 }
 0x21c   : > { %v1853_v60 = vadd.f32 %v1852_v58, %v1073_v53  ;;  %v1896_v62 = vadd.f32 %v1895_v59, %v1081_v54  ;;  %v1854_v63 = vpop.f32.mrb[14].mxu0  ;;  %v1897_v0 = vpop.f32.mrb[14].mxu1  ;;  %v2761_v58 = vld [vmem:[%s12773_s3 + $0x108] sm:$0xff] }
 0x21d   : > { %v1855_v2 = vadd.f32 %v1854_v63, %v1069_v50  ;;  %v1898_v3 = vadd.f32 %v1897_v0, %v1077_v52  ;;  %v1856_v4 = vpop.f32.mrb[15].mxu0  ;;  %v1899_v5 = vpop.f32.mrb[15].mxu1  ;;  %v1906_v10 = vmax.f32 %v1851_v57, 0.0  ;;  %v1908_v11 = vmax.f32 %v1894_v15, 0.0  ;;  %v2753_v50 = vld [vmem:[%s12773_s3 + $0xc8] sm:$0xff]  ;;  %v2760_v57 = vld [vmem:[%s12773_s3 + $0x100] sm:$0xff] }
 0x21e   : > { %v1857_v7 = vadd.f32 %v1856_v4, %v1073_v53  ;;  %v1900_v9 = vadd.f32 %v1899_v5, %v1081_v54  ;;  %v1907_v13 = vmax.f32 %v1853_v60, 0.0  ;;  %v1909_v14 = vmax.f32 %v1896_v62, 0.0  ;;  %v2757_v52 = vld [vmem:[%s12773_s3 + $0xe8] sm:$0xff]  ;;  %v2764_v15 = vld [vmem:[%s12773_s3 + $0x120] sm:$0xff] }
 0x21f   : > { %v1914_v12 = vmax.f32 %v1855_v2, 0.0  ;;  %v1916_v25 = vmax.f32 %v1898_v3, 0.0  ;;  %v8502_v53 = vcombine.low %v2744_v35, %v2748_v39  ;;  %v8504_v54 = vcombine.low %v2745_v44, %v2749_v6  ;;  %v2765_v59 = vld [vmem:[%s12773_s3 + $0x128] sm:$0xff]  ;;  %v2768_v2 = vld [vmem:[%s12773_s3 + $0x140] sm:$0xff] }
 0x220   : > { %v1915_v19 = vmax.f32 %v1857_v7, 0.0  ;;  %v1917_v18 = vmax.f32 %v1900_v9, 0.0  ;;  %v8513_v40 = vcombine.high %v2753_v50, %v2757_v52  ;;  %v8510_v60 = vcombine.low %v2752_v46, %v2756_v48  ;;  %v2772_v3 = vld [vmem:[%s12773_s3 + $0x160] sm:$0xff]  ;;  %v2769_v4 = vld [vmem:[%s12773_s3 + $0x148] sm:$0xff] }
 0x221   : > { %v1922_v23 = vpack.c.bf16 %v1914_v12, %v1906_v10  ;;  %v1924_v24 = vpack.c.bf16 %v1916_v25, %v1908_v11  ;;  %v8512_v62 = vcombine.low %v2753_v50, %v2757_v52  ;;  %v8519_v63 = vcombine.high %v2760_v57, %v2764_v15  ;;  %v2773_v5 = vld [vmem:[%s12773_s3 + $0x168] sm:$0xff]  ;;  %v2776_v12 = vld [vmem:[%s12773_s3 + $0x180] sm:$0xff] }
 0x222   : > { %v1923_v30 = vpack.c.bf16 %v1915_v19, %v1907_v13  ;;  %v1925_v31 = vpack.c.bf16 %v1917_v18, %v1909_v14  ;;  %v8521_v0 = vcombine.high %v2761_v58, %v2765_v59  ;;  %v8518_v7 = vcombine.low %v2760_v57, %v2764_v15  ;;  %v2780_v25 = vld [vmem:[%s12773_s3 + $0x1a0] sm:$0xff]  ;;  %v2777_v13 = vld [vmem:[%s12773_s3 + $0x188] sm:$0xff] }
 0x223   : > { %v8520_v9 = vcombine.low %v2761_v58, %v2765_v59  ;;  %v8527_v10 = vcombine.high %v2768_v2, %v2772_v3  ;;  %v8529_v11 = vcombine.high %v2769_v4, %v2773_v5  ;;  %v2781_v14 = vld [vmem:[%s12773_s3 + $0x1a8] sm:$0xff]  ;;  %v8526_v19 = vcombine.low %v2768_v2, %v2772_v3  ;;  %v2792_v35 = vld [vmem:[%s12773_s3 + $0x200] sm:$0xff] }
 0x224   : > { %2499 = vmatprep.mubr.bf16.mxu0 %v1923_v30  ;;  %2697 = vmatprep.mubr.bf16.mxu1 %v1925_v31  ;;  %v8528_v18 = vcombine.low %v2769_v4, %v2773_v5  ;;  %v8535_v20 = vcombine.high %v2776_v12, %v2780_v25  ;;  %v8534_v30 = vcombine.low %v2776_v12, %v2780_v25  ;;  %v2797_v39 = vld [vmem:[%s12773_s3 + $0x228] sm:$0xff] }
 0x225   : > { %2500 = vmatmul.mubr.bf16.vlgmr.msra.gmra.mrb[20].mxu0 %v1922_v23  ;;  %2698 = vmatmul.mubr.bf16.vlgmr.msra.gmra.mrb[20].mxu1 %v1924_v24  ;;  %v8537_v23 = vcombine.high %v2777_v13, %v2781_v14  ;;  %v2784_v24 = vld [vmem:[%s12773_s3 + $0x1c0] sm:$0xff]  ;;  %v8536_v31 = vcombine.low %v2777_v13, %v2781_v14  ;;  %v8544_v6 = vcombine.low %v2785_v27, %v2789_v28  ;;  %v2801_v46 = vld [vmem:[%s12773_s3 + $0x248] sm:$0xff] }
 0x226   : > { %3539 = vmatpush1.bf16.msra.mxu0 %v8486_v32  ;;  %3582 = vmatpush1.bf16.msra.mxu1 %v8488_v33  ;;  %v8543_v32 = vcombine.high %v2784_v24, %v2788_v26  ;;  %v8545_v33 = vcombine.high %v2785_v27, %v2789_v28  ;;  %v8542_v44 = vcombine.low %v2784_v24, %v2788_v26  ;;  %v2805_v48 = vld [vmem:[%s12773_s3 + $0x268] sm:$0xff] }
 0x227   : > { %3570 = vmatprep.mubr.bf16.mxu0 %v10425_v1  ;;  %3613 = vmatprep.mubr.bf16.mxu1 %v10425_v1  ;;  %v2809_v57 = vld [vmem:[%s12773_s3 + $0x288] sm:$0xff]  ;;  %v8560_v59 = vcombine.low %v2801_v46, %v2805_v48 }
 0x228   : > { %3540 = vmatprep.subr.bf16.mxu0 %v8495_v36  ;;  %3583 = vmatprep.subr.bf16.mxu1 %v8497_v38  ;;  %v2796_v36 = vld [vmem:[%s12773_s3 + $0x220] sm:$0xff]  ;;  %v2793_v38 = vld [vmem:[%s12773_s3 + $0x208] sm:$0xff] }
 0x229   : > { %v8550_v50 = vcombine.low %v2792_v35, %v2796_v36  ;;  %v8552_v52 = vcombine.low %v2793_v38, %v2797_v39  ;;  %v2813_v15 = vld [vmem:[%s12773_s3 + $0x2a8] sm:$0xff] }
 0x22a   : > { %3541 = vmatpush1.bf16.msra.mxu0 %v8494_v41  ;;  %3584 = vmatpush1.bf16.msra.mxu1 %v8496_v42  ;;  %v8551_v41 = vcombine.high %v2792_v35, %v2796_v36  ;;  %v8553_v42 = vcombine.high %v2793_v38, %v2797_v39  ;;  %v2817_v2 = vld [vmem:[%s12773_s3 + $0x2c8] sm:$0xff]  ;;  %v8568_v5 = vcombine.low %v2809_v57, %v2813_v15 }
 0x22b   : > { %3542 = vmatprep.subr.bf16.mxu0 %v8503_v43  ;;  %3585 = vmatprep.subr.bf16.mxu1 %v8505_v45  ;;  %v2800_v43 = vld [vmem:[%s12773_s3 + $0x240] sm:$0xff]  ;;  %v2821_v3 = vld [vmem:[%s12773_s3 + $0x2e8] sm:$0xff] }
 0x22c   : > { %v2804_v45 = vld [vmem:[%s12773_s3 + $0x260] sm:$0xff]  ;;  %v2825_v12 = vld [vmem:[%s12773_s3 + $0x308] sm:$0xff]  ;;  %v8576_v14 = vcombine.low %v2817_v2, %v2821_v3 }
 0x22d   : > { %v8558_v58 = vcombine.low %v2800_v43, %v2804_v45  ;;  %v2829_v25 = vld [vmem:[%s12773_s3 + $0x328] sm:$0xff] }
 0x22e   : > { %3543 = vmatpush1.bf16.msra.mxu0 %v8502_v53  ;;  %3586 = vmatpush1.bf16.msra.mxu1 %v8504_v54  ;;  %v8559_v53 = vcombine.high %v2800_v43, %v2804_v45  ;;  %v8561_v54 = vcombine.high %v2801_v46, %v2805_v48  ;;  %v2833_v24 = vld [vmem:[%s12773_s3 + $0x348] sm:$0xff]  ;;  %v8584_v28 = vcombine.low %v2825_v12, %v2829_v25 }
 0x22f   : > { %3544 = vmatprep.subr.bf16.mxu0 %v8511_v56  ;;  %3587 = vmatprep.subr.bf16.mxu1 %v8513_v40  ;;  %v2808_v56 = vld [vmem:[%s12773_s3 + $0x280] sm:$0xff]  ;;  %v2837_v26 = vld [vmem:[%s12773_s3 + $0x368] sm:$0xff] }
 0x230   : > { %v2812_v40 = vld [vmem:[%s12773_s3 + $0x2a0] sm:$0xff]  ;;  %v2841_v35 = vld [vmem:[%s12773_s3 + $0x388] sm:$0xff]  ;;  %v8592_v39 = vcombine.low %v2833_v24, %v2837_v26 }
 0x231   : > { %v8566_v4 = vcombine.low %v2808_v56, %v2812_v40  ;;  %v2845_v36 = vld [vmem:[%s12773_s3 + $0x3a8] sm:$0xff] }
 0x232   : > { %3545 = vmatpush1.bf16.msra.mxu0 %v8510_v60  ;;  %3588 = vmatpush1.bf16.msra.mxu1 %v8512_v62  ;;  %v8567_v60 = vcombine.high %v2808_v56, %v2812_v40  ;;  %v8569_v62 = vcombine.high %v2809_v57, %v2813_v15  ;;  %v2849_v43 = vld [vmem:[%s12773_s3 + $0x3c8] sm:$0xff]  ;;  %v8600_v48 = vcombine.low %v2841_v35, %v2845_v36  ;;  %v2731_v56 = vld [vmem:[%s12773_s3 + $0x18] sm:$0xff] }
 0x233   : > { %3546 = vmatprep.subr.bf16.mxu0 %v8519_v63  ;;  %3589 = vmatprep.subr.bf16.mxu1 %v8521_v0  ;;  %v2816_v63 = vld [vmem:[%s12773_s3 + $0x2c0] sm:$0xff]  ;;  %v2853_v45 = vld [vmem:[%s12773_s3 + $0x3e8] sm:$0xff]  ;;  %v2735_v40 = vld [vmem:[%s12773_s3 + $0x38] sm:$0xff] }
 0x234   : > { %v2820_v0 = vld [vmem:[%s12773_s3 + $0x2e0] sm:$0xff]  ;;  %v8608_v15 = vcombine.low %v2849_v43, %v2853_v45 }
 0x235   : > { %v8574_v13 = vcombine.low %v2816_v63, %v2820_v0 }
 0x236   : > { %3547 = vmatpush1.bf16.msra.mxu0 %v8518_v7  ;;  %3590 = vmatpush1.bf16.msra.mxu1 %v8520_v9  ;;  %v8575_v7 = vcombine.high %v2816_v63, %v2820_v0  ;;  %v8577_v9 = vcombine.high %v2817_v2, %v2821_v3  ;;  %v2739_v63 = vld [vmem:[%s12773_s3 + $0x58] sm:$0xff]  ;;  %v8492_v3 = vcombine.low %v2731_v56, %v2735_v40 }
 0x237   : > { %3548 = vmatprep.subr.bf16.mxu0 %v8527_v10  ;;  %3591 = vmatprep.subr.bf16.mxu1 %v8529_v11  ;;  %v2824_v10 = vld [vmem:[%s12773_s3 + $0x300] sm:$0xff]  ;;  %v2743_v0 = vld [vmem:[%s12773_s3 + $0x78] sm:$0xff] }
 0x238   : > { %v2828_v11 = vld [vmem:[%s12773_s3 + $0x320] sm:$0xff] }
 0x239   : > { %v8582_v27 = vcombine.low %v2824_v10, %v2828_v11 }
 0x23a   : > { %3549 = vmatpush1.bf16.msra.mxu0 %v8526_v19  ;;  %3592 = vmatpush1.bf16.msra.mxu1 %v8528_v18  ;;  %v8583_v19 = vcombine.high %v2824_v10, %v2828_v11  ;;  %v8585_v18 = vcombine.high %v2825_v12, %v2829_v25  ;;  %v2747_v10 = vld [vmem:[%s12773_s3 + $0x98] sm:$0xff]  ;;  %v8500_v25 = vcombine.low %v2739_v63, %v2743_v0 }
 0x23b   : > { %3550 = vmatprep.subr.bf16.mxu0 %v8535_v20  ;;  %3593 = vmatprep.subr.bf16.mxu1 %v8537_v23  ;;  %v2832_v20 = vld [vmem:[%s12773_s3 + $0x340] sm:$0xff]  ;;  %v2751_v11 = vld [vmem:[%s12773_s3 + $0xb8] sm:$0xff] }
 0x23c   : > { %v2836_v23 = vld [vmem:[%s12773_s3 + $0x360] sm:$0xff] }
 0x23d   : > { %v8590_v38 = vcombine.low %v2832_v20, %v2836_v23 }
 0x23e   : > { %3551 = vmatpush1.bf16.msra.mxu0 %v8534_v30  ;;  %3594 = vmatpush1.bf16.msra.mxu1 %v8536_v31  ;;  %v8591_v30 = vcombine.high %v2832_v20, %v2836_v23  ;;  %v8593_v31 = vcombine.high %v2833_v24, %v2837_v26  ;;  %v2755_v20 = vld [vmem:[%s12773_s3 + $0xd8] sm:$0xff]  ;;  %v8508_v24 = vcombine.low %v2747_v10, %v2751_v11 }
 0x23f   : > { %3552 = vmatprep.subr.bf16.mxu0 %v8543_v32  ;;  %3595 = vmatprep.subr.bf16.mxu1 %v8545_v33  ;;  %v2840_v32 = vld [vmem:[%s12773_s3 + $0x380] sm:$0xff] }
 0x240   : > { %v2844_v33 = vld [vmem:[%s12773_s3 + $0x3a0] sm:$0xff] }
 0x241   : > { %v8598_v46 = vcombine.low %v2840_v32, %v2844_v33 }
 0x242   : > { %3553 = vmatpush1.bf16.msra.mxu0 %v8542_v44  ;;  %3596 = vmatpush1.bf16.msra.mxu1 %v8544_v6  ;;  %v8599_v44 = vcombine.high %v2840_v32, %v2844_v33  ;;  %v8601_v6 = vcombine.high %v2841_v35, %v2845_v36  ;;  %v2767_v32 = vld [vmem:[%s12773_s3 + $0x138] sm:$0xff] }
 0x243   : > { %3554 = vmatprep.subr.bf16.mxu0 %v8551_v41  ;;  %3597 = vmatprep.subr.bf16.mxu1 %v8553_v42  ;;  %v2848_v41 = vld [vmem:[%s12773_s3 + $0x3c0] sm:$0xff] }
 0x244   : > { %v2852_v42 = vld [vmem:[%s12773_s3 + $0x3e0] sm:$0xff] }
 0x245   : > { %v8606_v57 = vcombine.low %v2848_v41, %v2852_v42 }
 0x246   : > { %3555 = vmatpush1.bf16.msra.mxu0 %v8550_v50  ;;  %3598 = vmatpush1.bf16.msra.mxu1 %v8552_v52  ;;  %v8607_v50 = vcombine.high %v2848_v41, %v2852_v42  ;;  %v8609_v52 = vcombine.high %v2849_v43, %v2853_v45  ;;  %v2775_v41 = vld [vmem:[%s12773_s3 + $0x178] sm:$0xff] }
 0x247   : > { %3556 = vmatprep.subr.bf16.mxu0 %v8559_v53  ;;  %3599 = vmatprep.subr.bf16.mxu1 %v8561_v54  ;;  %v2730_v53 = vld [vmem:[%s12773_s3 + $0x10] sm:$0xff] }
 0x248   : > { %v2734_v54 = vld [vmem:[%s12773_s3 + $0x30] sm:$0xff] }
 0x249   : > { %v8490_v2 = vcombine.low %v2730_v53, %v2734_v54 }
 0x24a   : > { %3557 = vmatpush1.bf16.msra.mxu0 %v8558_v58  ;;  %3600 = vmatpush1.bf16.msra.mxu1 %v8560_v59  ;;  %v8491_v58 = vcombine.high %v2730_v53, %v2734_v54  ;;  %v8493_v59 = vcombine.high %v2731_v56, %v2735_v40  ;;  %v2783_v53 = vld [vmem:[%s12773_s3 + $0x1b8] sm:$0xff] }
 0x24b   : > { %3558 = vmatprep.subr.bf16.mxu0 %v8567_v60  ;;  %3601 = vmatprep.subr.bf16.mxu1 %v8569_v62  ;;  %v2738_v60 = vld [vmem:[%s12773_s3 + $0x50] sm:$0xff] }
 0x24c   : > { %v2742_v62 = vld [vmem:[%s12773_s3 + $0x70] sm:$0xff] }
 0x24d   : > { %v8498_v12 = vcombine.low %v2738_v60, %v2742_v62 }
 0x24e   : > { %3559 = vmatpush1.bf16.msra.mxu0 %v8566_v4  ;;  %3602 = vmatpush1.bf16.msra.mxu1 %v8568_v5  ;;  %v8499_v4 = vcombine.high %v2738_v60, %v2742_v62  ;;  %v8501_v5 = vcombine.high %v2739_v63, %v2743_v0  ;;  %v2791_v60 = vld [vmem:[%s12773_s3 + $0x1f8] sm:$0xff] }
 0x24f   : > { %3560 = vmatprep.subr.bf16.mxu0 %v8575_v7  ;;  %3603 = vmatprep.subr.bf16.mxu1 %v8577_v9  ;;  %v2746_v7 = vld [vmem:[%s12773_s3 + $0x90] sm:$0xff] }
 0x250   : > { %v2750_v9 = vld [vmem:[%s12773_s3 + $0xb0] sm:$0xff] }
 0x251   : > { %v8506_v23 = vcombine.low %v2746_v7, %v2750_v9 }
 0x252   : > { %3561 = vmatpush1.bf16.msra.mxu0 %v8574_v13  ;;  %3604 = vmatpush1.bf16.msra.mxu1 %v8576_v14  ;;  %v8507_v13 = vcombine.high %v2746_v7, %v2750_v9  ;;  %v8509_v14 = vcombine.high %v2747_v10, %v2751_v11  ;;  %v2799_v7 = vld [vmem:[%s12773_s3 + $0x238] sm:$0xff] }
 0x253   : > { %3562 = vmatprep.subr.bf16.mxu0 %v8583_v19  ;;  %3605 = vmatprep.subr.bf16.mxu1 %v8585_v18  ;;  %v2754_v19 = vld [vmem:[%s12773_s3 + $0xd0] sm:$0xff] }
 0x254   : > { %v2758_v18 = vld [vmem:[%s12773_s3 + $0xf0] sm:$0xff] }
 0x255   : > { %v8515_v26 = vcombine.high %v2754_v19, %v2758_v18  ;;  %v8514_v33 = vcombine.low %v2754_v19, %v2758_v18  ;;  %v2807_v19 = vld [vmem:[%s12773_s3 + $0x278] sm:$0xff] }
 0x256   : > { %3563 = vmatpush1.bf16.msra.mxu0 %v8582_v27  ;;  %3606 = vmatpush1.bf16.msra.mxu1 %v8584_v28  ;;  %v2762_v28 = vld [vmem:[%s12773_s3 + $0x110] sm:$0xff] }
 0x257   : > { %3564 = vmatprep.subr.bf16.mxu0 %v8591_v30  ;;  %3607 = vmatprep.subr.bf16.mxu1 %v8593_v31  ;;  %v2766_v30 = vld [vmem:[%s12773_s3 + $0x130] sm:$0xff]  ;;  %v2763_v31 = vld [vmem:[%s12773_s3 + $0x118] sm:$0xff] }
 0x258   : > { %v8523_v36 = vcombine.high %v2762_v28, %v2766_v30  ;;  %v8522_v42 = vcombine.low %v2762_v28, %v2766_v30  ;;  %v8524_v43 = vcombine.low %v2763_v31, %v2767_v32  ;;  %v2815_v28 = vld [vmem:[%s12773_s3 + $0x2b8] sm:$0xff] }
 0x25a   : > { %3565 = vmatpush1.bf16.msra.mxu0 %v8590_v38  ;;  %3608 = vmatpush1.bf16.msra.mxu1 %v8592_v39  ;;  %v8525_v38 = vcombine.high %v2763_v31, %v2767_v32  ;;  %v2770_v39 = vld [vmem:[%s12773_s3 + $0x150] sm:$0xff] }
 0x25b   : > { %3566 = vmatprep.subr.bf16.mxu0 %v8599_v44  ;;  %3609 = vmatprep.subr.bf16.mxu1 %v8601_v6  ;;  %v2774_v44 = vld [vmem:[%s12773_s3 + $0x170] sm:$0xff]  ;;  %v2771_v6 = vld [vmem:[%s12773_s3 + $0x158] sm:$0xff] }
 0x25c   : > { %v8531_v45 = vcombine.high %v2770_v39, %v2774_v44  ;;  %v8530_v54 = vcombine.low %v2770_v39, %v2774_v44  ;;  %v8532_v56 = vcombine.low %v2771_v6, %v2775_v41  ;;  %v2823_v39 = vld [vmem:[%s12773_s3 + $0x2f8] sm:$0xff] }
 0x25e   : > { %3567 = vmatpush1.bf16.msra.mxu0 %v8598_v46  ;;  %3610 = vmatpush1.bf16.msra.mxu1 %v8600_v48  ;;  %v8533_v46 = vcombine.high %v2771_v6, %v2775_v41  ;;  %v2778_v48 = vld [vmem:[%s12773_s3 + $0x190] sm:$0xff] }
 0x25f   : > { %3568 = vmatprep.subr.bf16.mxu0 %v8607_v50  ;;  %3611 = vmatprep.subr.bf16.mxu1 %v8609_v52  ;;  %v2782_v50 = vld [vmem:[%s12773_s3 + $0x1b0] sm:$0xff]  ;;  %v2779_v52 = vld [vmem:[%s12773_s3 + $0x198] sm:$0xff] }
 0x260   : > { %v8539_v40 = vcombine.high %v2778_v48, %v2782_v50  ;;  %v8538_v62 = vcombine.low %v2778_v48, %v2782_v50  ;;  %v8540_v63 = vcombine.low %v2779_v52, %v2783_v53  ;;  %v2831_v48 = vld [vmem:[%s12773_s3 + $0x338] sm:$0xff] }
 0x262   : > { %3569 = vmatpush1.bf16.msra.mxu0 %v8606_v57  ;;  %3612 = vmatpush1.bf16.msra.mxu1 %v8608_v15  ;;  %v8541_v57 = vcombine.high %v2779_v52, %v2783_v53  ;;  %v2786_v15 = vld [vmem:[%s12773_s3 + $0x1d0] sm:$0xff] }
 0x263   : > { %3624 = vmatprep.subr.bf16.mxu0 %v8491_v58  ;;  %3667 = vmatprep.subr.bf16.mxu1 %v8493_v59  ;;  %v2790_v58 = vld [vmem:[%s12773_s3 + $0x1f0] sm:$0xff]  ;;  %v2787_v59 = vld [vmem:[%s12773_s3 + $0x1d8] sm:$0xff] }
 0x264   : > { %v8547_v0 = vcombine.high %v2786_v15, %v2790_v58  ;;  %v8546_v9 = vcombine.low %v2786_v15, %v2790_v58  ;;  %v8548_v10 = vcombine.low %v2787_v59, %v2791_v60  ;;  %v2839_v15 = vld [vmem:[%s12773_s3 + $0x378] sm:$0xff] }
 0x265   : > { %3571 = vmatmul.mubr.bf16.vlgmr.msra.gmra.mrb[24].mxu0 %v10420_v61  ;;  %3614 = vmatmul.mubr.bf16.vlgmr.msra.gmra.mrb[24].mxu1 %v10420_v61 }
 0x266   : > { %3625 = vmatpush1.bf16.msra.mxu0 %v8490_v2  ;;  %3656 = vmatprep.mubr.bf16.mxu0 %v10425_v1  ;;  %v8549_v2 = vcombine.high %v2787_v59, %v2791_v60 }
 0x267   : > { %3668 = vmatpush1.bf16.msra.mxu1 %v8492_v3  ;;  %3699 = vmatprep.mubr.bf16.mxu1 %v10425_v1  ;;  %v2759_v1 = vld [vmem:[%s12773_s3 + $0xf8] sm:$0xff]  ;;  %v2794_v3 = vld [vmem:[%s12773_s3 + $0x210] sm:$0xff] }
 0x268   : > { %3626 = vmatprep.subr.bf16.mxu0 %v8499_v4  ;;  %3669 = vmatprep.subr.bf16.mxu1 %v8501_v5  ;;  %v8517_v27 = vcombine.high %v2755_v20, %v2759_v1  ;;  %v8516_v35 = vcombine.low %v2755_v20, %v2759_v1  ;;  %v2798_v4 = vld [vmem:[%s12773_s3 + $0x230] sm:$0xff]  ;;  %v2795_v5 = vld [vmem:[%s12773_s3 + $0x218] sm:$0xff] }
 0x269   : > { %v8555_v11 = vcombine.high %v2794_v3, %v2798_v4  ;;  %v8554_v18 = vcombine.low %v2794_v3, %v2798_v4  ;;  %v8556_v20 = vcombine.low %v2795_v5, %v2799_v7  ;;  %v2847_v3 = vld [vmem:[%s12773_s3 + $0x3b8] sm:$0xff] }
 0x26a   : > { %3627 = vmatpush1.bf16.msra.mxu0 %v8498_v12  ;;  %v8557_v12 = vcombine.high %v2795_v5, %v2799_v7 }
 0x26b   : > { %3670 = vmatpush1.bf16.msra.mxu1 %v8500_v25  ;;  %3628 = vmatprep.subr.bf16.mxu0 %v8507_v13  ;;  %v2802_v25 = vld [vmem:[%s12773_s3 + $0x250] sm:$0xff] }
 0x26c   : > { %3671 = vmatprep.subr.bf16.mxu1 %v8509_v14  ;;  %v2806_v13 = vld [vmem:[%s12773_s3 + $0x270] sm:$0xff]  ;;  %v2803_v14 = vld [vmem:[%s12773_s3 + $0x258] sm:$0xff] }
 0x26d   : > { %v8563_v1 = vcombine.high %v2802_v25, %v2806_v13  ;;  %v8562_v30 = vcombine.low %v2802_v25, %v2806_v13  ;;  %v8564_v31 = vcombine.low %v2803_v14, %v2807_v19  ;;  %v2855_v25 = vld [vmem:[%s12773_s3 + $0x3f8] sm:$0xff] }
 0x26e   : > { %3629 = vmatpush1.bf16.msra.mxu0 %v8506_v23  ;;  %v8565_v23 = vcombine.high %v2803_v14, %v2807_v19 }
 0x26f   : > { %3672 = vmatpush1.bf16.msra.mxu1 %v8508_v24  ;;  %3630 = vmatprep.subr.bf16.mxu0 %v8515_v26  ;;  %v2810_v24 = vld [vmem:[%s12773_s3 + $0x290] sm:$0xff] }
 0x270   : > { %3673 = vmatprep.subr.bf16.mxu1 %v8517_v27  ;;  %v2814_v26 = vld [vmem:[%s12773_s3 + $0x2b0] sm:$0xff]  ;;  %v2811_v27 = vld [vmem:[%s12773_s3 + $0x298] sm:$0xff] }
 0x271   : > { %v8571_v32 = vcombine.high %v2810_v24, %v2814_v26  ;;  %v8570_v44 = vcombine.low %v2810_v24, %v2814_v26  ;;  %v8572_v6 = vcombine.low %v2811_v27, %v2815_v28  ;;  %v9559_v24 = vld [vmem:[%s12775_s5 + $0x40] sm:$0xff]  }
 0x272   : > { %3631 = vmatpush1.bf16.msra.mxu0 %v8514_v33  ;;  %v8573_v33 = vcombine.high %v2811_v27, %v2815_v28  ;;  %v9560_v26 = vld [vmem:[%s12775_s5] sm:$0xff]   ;;  %v9562_v28 = vld [vmem:[%s12775_s5 + $0x48] sm:$0xff]  }
 0x273   : > { %3674 = vmatpush1.bf16.msra.mxu1 %v8516_v35  ;;  %3632 = vmatprep.subr.bf16.mxu0 %v8523_v36  ;;  %v2818_v35 = vld [vmem:[%s12773_s3 + $0x2d0] sm:$0xff]  ;;  %v9561_v27 = vld [vmem:[%s12775_s5] sm:$0xff]  }
 0x274   : > { %3675 = vmatprep.subr.bf16.mxu1 %v8525_v38  ;;  %v2822_v36 = vld [vmem:[%s12773_s3 + $0x2f0] sm:$0xff]  ;;  %v2819_v38 = vld [vmem:[%s12773_s3 + $0x2d8] sm:$0xff] }
 0x275   : > { %v8579_v41 = vcombine.high %v2818_v35, %v2822_v36  ;;  %v8578_v50 = vcombine.low %v2818_v35, %v2822_v36  ;;  %v8580_v52 = vcombine.low %v2819_v38, %v2823_v39  ;;  %v9568_v35 = vld [vmem:[%s12775_s5 + $0x10] sm:$0xff]  }
 0x276   : > { %3633 = vmatpush1.bf16.msra.mxu0 %v8522_v42  ;;  %v8581_v42 = vcombine.high %v2819_v38, %v2823_v39  ;;  %v9569_v36 = vld [vmem:[%s12775_s5 + $0x10] sm:$0xff]   ;;  %v9570_v38 = vld [vmem:[%s12775_s5 + $0x58] sm:$0xff]  }
 0x277   : > { %3676 = vmatpush1.bf16.msra.mxu1 %v8524_v43  ;;  %3634 = vmatprep.subr.bf16.mxu0 %v8531_v45  ;;  %v2826_v43 = vld [vmem:[%s12773_s3 + $0x310] sm:$0xff]  ;;  %v9571_v39 = vld [vmem:[%s12775_s5 + $0x58] sm:$0xff]  }
 0x278   : > { %3677 = vmatprep.subr.bf16.mxu1 %v8533_v46  ;;  %v2830_v45 = vld [vmem:[%s12773_s3 + $0x330] sm:$0xff]  ;;  %v2827_v46 = vld [vmem:[%s12773_s3 + $0x318] sm:$0xff] }
 0x279   : > { %v8587_v53 = vcombine.high %v2826_v43, %v2830_v45  ;;  %v8586_v58 = vcombine.low %v2826_v43, %v2830_v45  ;;  %v8588_v59 = vcombine.low %v2827_v46, %v2831_v48  ;;  %v9576_v43 = vld [vmem:[%s12775_s5 + $0x20] sm:$0xff]  }
 0x27a   : > { %3635 = vmatpush1.bf16.msra.mxu0 %v8530_v54  ;;  %v8589_v54 = vcombine.high %v2827_v46, %v2831_v48  ;;  %v9577_v45 = vld [vmem:[%s12775_s5 + $0x20] sm:$0xff]   ;;  %v9578_v46 = vld [vmem:[%s12775_s5 + $0x68] sm:$0xff]  }
 0x27b   : > { %3678 = vmatpush1.bf16.msra.mxu1 %v8532_v56  ;;  %3636 = vmatprep.subr.bf16.mxu0 %v8539_v40  ;;  %v2834_v56 = vld [vmem:[%s12773_s3 + $0x350] sm:$0xff]  ;;  %v9579_v48 = vld [vmem:[%s12775_s5 + $0x68] sm:$0xff]  }
 0x27c   : > { %3679 = vmatprep.subr.bf16.mxu1 %v8541_v57  ;;  %v2838_v40 = vld [vmem:[%s12773_s3 + $0x370] sm:$0xff]  ;;  %v2835_v57 = vld [vmem:[%s12773_s3 + $0x358] sm:$0xff] }
 0x27d   : > { %v8595_v60 = vcombine.high %v2834_v56, %v2838_v40  ;;  %v8594_v4 = vcombine.low %v2834_v56, %v2838_v40  ;;  %v8596_v5 = vcombine.low %v2835_v57, %v2839_v15  ;;  %v11302_v56 = vld [vmem:[%s12776_s6] ss:$0 sm:$0xff] }
 0x27e   : > { %3637 = vmatpush1.bf16.msra.mxu0 %v8538_v62  ;;  %v8597_v62 = vcombine.high %v2835_v57, %v2839_v15 }
 0x27f   : > { %3680 = vmatpush1.bf16.msra.mxu1 %v8540_v63  ;;  %3638 = vmatprep.subr.bf16.mxu0 %v8547_v0  ;;  %v2842_v63 = vld [vmem:[%s12773_s3 + $0x390] sm:$0xff] }
 0x280   : > { %3681 = vmatprep.subr.bf16.mxu1 %v8549_v2  ;;  %v2846_v0 = vld [vmem:[%s12773_s3 + $0x3b0] sm:$0xff]  ;;  %v2843_v2 = vld [vmem:[%s12773_s3 + $0x398] sm:$0xff] }
 0x281   : > { %v8603_v7 = vcombine.high %v2842_v63, %v2846_v0  ;;  %v8602_v13 = vcombine.low %v2842_v63, %v2846_v0  ;;  %v8604_v14 = vcombine.low %v2843_v2, %v2847_v3  ;;  %v9583_v63 = vld [vmem:[%s12775_s5 + $0x70] sm:$0xff]  }
 0x282   : > { %3639 = vmatpush1.bf16.msra.mxu0 %v8546_v9  ;;  %v8605_v9 = vcombine.high %v2843_v2, %v2847_v3  ;;  %v9584_v3 = vld [vmem:[%s12775_s5 + $0x30] sm:$0xff]  }
 0x283   : > { %3682 = vmatpush1.bf16.msra.mxu1 %v8548_v10  ;;  %3640 = vmatprep.subr.bf16.mxu0 %v8555_v11  ;;  %v2850_v10 = vld [vmem:[%s12773_s3 + $0x3d0] sm:$0xff] }
 0x284   : > { %3683 = vmatprep.subr.bf16.mxu1 %v8557_v12  ;;  %v2854_v11 = vld [vmem:[%s12773_s3 + $0x3f0] sm:$0xff]  ;;  %v2851_v12 = vld [vmem:[%s12773_s3 + $0x3d8] sm:$0xff] }
 0x285   : > { %v8611_v19 = vcombine.high %v2850_v10, %v2854_v11 }
 0x286   : > { %3641 = vmatpush1.bf16.msra.mxu0 %v8554_v18  ;;  %v8613_v18 = vcombine.high %v2851_v12, %v2855_v25 }
 0x287   : > { %3684 = vmatpush1.bf16.msra.mxu1 %v8556_v20  ;;  %3642 = vmatprep.subr.bf16.mxu0 %v8563_v1  ;;  %v8610_v20 = vcombine.low %v2850_v10, %v2854_v11  ;;  %v8612_v1 = vcombine.low %v2851_v12, %v2855_v25 }
 0x288   : > { %3685 = vmatprep.subr.bf16.mxu1 %v8565_v23  ;;  %v9558_v23 = vld [vmem:[%s12775_s5 + $0x40] sm:$0xff]  }
 0x28a   : > { %3643 = vmatpush1.bf16.msra.mxu0 %v8562_v30  ;;  %v9563_v30 = vld [vmem:[%s12775_s5 + $0x48] sm:$0xff]  }
 0x28b   : > { %3686 = vmatpush1.bf16.msra.mxu1 %v8564_v31  ;;  %3644 = vmatprep.subr.bf16.mxu0 %v8571_v32  ;;  %v9564_v31 = vld [vmem:[%s12775_s5 + $0x8] sm:$0xff]  }
 0x28c   : > { %3687 = vmatprep.subr.bf16.mxu1 %v8573_v33  ;;  %v9565_v32 = vld [vmem:[%s12775_s5 + $0x8] sm:$0xff]   ;;  %v9566_v33 = vld [vmem:[%s12775_s5 + $0x50] sm:$0xff]  }
 0x28e   : > { %3645 = vmatpush1.bf16.msra.mxu0 %v8570_v44  ;;  %v9572_v44 = vld [vmem:[%s12775_s5 + $0x18] sm:$0xff]  }
 0x28f   : > { %3688 = vmatpush1.bf16.msra.mxu1 %v8572_v6  ;;  %3646 = vmatprep.subr.bf16.mxu0 %v8579_v41  ;;  %v9573_v6 = vld [vmem:[%s12775_s5 + $0x18] sm:$0xff]   ;;  %v9574_v41 = vld [vmem:[%s12775_s5 + $0x60] sm:$0xff]  }
 0x290   : > { %3689 = vmatprep.subr.bf16.mxu1 %v8581_v42  ;;  %v9575_v42 = vld [vmem:[%s12775_s5 + $0x60] sm:$0xff]  }
 0x292   : > { %3647 = vmatpush1.bf16.msra.mxu0 %v8578_v50  ;;  %v9580_v50 = vld [vmem:[%s12775_s5 + $0x28] sm:$0xff]  }
 0x293   : > { %3690 = vmatpush1.bf16.msra.mxu1 %v8580_v52  ;;  %3648 = vmatprep.subr.bf16.mxu0 %v8587_v53  ;;  %v9581_v52 = vld [vmem:[%s12775_s5 + $0x28] sm:$0xff]  }
 0x294   : > { %3691 = vmatprep.subr.bf16.mxu1 %v8589_v54 }
 0x296   : > { %3649 = vmatpush1.bf16.msra.mxu0 %v8586_v58 }
 0x297   : > { %3692 = vmatpush1.bf16.msra.mxu1 %v8588_v59  ;;  %3650 = vmatprep.subr.bf16.mxu0 %v8595_v60 }
 0x298   : > { %3693 = vmatprep.subr.bf16.mxu1 %v8597_v62  ;;  %v9582_v62 = vld [vmem:[%s12775_s5 + $0x70] sm:$0xff]  }
 0x29a   : > { %3651 = vmatpush1.bf16.msra.mxu0 %v8594_v4  ;;  %v9585_v4 = vld [vmem:[%s12775_s5 + $0x30] sm:$0xff]  }
 0x29b   : > { %3694 = vmatpush1.bf16.msra.mxu1 %v8596_v5  ;;  %3652 = vmatprep.subr.bf16.mxu0 %v8603_v7 }
 0x29c   : > { %3695 = vmatprep.subr.bf16.mxu1 %v8605_v9 }
 0x29e   : > { %3653 = vmatpush1.bf16.msra.mxu0 %v8602_v13 }
 0x29f   : > { %3696 = vmatpush1.bf16.msra.mxu1 %v8604_v14  ;;  %3654 = vmatprep.subr.bf16.mxu0 %v8611_v19  ;;  %v9586_v14 = vld [vmem:[%s12775_s5 + $0x78] sm:$0xff]  }
 0x2a0   : > { %3697 = vmatprep.subr.bf16.mxu1 %v8613_v18  ;;  %v9587_v19 = vld [vmem:[%s12775_s5 + $0x78] sm:$0xff]  }
 0x2a1   : > { %v9588_v18 = vld [vmem:[%s12775_s5 + $0x38] sm:$0xff]  }
 0x2a2   : > { %3655 = vmatpush1.bf16.msra.mxu0 %v8610_v20  ;;  %v9589_v20 = vld [vmem:[%s12775_s5 + $0x38] sm:$0xff]  }
 0x2a3   : > { %3698 = vmatpush1.bf16.msra.mxu1 %v8612_v1  ;;  %9221 = vmatprep.subr.bf16.mxu0 %v9558_v23 }
 0x2a4   : > { %9243 = vmatprep.subr.bf16.mxu1 %v9559_v24 }
 0x2a5   : > { %3657 = vmatmul.mubr.bf16.vlgmr.msra.gmra.mrb[28].mxu0 %v10420_v61 }
 0x2a6   : > { %3700 = vmatmul.mubr.bf16.vlgmr.msra.gmra.mrb[28].mxu1 %v10420_v61  ;;  %9222 = vmatpush3.bf16.msra.mxu0 %v9560_v26  ;;  %v9567_v61 = vld [vmem:[%s12775_s5 + $0x50] sm:$0xff]  }
 0x2a7   : > { %9244 = vmatpush3.bf16.msra.mxu1 %v9561_v27  ;;  %9223 = vmatprep.subr.bf16.mxu0 %v9562_v28 }
 0x2a8   : > { %9245 = vmatprep.subr.bf16.mxu1 %v9563_v30  ;;  %v9590_v30 = vld [vmem:[%s12775_s5 + $0x40] sm:$0xff]  }
 0x2aa   : > { %9224 = vmatpush3.bf16.msra.mxu0 %v9564_v31  ;;  %v9591_v31 = vld [vmem:[%s12775_s5 + $0x40] sm:$0xff]  }
 0x2ab   : > { %9246 = vmatpush3.bf16.msra.mxu1 %v9565_v32  ;;  %9225 = vmatprep.subr.bf16.mxu0 %v9566_v33 }
 0x2ac   : > { %9247 = vmatprep.subr.bf16.mxu1 %v9567_v61 }
 0x2ae   : > { %9226 = vmatpush3.bf16.msra.mxu0 %v9568_v35 }
 0x2af   : > { %9248 = vmatpush3.bf16.msra.mxu1 %v9569_v36  ;;  %9227 = vmatprep.subr.bf16.mxu0 %v9570_v38 }
 0x2b0   : > { %9249 = vmatprep.subr.bf16.mxu1 %v9571_v39 }
 0x2b2   : > { %9228 = vmatpush3.bf16.msra.mxu0 %v9572_v44 }
 0x2b3   : > { %9250 = vmatpush3.bf16.msra.mxu1 %v9573_v6  ;;  %9229 = vmatprep.subr.bf16.mxu0 %v9574_v41 }
 0x2b4   : > { %9251 = vmatprep.subr.bf16.mxu1 %v9575_v42 }
 0x2b6   : > { %9230 = vmatpush3.bf16.msra.mxu0 %v9576_v43 }
 0x2b7   : > { %9252 = vmatpush3.bf16.msra.mxu1 %v9577_v45  ;;  %9231 = vmatprep.subr.bf16.mxu0 %v9578_v46 }
 0x2b8   : > { %v9149_v53 = vpop.f32.mrb[16].mxu0  ;;  %v9171_v54 = vpop.f32.mrb[16].mxu1  ;;  %9253 = vmatprep.subr.bf16.mxu1 %v9579_v48 }
 0x2b9   : > { %v9150_v40 = vpop.f32.mrb[17].mxu0  ;;  %v9172_v57 = vpop.f32.mrb[17].mxu1 }
 0x2ba   : > { %v9151_v15 = vadd.f32 %v9150_v40, %v9149_v53  ;;  %v9173_v58 = vadd.f32 %v9172_v57, %v9171_v54  ;;  %v9152_v59 = vpop.f32.mrb[18].mxu0  ;;  %v9174_v60 = vpop.f32.mrb[18].mxu1  ;;  %9232 = vmatpush3.bf16.msra.mxu0 %v9580_v50 }
 0x2bb   : > { %v9153_v0 = vpop.f32.mrb[19].mxu0  ;;  %v9175_v2 = vpop.f32.mrb[19].mxu1  ;;  %9254 = vmatpush3.bf16.msra.mxu1 %v9581_v52  ;;  %9233 = vmatprep.subr.bf16.mxu0 %v9582_v62 }
 0x2bc   : > { %v2106_v5 = vadd.f32 %v9151_v15, %v11302_v56  ;;  %v2304_v7 = vadd.f32 %v9173_v58, %v11302_v56  ;;  %v9154_v9 = vadd.f32 %v9153_v0, %v9152_v59  ;;  %v9176_v10 = vadd.f32 %v9175_v2, %v9174_v60  ;;  %9255 = vmatprep.subr.bf16.mxu1 %v9583_v63 }
 0x2be   : > { %v2112_v11 = vsub.f32 0.0, %v2106_v5  ;;  %v2310_v12 = vsub.f32 0.0, %v2304_v7  ;;  %v2109_v25 = vadd.f32 %v9154_v9, %v11302_v56  ;;  %v2307_v13 = vadd.f32 %v9176_v10, %v11302_v56  ;;  %9234 = vmatpush3.bf16.msra.mxu0 %v9584_v3 }
 0x2bf   : > { %9256 = vmatpush3.bf16.msra.mxu1 %v9585_v4  ;;  %9235 = vmatprep.subr.bf16.mxu0 %v9586_v14 }
 0x2c0   : > { %v2114_v1 = vmul.f32 1.442695, %v2112_v11  ;;  %v2312_v23 = vmul.f32 1.442695, %v2310_v12  ;;  %v2113_v24 = vsub.f32 0.0, %v2109_v25  ;;  %v2311_v26 = vsub.f32 0.0, %v2307_v13  ;;  %9257 = vmatprep.subr.bf16.mxu1 %v9587_v19 }
 0x2c2   : > { %9750 = vpow2.f32 %v2114_v1  ;;  %v2116_v27 = vmul.f32 1.442695, %v2113_v24  ;;  %v2314_v28 = vmul.f32 1.442695, %v2311_v26  ;;  %9236 = vmatpush3.bf16.msra.mxu0 %v9588_v18 }
 0x2c3   : > { %9752 = vpow2.f32 %v2312_v23  ;;  %9258 = vmatpush3.bf16.msra.mxu1 %v9589_v20  ;;  %9265 = vmatprep.subr.bf16.mxu0 %v9590_v30 }
 0x2c4   : > { %9754 = vpow2.f32 %v2116_v27  ;;  %9287 = vmatprep.subr.bf16.mxu1 %v9591_v31 }
 0x2c5   : > { %9756 = vpow2.f32 %v2314_v28 }
 0x2cc   : > { %v9751_v32 = vpop.eup %9750 }
 0x2cd   : > { %v9753_v33 = vpop.eup %9752  ;;  %v2118_v61 = vadd.f32 1.0, %v9751_v32 }
 0x2ce   : > { %v9755_v35 = vpop.eup %9754  ;;  %v2316_v36 = vadd.f32 1.0, %v9753_v33 }
 0x2cf   : > { %v9757_v38 = vpop.eup %9756  ;;  %9758 = vrcp.f32 %v2118_v61  ;;  %v2119_v39 = vadd.f32 1.0, %v9755_v35 }
 0x2d0   : > { %9760 = vrcp.f32 %v2316_v36  ;;  %v2317_v44 = vadd.f32 1.0, %v9757_v38  ;;  %v11359_v36 = vld [vmem:[%s12774_s4] sm:$0xff] }
 0x2d1   : > { %9762 = vrcp.f32 %v2119_v39  ;;  %v2861_v38 = vrot.slane %v11359_v36, %v10368_v16  ;;  %v2869_v39 = vrot.slane %v11359_v36, %v10383_v21 }
 0x2d2   : > { %9764 = vrcp.f32 %v2317_v44  ;;  %v2865_v44 = vrot.slane %v11359_v36, %v10371_v17 }
 0x2d9   : > { %v9759_v6 = vpop.eup %9758 }
 0x2da   : > { %v9761_v41 = vpop.eup %9760  ;;  %v9101_v42 = vpack.c.bf16 %v9759_v6, %v9759_v6  ;;  %v2873_v6 = vrot.slane %v11359_v36, %v10386_v22 }
 0x2db   : > { %v9763_v43 = vpop.eup %9762  ;;  %v9103_v45 = vpack.c.bf16 %v9761_v41, %v9761_v41 }
 0x2dc   : > { %v9765_v46 = vpop.eup %9764  ;;  %2130 = vst [vmem:[%s11342_s12] sm:$0xf] %v9101_v42  ;;  %v9102_v48 = vpack.c.bf16 %v9763_v43, %v9763_v43 }
 0x2dd   : > { %2328 = vst [vmem:[%s11342_s12 + $0x4] sm:$0xf] %v9103_v45  ;;  %v9104_v50 = vpack.c.bf16 %v9765_v46, %v9765_v46 }
 0x2de   : > { %2131 = vst [vmem:[%s11342_s12 + $0x40] sm:$0xf] %v9102_v48 }
 0x2df   : > { %2329 = vst [vmem:[%s11342_s12 + $0x44] sm:$0xf] %v9104_v50 }
 0x2f8   : > { %v9193_v52 = vpop.f32.mrb[20].mxu0  ;;  %v9215_v53 = vpop.f32.mrb[20].mxu1 }
 0x2f9   : > { %v9194_v54 = vpop.f32.mrb[21].mxu0  ;;  %v9216_v40 = vpop.f32.mrb[21].mxu1 }
 0x2fa   : > { %v9195_v57 = vadd.f32 %v9194_v54, %v9193_v52  ;;  %v9217_v15 = vadd.f32 %v9216_v40, %v9215_v53  ;;  %v9196_v58 = vpop.f32.mrb[22].mxu0  ;;  %v9218_v59 = vpop.f32.mrb[22].mxu1 }
 0x2fb   : > { %v9197_v60 = vpop.f32.mrb[23].mxu0  ;;  %v9219_v62 = vpop.f32.mrb[23].mxu1 }
 0x2fc   : > { %v2502_v63 = vadd.f32 %v9195_v57, %v11302_v56  ;;  %v2700_v0 = vadd.f32 %v9217_v15, %v11302_v56  ;;  %v9198_v2 = vadd.f32 %v9197_v60, %v9196_v58  ;;  %v9220_v3 = vadd.f32 %v9219_v62, %v9218_v59 }
 0x2fe   : > { %v2508_v4 = vsub.f32 0.0, %v2502_v63  ;;  %v2706_v5 = vsub.f32 0.0, %v2700_v0  ;;  %v2505_v7 = vadd.f32 %v9198_v2, %v11302_v56  ;;  %v2703_v9 = vadd.f32 %v9220_v3, %v11302_v56 }
 0x300   : > { %v2510_v10 = vmul.f32 1.442695, %v2508_v4  ;;  %v2708_v11 = vmul.f32 1.442695, %v2706_v5  ;;  %v2509_v12 = vsub.f32 0.0, %v2505_v7  ;;  %v2707_v25 = vsub.f32 0.0, %v2703_v9 }
 0x302   : > { %9766 = vpow2.f32 %v2510_v10  ;;  %v2512_v13 = vmul.f32 1.442695, %v2509_v12  ;;  %v2710_v14 = vmul.f32 1.442695, %v2707_v25  ;;  %v9592_v25 = vld [vmem:[%s12775_s5] sm:$0xff]  }
 0x303   : > { %9768 = vpow2.f32 %v2708_v11 }
 0x304   : > { %9770 = vpow2.f32 %v2512_v13  ;;  %v9593_v13 = vld [vmem:[%s12775_s5] sm:$0xff]  }
 0x305   : > { %9772 = vpow2.f32 %v2710_v14  ;;  %v9594_v14 = vld [vmem:[%s12775_s5 + $0x48] sm:$0xff]  }
 0x30c   : > { %v9767_v19 = vpop.eup %9766 }
 0x30d   : > { %v9769_v18 = vpop.eup %9768  ;;  %v2514_v20 = vadd.f32 1.0, %v9767_v19  ;;  %v9595_v19 = vld [vmem:[%s12775_s5 + $0x48] sm:$0xff]  }
 0x30e   : > { %v9771_v1 = vpop.eup %9770  ;;  %v2712_v23 = vadd.f32 1.0, %v9769_v18  ;;  %v9596_v18 = vld [vmem:[%s12775_s5 + $0x8] sm:$0xff]  }
 0x30f   : > { %v9773_v24 = vpop.eup %9772  ;;  %9774 = vrcp.f32 %v2514_v20  ;;  %v2515_v56 = vadd.f32 1.0, %v9771_v1  ;;  %v9597_v20 = vld [vmem:[%s12775_s5 + $0x8] sm:$0xff]   ;;  %v9598_v1 = vld [vmem:[%s12775_s5 + $0x50] sm:$0xff]  }
 0x310   : > { %9776 = vrcp.f32 %v2712_v23  ;;  %v2713_v26 = vadd.f32 1.0, %v9773_v24  ;;  %v9599_v23 = vld [vmem:[%s12775_s5 + $0x50] sm:$0xff]  }
 0x311   : > { %9778 = vrcp.f32 %v2515_v56  ;;  %v9600_v24 = vld [vmem:[%s12775_s5 + $0x10] sm:$0xff]  }
 0x312   : > { %9780 = vrcp.f32 %v2713_v26  ;;  %v9601_v56 = vld [vmem:[%s12775_s5 + $0x10] sm:$0xff]   ;;  %v9602_v26 = vld [vmem:[%s12775_s5 + $0x58] sm:$0xff]  }
 0x319   : > { %v9775_v27 = vpop.eup %9774 }
 0x31a   : > { %v9777_v28 = vpop.eup %9776  ;;  %v9105_v30 = vpack.c.bf16 %v9775_v27, %v9775_v27  ;;  %v9603_v27 = vld [vmem:[%s12775_s5 + $0x58] sm:$0xff]  }
 0x31b   : > { %v9779_v31 = vpop.eup %9778  ;;  %v9107_v32 = vpack.c.bf16 %v9777_v28, %v9777_v28  ;;  %v9604_v28 = vld [vmem:[%s12775_s5 + $0x18] sm:$0xff]  }
 0x31c   : > { %v9781_v33 = vpop.eup %9780  ;;  %2526 = vst [vmem:[%s11342_s12 + $0x8] sm:$0xf] %v9105_v30  ;;  %v9106_v61 = vpack.c.bf16 %v9779_v31, %v9779_v31  ;;  %v9605_v30 = vld [vmem:[%s12775_s5 + $0x18] sm:$0xff]   ;;  %v9606_v31 = vld [vmem:[%s12775_s5 + $0x60] sm:$0xff]  }
 0x31d   : > { %2724 = vst [vmem:[%s11342_s12 + $0xc] sm:$0xf] %v9107_v32  ;;  %v9108_v35 = vpack.c.bf16 %v9781_v33, %v9781_v33  ;;  %v9607_v32 = vld [vmem:[%s12775_s5 + $0x60] sm:$0xff]  }
 0x31e   : > { %2527 = vst [vmem:[%s11342_s12 + $0x48] sm:$0xf] %v9106_v61  ;;  %v9608_v33 = vld [vmem:[%s12775_s5 + $0x20] sm:$0xff]  }
 0x31f   : > { %2725 = vst [vmem:[%s11342_s12 + $0x4c] sm:$0xf] %v9108_v35  ;;  %v9609_v61 = vld [vmem:[%s12775_s5 + $0x20] sm:$0xff]   ;;  %v9610_v35 = vld [vmem:[%s12775_s5 + $0x68] sm:$0xff]  }
 0x338   : > { %v3572_v41 = vpop.f32.mrb[24].mxu0  ;;  %v3615_v42 = vpop.f32.mrb[24].mxu1 }
 0x339   : > { %v3573_v43 = vadd.f32 %v3572_v41, %v2861_v38  ;;  %v3616_v45 = vadd.f32 %v3615_v42, %v2869_v39  ;;  %v3574_v46 = vpop.f32.mrb[25].mxu0  ;;  %v3617_v48 = vpop.f32.mrb[25].mxu1  ;;  %v9615_v41 = vld [vmem:[%s12775_s5 + $0x70] sm:$0xff]  }
 0x33a   : > { %v3575_v50 = vadd.f32 %v3574_v46, %v2865_v44  ;;  %v3618_v52 = vadd.f32 %v3617_v48, %v2873_v6  ;;  %v3576_v53 = vpop.f32.mrb[26].mxu0  ;;  %v3619_v54 = vpop.f32.mrb[26].mxu1  ;;  %v9616_v42 = vld [vmem:[%s12775_s5 + $0x30] sm:$0xff]   ;;  %v9619_v46 = vld [vmem:[%s12775_s5 + $0x78] sm:$0xff]   ;;  %v11456_v48 = vld [vmem:[%s12773_s3] sm:$0xff] }
 0x33b   : > { %v3577_v40 = vadd.f32 %v3576_v53, %v2861_v38  ;;  %v3620_v57 = vadd.f32 %v3619_v54, %v2869_v39  ;;  %v3578_v15 = vpop.f32.mrb[27].mxu0  ;;  %v3621_v58 = vpop.f32.mrb[27].mxu1  ;;  %v3710_v62 = vmax.f32 %v3573_v43, 0.0  ;;  %v3712_v63 = vmax.f32 %v3616_v45, 0.0  ;;  %v9611_v38 = vld [vmem:[%s12775_s5 + $0x68] sm:$0xff]   ;;  %v9617_v43 = vld [vmem:[%s12775_s5 + $0x30] sm:$0xff]  }
 0x33c   : > { %v3579_v59 = vadd.f32 %v3578_v15, %v2865_v44  ;;  %v3622_v60 = vadd.f32 %v3621_v58, %v2873_v6  ;;  %v3711_v3 = vmax.f32 %v3575_v50, 0.0  ;;  %v3713_v4 = vmax.f32 %v3618_v52, 0.0  ;;  %v9612_v39 = vld [vmem:[%s12775_s5 + $0x28] sm:$0xff]   ;;  %v9614_v6 = vld [vmem:[%s12775_s5 + $0x70] sm:$0xff]   ;;  %v9618_v45 = vld [vmem:[%s12775_s5 + $0x78] sm:$0xff]  }
 0x33d   : > { %v3718_v0 = vmax.f32 %v3577_v40, 0.0  ;;  %v3720_v2 = vmax.f32 %v3620_v57, 0.0  ;;  %v9613_v44 = vld [vmem:[%s12775_s5 + $0x28] sm:$0xff]   ;;  %v11461_v50 = vld [vmem:[%s12773_s3 + $0x20] sm:$0xff]  ;;  %v9620_v54 = vld [vmem:[%s12775_s5 + $0x38] sm:$0xff]   ;;  %v2877_v58 = vrot.slane %v11359_v36, %v10464_v8 }
 0x33e   : > { %v3719_v5 = vmax.f32 %v3579_v59, 0.0  ;;  %v3721_v7 = vmax.f32 %v3622_v60, 0.0  ;;  %v11466_v52 = vld [vmem:[%s12773_s3 + $0x8] sm:$0xff]  ;;  %v9621_v40 = vld [vmem:[%s12775_s5 + $0x38] sm:$0xff]   ;;  %v8691_v57 = vcombine.high %v11456_v48, %v11461_v50  ;;  %v2885_v59 = vrot.slane %v11359_v36, %v10493_v47 }
 0x33f   : > { %v3726_v9 = vpack.c.bf16 %v3718_v0, %v3710_v62  ;;  %v3728_v10 = vpack.c.bf16 %v3720_v2, %v3712_v63  ;;  %v11471_v53 = vld [vmem:[%s12773_s3 + $0x28] sm:$0xff]  ;;  %v2881_v60 = vrot.slane %v11359_v36, %v10476_v37  ;;  %v2889_v62 = vrot.slane %v11359_v36, %v10498_v49 }
 0x340   : > { %v3727_v11 = vpack.c.bf16 %v3719_v5, %v3711_v3  ;;  %v3729_v12 = vpack.c.bf16 %v3721_v7, %v3713_v4  ;;  %v8693_v15 = vcombine.high %v11466_v52, %v11471_v53 }
 0x342   : > { %3911 = vmatprep.mubr.bf16.mxu0 %v3727_v11  ;;  %4109 = vmatprep.mubr.bf16.mxu1 %v3729_v12 }
 0x343   : > { %3912 = vmatmul.mubr.bf16.vlgmr.msra.gmra.mrb[32].mxu0 %v3726_v9  ;;  %4110 = vmatmul.mubr.bf16.vlgmr.msra.gmra.mrb[32].mxu1 %v3728_v10 }
 0x344   : > { %9266 = vmatpush3.bf16.msra.mxu0 %v9592_v25  ;;  %9288 = vmatpush3.bf16.msra.mxu1 %v9593_v13 }
 0x345   : > { %9267 = vmatprep.subr.bf16.mxu0 %v9594_v14  ;;  %9289 = vmatprep.subr.bf16.mxu1 %v9595_v19 }
 0x348   : > { %9268 = vmatpush3.bf16.msra.mxu0 %v9596_v18  ;;  %9290 = vmatpush3.bf16.msra.mxu1 %v9597_v20 }
 0x349   : > { %9269 = vmatprep.subr.bf16.mxu0 %v9598_v1  ;;  %9291 = vmatprep.subr.bf16.mxu1 %v9599_v23 }
 0x34c   : > { %9270 = vmatpush3.bf16.msra.mxu0 %v9600_v24  ;;  %9292 = vmatpush3.bf16.msra.mxu1 %v9601_v56 }
 0x34d   : > { %9271 = vmatprep.subr.bf16.mxu0 %v9602_v26  ;;  %9293 = vmatprep.subr.bf16.mxu1 %v9603_v27 }
 0x350   : > { %9272 = vmatpush3.bf16.msra.mxu0 %v9604_v28  ;;  %9294 = vmatpush3.bf16.msra.mxu1 %v9605_v30  ;;  %v4544_v30 = vld [vmem:[%s12773_s3 + $0x40] sm:$0xff] }
 0x351   : > { %9273 = vmatprep.subr.bf16.mxu0 %v9606_v31  ;;  %9295 = vmatprep.subr.bf16.mxu1 %v9607_v32  ;;  %v4548_v31 = vld [vmem:[%s12773_s3 + $0x60] sm:$0xff] }
 0x354   : > { %9274 = vmatpush3.bf16.msra.mxu0 %v9608_v33  ;;  %9296 = vmatpush3.bf16.msra.mxu1 %v9609_v61  ;;  %v8690_v61 = vcombine.low %v11456_v48, %v11461_v50  ;;  %v8698_v48 = vcombine.low %v4544_v30, %v4548_v31 }
 0x355   : > { %9275 = vmatprep.subr.bf16.mxu0 %v9610_v35  ;;  %9297 = vmatprep.subr.bf16.mxu1 %v9611_v38  ;;  %v4545_v35 = vld [vmem:[%s12773_s3 + $0x48] sm:$0xff] }
 0x356   : > { %v4549_v38 = vld [vmem:[%s12773_s3 + $0x68] sm:$0xff] }
 0x357   : > { %v8700_v50 = vcombine.low %v4545_v35, %v4549_v38 }
 0x358   : > { %9276 = vmatpush3.bf16.msra.mxu0 %v9612_v39  ;;  %9298 = vmatpush3.bf16.msra.mxu1 %v9613_v44  ;;  %v8692_v44 = vcombine.low %v11466_v52, %v11471_v53 }
 0x359   : > { %9277 = vmatprep.subr.bf16.mxu0 %v9614_v6  ;;  %9299 = vmatprep.subr.bf16.mxu1 %v9615_v41  ;;  %v8699_v6 = vcombine.high %v4544_v30, %v4548_v31  ;;  %v4552_v41 = vld [vmem:[%s12773_s3 + $0x80] sm:$0xff]  ;;  %v4593_v31 = vld [vmem:[%s12773_s3 + $0x1c8] sm:$0xff] }
 0x35a   : > { %v4596_v30 = vld [vmem:[%s12773_s3 + $0x1e0] sm:$0xff] }
 0x35c   : > { %9278 = vmatpush3.bf16.msra.mxu0 %v9616_v42  ;;  %9300 = vmatpush3.bf16.msra.mxu1 %v9617_v43  ;;  %v4556_v42 = vld [vmem:[%s12773_s3 + $0xa0] sm:$0xff]  ;;  %v8701_v43 = vcombine.high %v4545_v35, %v4549_v38 }
 0x35d   : > { %9279 = vmatprep.subr.bf16.mxu0 %v9618_v45  ;;  %9301 = vmatprep.subr.bf16.mxu1 %v9619_v46  ;;  %v4553_v45 = vld [vmem:[%s12773_s3 + $0x88] sm:$0xff]  ;;  %v8707_v52 = vcombine.high %v4552_v41, %v4556_v42 }
 0x35e   : > { %v4557_v46 = vld [vmem:[%s12773_s3 + $0xa8] sm:$0xff] }
 0x35f   : > { %v8709_v53 = vcombine.high %v4553_v45, %v4557_v46 }
 0x360   : > { %9280 = vmatpush3.bf16.msra.mxu0 %v9620_v54  ;;  %9302 = vmatpush3.bf16.msra.mxu1 %v9621_v40  ;;  %v4560_v54 = vld [vmem:[%s12773_s3 + $0xc0] sm:$0xff] }
 0x361   : > { %5346 = vmatprep.subr.bf16.mxu0 %v8691_v57  ;;  %5389 = vmatprep.subr.bf16.mxu1 %v8693_v15  ;;  %v4564_v40 = vld [vmem:[%s12773_s3 + $0xe0] sm:$0xff]  ;;  %v4561_v57 = vld [vmem:[%s12773_s3 + $0xc8] sm:$0xff] }
 0x362   : > { %v4565_v15 = vld [vmem:[%s12773_s3 + $0xe8] sm:$0xff] }
 0x378   : > { %v3658_v63 = vpop.f32.mrb[28].mxu0 }
 0x379   : > { %v3659_v0 = vadd.f32 %v3658_v63, %v2877_v58  ;;  %v3701_v2 = vpop.f32.mrb[28].mxu1  ;;  %v3660_v3 = vpop.f32.mrb[29].mxu0  ;;  %v4568_v63 = vld [vmem:[%s12773_s3 + $0x100] sm:$0xff] }
 0x37a   : > { %v3702_v4 = vadd.f32 %v3701_v2, %v2885_v59  ;;  %v3661_v5 = vadd.f32 %v3660_v3, %v2881_v60  ;;  %v3703_v7 = vpop.f32.mrb[29].mxu1  ;;  %v3662_v9 = vpop.f32.mrb[30].mxu0  ;;  %v4569_v2 = vld [vmem:[%s12773_s3 + $0x108] sm:$0xff] }
 0x37b   : > { %v3704_v10 = vadd.f32 %v3703_v7, %v2889_v62  ;;  %v3663_v11 = vadd.f32 %v3662_v9, %v2877_v58  ;;  %v3705_v12 = vpop.f32.mrb[30].mxu1  ;;  %v3664_v25 = vpop.f32.mrb[31].mxu0  ;;  %v3714_v18 = vmax.f32 %v3659_v0, 0.0  ;;  %v8706_v58 = vcombine.low %v4552_v41, %v4556_v42  ;;  %v4572_v0 = vld [vmem:[%s12773_s3 + $0x120] sm:$0xff]  ;;  %v4573_v3 = vld [vmem:[%s12773_s3 + $0x128] sm:$0xff] }
 0x37c   : > { %v3706_v13 = vadd.f32 %v3705_v12, %v2885_v59  ;;  %v3665_v14 = vadd.f32 %v3664_v25, %v2881_v60  ;;  %v3707_v19 = vpop.f32.mrb[31].mxu1  ;;  %v3716_v23 = vmax.f32 %v3702_v4, 0.0  ;;  %v3715_v36 = vmax.f32 %v3661_v5, 0.0  ;;  %v4577_v12 = vld [vmem:[%s12773_s3 + $0x148] sm:$0xff] }
 0x37d   : > { %v3722_v20 = vmax.f32 %v3663_v11, 0.0  ;;  %v3708_v1 = vadd.f32 %v3707_v19, %v2889_v62  ;;  %v3717_v26 = vmax.f32 %v3704_v10, 0.0  ;;  %v8708_v59 = vcombine.low %v4553_v45, %v4557_v46  ;;  %v4576_v10 = vld [vmem:[%s12773_s3 + $0x140] sm:$0xff]  ;;  %v4581_v25 = vld [vmem:[%s12773_s3 + $0x168] sm:$0xff] }
 0x37e   : > { %v3724_v24 = vmax.f32 %v3706_v13, 0.0  ;;  %v3723_v56 = vmax.f32 %v3665_v14, 0.0  ;;  %v8715_v60 = vcombine.high %v4560_v54, %v4564_v40  ;;  %v8717_v62 = vcombine.high %v4561_v57, %v4565_v15  ;;  %v4580_v11 = vld [vmem:[%s12773_s3 + $0x160] sm:$0xff]  ;;  %v4605_v41 = vld [vmem:[%s12773_s3 + $0x228] sm:$0xff] }
 0x37f   : > { %v3730_v27 = vpack.c.bf16 %v3722_v20, %v3714_v18  ;;  %v3725_v28 = vmax.f32 %v3708_v1, 0.0  ;;  %v8714_v4 = vcombine.low %v4560_v54, %v4564_v40  ;;  %v8716_v5 = vcombine.low %v4561_v57, %v4565_v15  ;;  %v4584_v20 = vld [vmem:[%s12773_s3 + $0x180] sm:$0xff] }
 0x380   : > { %v3732_v32 = vpack.c.bf16 %v3724_v24, %v3716_v23  ;;  %v3731_v33 = vpack.c.bf16 %v3723_v56, %v3715_v36  ;;  %v8723_v7 = vcombine.high %v4568_v63, %v4572_v0  ;;  %v8725_v9 = vcombine.high %v4569_v2, %v4573_v3  ;;  %v4588_v1 = vld [vmem:[%s12773_s3 + $0x1a0] sm:$0xff]  ;;  %v4585_v23 = vld [vmem:[%s12773_s3 + $0x188] sm:$0xff] }
 0x381   : > { %v3733_v39 = vpack.c.bf16 %v3725_v28, %v3717_v26  ;;  %v8722_v13 = vcombine.low %v4568_v63, %v4572_v0  ;;  %v8724_v14 = vcombine.low %v4569_v2, %v4573_v3  ;;  %v8731_v19 = vcombine.high %v4576_v10, %v4580_v11  ;;  %v4589_v36 = vld [vmem:[%s12773_s3 + $0x1a8] sm:$0xff]  ;;  %v4592_v28 = vld [vmem:[%s12773_s3 + $0x1c0] sm:$0xff] }
 0x382   : > { %4307 = vmatprep.mubr.bf16.mxu0 %v3731_v33  ;;  %v8733_v18 = vcombine.high %v4577_v12, %v4581_v25  ;;  %v8730_v24 = vcombine.low %v4576_v10, %v4580_v11  ;;  %v8732_v56 = vcombine.low %v4577_v12, %v4581_v25  ;;  %v8739_v26 = vcombine.high %v4584_v20, %v4588_v1 }
 0x383   : > { %4505 = vmatprep.mubr.bf16.mxu1 %v3733_v39  ;;  %4308 = vmatmul.mubr.bf16.vlgmr.msra.gmra.mrb[36].mxu0 %v3730_v27  ;;  %v8741_v27 = vcombine.high %v4585_v23, %v4589_v36  ;;  %v8738_v33 = vcombine.low %v4584_v20, %v4588_v1  ;;  %v8747_v35 = vcombine.high %v4592_v28, %v4596_v30  ;;  %v4600_v39 = vld [vmem:[%s12773_s3 + $0x200] sm:$0xff] }
 0x384   : > { %4506 = vmatmul.mubr.bf16.vlgmr.msra.gmra.mrb[36].mxu1 %v3732_v32  ;;  %5347 = vmatpush1.bf16.msra.mxu0 %v8690_v61  ;;  %v4597_v32 = vld [vmem:[%s12773_s3 + $0x1e8] sm:$0xff]  ;;  %v8740_v61 = vcombine.low %v4585_v23, %v4589_v36  ;;  %v8746_v42 = vcombine.low %v4592_v28, %v4596_v30 }
 0x385   : > { %5390 = vmatpush1.bf16.msra.mxu1 %v8692_v44  ;;  %5378 = vmatprep.mubr.bf16.mxu0 %v10530_v34  ;;  %v8749_v38 = vcombine.high %v4593_v31, %v4597_v32  ;;  %v4604_v44 = vld [vmem:[%s12773_s3 + $0x220] sm:$0xff] }
 0x386   : > { %5421 = vmatprep.mubr.bf16.mxu1 %v10530_v34  ;;  %5348 = vmatprep.subr.bf16.mxu0 %v8699_v6  ;;  %v4601_v6 = vld [vmem:[%s12773_s3 + $0x208] sm:$0xff]  ;;  %v8755_v45 = vcombine.high %v4600_v39, %v4604_v44  ;;  %v8754_v54 = vcombine.low %v4600_v39, %v4604_v44 }
 0x387   : > { %5391 = vmatprep.subr.bf16.mxu1 %v8701_v43  ;;  %v8748_v43 = vcombine.low %v4593_v31, %v4597_v32  ;;  %v8757_v46 = vcombine.high %v4601_v6, %v4605_v41  ;;  %v8756_v40 = vcombine.low %v4601_v6, %v4605_v41 }
 0x388   : > { %5349 = vmatpush1.bf16.msra.mxu0 %v8698_v48  ;;  %v4608_v48 = vld [vmem:[%s12773_s3 + $0x240] sm:$0xff] }
 0x389   : > { %5392 = vmatpush1.bf16.msra.mxu1 %v8700_v50  ;;  %5350 = vmatprep.subr.bf16.mxu0 %v8707_v52  ;;  %v4612_v50 = vld [vmem:[%s12773_s3 + $0x260] sm:$0xff]  ;;  %v4609_v52 = vld [vmem:[%s12773_s3 + $0x248] sm:$0xff] }
 0x38a   : > { %5393 = vmatprep.subr.bf16.mxu1 %v8709_v53  ;;  %v4613_v53 = vld [vmem:[%s12773_s3 + $0x268] sm:$0xff]  ;;  %v8763_v57 = vcombine.high %v4608_v48, %v4612_v50  ;;  %v8762_v63 = vcombine.low %v4608_v48, %v4612_v50 }
 0x38b   : > { %v8765_v15 = vcombine.high %v4609_v52, %v4613_v53  ;;  %v8764_v0 = vcombine.low %v4609_v52, %v4613_v53 }
 0x38c   : > { %5351 = vmatpush1.bf16.msra.mxu0 %v8706_v58  ;;  %v4616_v58 = vld [vmem:[%s12773_s3 + $0x280] sm:$0xff] }
 0x38d   : > { %5394 = vmatpush1.bf16.msra.mxu1 %v8708_v59  ;;  %5352 = vmatprep.subr.bf16.mxu0 %v8715_v60  ;;  %v4620_v59 = vld [vmem:[%s12773_s3 + $0x2a0] sm:$0xff]  ;;  %v4617_v60 = vld [vmem:[%s12773_s3 + $0x288] sm:$0xff] }
 0x38e   : > { %5395 = vmatprep.subr.bf16.mxu1 %v8717_v62  ;;  %v4621_v62 = vld [vmem:[%s12773_s3 + $0x2a8] sm:$0xff]  ;;  %v8771_v2 = vcombine.high %v4616_v58, %v4620_v59  ;;  %v8770_v10 = vcombine.low %v4616_v58, %v4620_v59 }
 0x38f   : > { %v8773_v3 = vcombine.high %v4617_v60, %v4621_v62  ;;  %v8772_v11 = vcombine.low %v4617_v60, %v4621_v62 }
 0x390   : > { %5353 = vmatpush1.bf16.msra.mxu0 %v8714_v4  ;;  %v4624_v4 = vld [vmem:[%s12773_s3 + $0x2c0] sm:$0xff] }
 0x391   : > { %5396 = vmatpush1.bf16.msra.mxu1 %v8716_v5  ;;  %5354 = vmatprep.subr.bf16.mxu0 %v8723_v7  ;;  %v4628_v5 = vld [vmem:[%s12773_s3 + $0x2e0] sm:$0xff]  ;;  %v4625_v7 = vld [vmem:[%s12773_s3 + $0x2c8] sm:$0xff] }
 0x392   : > { %5397 = vmatprep.subr.bf16.mxu1 %v8725_v9  ;;  %v4629_v9 = vld [vmem:[%s12773_s3 + $0x2e8] sm:$0xff]  ;;  %v8779_v12 = vcombine.high %v4624_v4, %v4628_v5  ;;  %v8778_v20 = vcombine.low %v4624_v4, %v4628_v5  ;;  %v4551_v4 = vld [vmem:[%s12773_s3 + $0x78] sm:$0xff] }
 0x393   : > { %v8781_v25 = vcombine.high %v4625_v7, %v4629_v9  ;;  %v8780_v1 = vcombine.low %v4625_v7, %v4629_v9  ;;  %v4554_v9 = vld [vmem:[%s12773_s3 + $0x90] sm:$0xff] }
 0x394   : > { %5355 = vmatpush1.bf16.msra.mxu0 %v8722_v13  ;;  %v4632_v13 = vld [vmem:[%s12773_s3 + $0x300] sm:$0xff] }
 0x395   : > { %5398 = vmatpush1.bf16.msra.mxu1 %v8724_v14  ;;  %5356 = vmatprep.subr.bf16.mxu0 %v8731_v19  ;;  %v4636_v14 = vld [vmem:[%s12773_s3 + $0x320] sm:$0xff]  ;;  %v4633_v19 = vld [vmem:[%s12773_s3 + $0x308] sm:$0xff] }
 0x396   : > { %5399 = vmatprep.subr.bf16.mxu1 %v8733_v18  ;;  %v4637_v18 = vld [vmem:[%s12773_s3 + $0x328] sm:$0xff]  ;;  %v8787_v23 = vcombine.high %v4632_v13, %v4636_v14  ;;  %v8786_v28 = vcombine.low %v4632_v13, %v4636_v14 }
 0x397   : > { %v8789_v36 = vcombine.high %v4633_v19, %v4637_v18  ;;  %v8788_v30 = vcombine.low %v4633_v19, %v4637_v18 }
 0x398   : > { %5357 = vmatpush1.bf16.msra.mxu0 %v8730_v24  ;;  %v4640_v24 = vld [vmem:[%s12773_s3 + $0x340] sm:$0xff] }
 0x399   : > { %5400 = vmatpush1.bf16.msra.mxu1 %v8732_v56  ;;  %5358 = vmatprep.subr.bf16.mxu0 %v8739_v26  ;;  %v4644_v56 = vld [vmem:[%s12773_s3 + $0x360] sm:$0xff]  ;;  %v4641_v26 = vld [vmem:[%s12773_s3 + $0x348] sm:$0xff] }
 0x39a   : > { %5401 = vmatprep.subr.bf16.mxu1 %v8741_v27  ;;  %v4645_v27 = vld [vmem:[%s12773_s3 + $0x368] sm:$0xff]  ;;  %v8795_v31 = vcombine.high %v4640_v24, %v4644_v56  ;;  %v8794_v39 = vcombine.low %v4640_v24, %v4644_v56 }
 0x39b   : > { %v8797_v32 = vcombine.high %v4641_v26, %v4645_v27  ;;  %v8796_v44 = vcombine.low %v4641_v26, %v4645_v27  ;;  %v4570_v27 = vld [vmem:[%s12773_s3 + $0x110] sm:$0xff] }
 0x39c   : > { %5359 = vmatpush1.bf16.msra.mxu0 %v8738_v33  ;;  %v4648_v33 = vld [vmem:[%s12773_s3 + $0x380] sm:$0xff] }
 0x39d   : > { %5402 = vmatpush1.bf16.msra.mxu1 %v8740_v61  ;;  %5360 = vmatprep.subr.bf16.mxu0 %v8747_v35  ;;  %v4652_v61 = vld [vmem:[%s12773_s3 + $0x3a0] sm:$0xff]  ;;  %v4649_v35 = vld [vmem:[%s12773_s3 + $0x388] sm:$0xff] }
 0x39e   : > { %5403 = vmatprep.subr.bf16.mxu1 %v8749_v38  ;;  %v4653_v38 = vld [vmem:[%s12773_s3 + $0x3a8] sm:$0xff]  ;;  %v8803_v6 = vcombine.high %v4648_v33, %v4652_v61  ;;  %v8802_v48 = vcombine.low %v4648_v33, %v4652_v61 }
 0x39f   : > { %v8805_v41 = vcombine.high %v4649_v35, %v4653_v38  ;;  %v8804_v50 = vcombine.low %v4649_v35, %v4653_v38  ;;  %v4578_v38 = vld [vmem:[%s12773_s3 + $0x150] sm:$0xff] }
 0x3a0   : > { %5361 = vmatpush1.bf16.msra.mxu0 %v8746_v42  ;;  %v4656_v42 = vld [vmem:[%s12773_s3 + $0x3c0] sm:$0xff] }
 0x3a1   : > { %5404 = vmatpush1.bf16.msra.mxu1 %v8748_v43  ;;  %5362 = vmatprep.subr.bf16.mxu0 %v8755_v45  ;;  %v4660_v43 = vld [vmem:[%s12773_s3 + $0x3e0] sm:$0xff]  ;;  %v4657_v45 = vld [vmem:[%s12773_s3 + $0x3c8] sm:$0xff] }
 0x3a2   : > { %5405 = vmatprep.subr.bf16.mxu1 %v8757_v46  ;;  %v4661_v46 = vld [vmem:[%s12773_s3 + $0x3e8] sm:$0xff]  ;;  %v8811_v52 = vcombine.high %v4656_v42, %v4660_v43  ;;  %v8810_v58 = vcombine.low %v4656_v42, %v4660_v43 }
 0x3a3   : > { %v8813_v53 = vcombine.high %v4657_v45, %v4661_v46  ;;  %v8812_v59 = vcombine.low %v4657_v45, %v4661_v46  ;;  %v4586_v46 = vld [vmem:[%s12773_s3 + $0x190] sm:$0xff] }
 0x3a4   : > { %5363 = vmatpush1.bf16.msra.mxu0 %v8754_v54  ;;  %v4538_v54 = vld [vmem:[%s12773_s3 + $0x10] sm:$0xff] }
 0x3a5   : > { %5406 = vmatpush1.bf16.msra.mxu1 %v8756_v40  ;;  %5364 = vmatprep.subr.bf16.mxu0 %v8763_v57  ;;  %v4542_v40 = vld [vmem:[%s12773_s3 + $0x30] sm:$0xff]  ;;  %v4539_v57 = vld [vmem:[%s12773_s3 + $0x18] sm:$0xff] }
 0x3a6   : > { %5407 = vmatprep.subr.bf16.mxu1 %v8765_v15  ;;  %v4543_v15 = vld [vmem:[%s12773_s3 + $0x38] sm:$0xff]  ;;  %v8695_v60 = vcombine.high %v4538_v54, %v4542_v40 }
 0x3a7   : > { %v8697_v62 = vcombine.high %v4539_v57, %v4543_v15  ;;  %v8696_v5 = vcombine.low %v4539_v57, %v4543_v15  ;;  %v4594_v15 = vld [vmem:[%s12773_s3 + $0x1d0] sm:$0xff] }
 0x3a8   : > { %5365 = vmatpush1.bf16.msra.mxu0 %v8762_v63  ;;  %v4546_v63 = vld [vmem:[%s12773_s3 + $0x50] sm:$0xff] }
 0x3a9   : > { %5408 = vmatpush1.bf16.msra.mxu1 %v8764_v0  ;;  %5366 = vmatprep.subr.bf16.mxu0 %v8771_v2  ;;  %v4550_v0 = vld [vmem:[%s12773_s3 + $0x70] sm:$0xff]  ;;  %v8694_v2 = vcombine.low %v4538_v54, %v4542_v40 }
 0x3aa   : > { %5409 = vmatprep.subr.bf16.mxu1 %v8773_v3  ;;  %v4547_v3 = vld [vmem:[%s12773_s3 + $0x58] sm:$0xff]  ;;  %v8703_v7 = vcombine.high %v4546_v63, %v4550_v0  ;;  %v8702_v13 = vcombine.low %v4546_v63, %v4550_v0 }
 0x3ab   : > { %v8704_v14 = vcombine.low %v4547_v3, %v4551_v4 }
 0x3ac   : > { %5367 = vmatpush1.bf16.msra.mxu0 %v8770_v10  ;;  %v4558_v10 = vld [vmem:[%s12773_s3 + $0xb0] sm:$0xff] }
 0x3ad   : > { %5410 = vmatpush1.bf16.msra.mxu1 %v8772_v11  ;;  %5368 = vmatprep.subr.bf16.mxu0 %v8779_v12  ;;  %v8705_v11 = vcombine.high %v4547_v3, %v4551_v4  ;;  %v4555_v12 = vld [vmem:[%s12773_s3 + $0x98] sm:$0xff]  ;;  %v8711_v19 = vcombine.high %v4554_v9, %v4558_v10  ;;  %v4602_v3 = vld [vmem:[%s12773_s3 + $0x210] sm:$0xff] }
 0x3ae   : > { %5411 = vmatprep.subr.bf16.mxu1 %v8781_v25  ;;  %v4559_v25 = vld [vmem:[%s12773_s3 + $0xb8] sm:$0xff]  ;;  %v4606_v4 = vld [vmem:[%s12773_s3 + $0x230] sm:$0xff] }
 0x3af   : > { %v8713_v18 = vcombine.high %v4555_v12, %v4559_v25  ;;  %v8712_v24 = vcombine.low %v4555_v12, %v4559_v25  ;;  %v4610_v25 = vld [vmem:[%s12773_s3 + $0x250] sm:$0xff] }
 0x3b0   : > { %5369 = vmatpush1.bf16.msra.mxu0 %v8778_v20  ;;  %v4562_v20 = vld [vmem:[%s12773_s3 + $0xd0] sm:$0xff] }
 0x3b1   : > { %5412 = vmatpush1.bf16.msra.mxu1 %v8780_v1  ;;  %5370 = vmatprep.subr.bf16.mxu0 %v8787_v23  ;;  %v4566_v1 = vld [vmem:[%s12773_s3 + $0xf0] sm:$0xff]  ;;  %v4563_v23 = vld [vmem:[%s12773_s3 + $0xd8] sm:$0xff] }
 0x3b2   : > { %5413 = vmatprep.subr.bf16.mxu1 %v8789_v36  ;;  %v4567_v36 = vld [vmem:[%s12773_s3 + $0xf8] sm:$0xff]  ;;  %v8719_v56 = vcombine.high %v4562_v20, %v4566_v1 }
 0x3b3   : > { %v8721_v26 = vcombine.high %v4563_v23, %v4567_v36  ;;  %v8720_v33 = vcombine.low %v4563_v23, %v4567_v36  ;;  %v4618_v36 = vld [vmem:[%s12773_s3 + $0x290] sm:$0xff] }
 0x3b4   : > { %5371 = vmatpush1.bf16.msra.mxu0 %v8786_v28  ;;  %v4574_v28 = vld [vmem:[%s12773_s3 + $0x130] sm:$0xff] }
 0x3b5   : > { %5414 = vmatpush1.bf16.msra.mxu1 %v8788_v30  ;;  %5372 = vmatprep.subr.bf16.mxu0 %v8795_v31  ;;  %v4571_v30 = vld [vmem:[%s12773_s3 + $0x118] sm:$0xff]  ;;  %v8727_v61 = vcombine.high %v4570_v27, %v4574_v28 }
 0x3b6   : > { %5415 = vmatprep.subr.bf16.mxu1 %v8797_v32  ;;  %v4575_v31 = vld [vmem:[%s12773_s3 + $0x138] sm:$0xff]  ;;  %v8718_v32 = vcombine.low %v4562_v20, %v4566_v1 }
 0x3b7   : > { %v8729_v35 = vcombine.high %v4571_v30, %v4575_v31  ;;  %v8728_v42 = vcombine.low %v4571_v30, %v4575_v31  ;;  %v4626_v31 = vld [vmem:[%s12773_s3 + $0x2d0] sm:$0xff] }
 0x3b8   : > { %5373 = vmatpush1.bf16.msra.mxu0 %v8794_v39  ;;  %v4582_v39 = vld [vmem:[%s12773_s3 + $0x170] sm:$0xff] }
 0x3b9   : > { %5416 = vmatpush1.bf16.msra.mxu1 %v8796_v44  ;;  %5374 = vmatprep.subr.bf16.mxu0 %v8803_v6  ;;  %v4579_v44 = vld [vmem:[%s12773_s3 + $0x158] sm:$0xff]  ;;  %v8735_v43 = vcombine.high %v4578_v38, %v4582_v39 }
 0x3ba   : > { %5417 = vmatprep.subr.bf16.mxu1 %v8805_v41  ;;  %v4583_v6 = vld [vmem:[%s12773_s3 + $0x178] sm:$0xff]  ;;  %v8726_v41 = vcombine.low %v4570_v27, %v4574_v28 }
 0x3bb   : > { %v8737_v45 = vcombine.high %v4579_v44, %v4583_v6  ;;  %v8736_v54 = vcombine.low %v4579_v44, %v4583_v6  ;;  %v4634_v6 = vld [vmem:[%s12773_s3 + $0x310] sm:$0xff] }
 0x3bc   : > { %5375 = vmatpush1.bf16.msra.mxu0 %v8802_v48  ;;  %v4590_v48 = vld [vmem:[%s12773_s3 + $0x1b0] sm:$0xff] }
 0x3bd   : > { %5418 = vmatpush1.bf16.msra.mxu1 %v8804_v50  ;;  %5376 = vmatprep.subr.bf16.mxu0 %v8811_v52  ;;  %v4587_v50 = vld [vmem:[%s12773_s3 + $0x198] sm:$0xff]  ;;  %v8743_v40 = vcombine.high %v4586_v46, %v4590_v48 }
 0x3be   : > { %5419 = vmatprep.subr.bf16.mxu1 %v8813_v53  ;;  %v4591_v52 = vld [vmem:[%s12773_s3 + $0x1b8] sm:$0xff]  ;;  %v8734_v53 = vcombine.low %v4578_v38, %v4582_v39 }
 0x3bf   : > { %v8745_v57 = vcombine.high %v4587_v50, %v4591_v52  ;;  %v8744_v63 = vcombine.low %v4587_v50, %v4591_v52  ;;  %v4642_v52 = vld [vmem:[%s12773_s3 + $0x350] sm:$0xff] }
 0x3c0   : > { %5377 = vmatpush1.bf16.msra.mxu0 %v8810_v58  ;;  %v4598_v58 = vld [vmem:[%s12773_s3 + $0x1f0] sm:$0xff] }
 0x3c1   : > { %5420 = vmatpush1.bf16.msra.mxu1 %v8812_v59  ;;  %5432 = vmatprep.subr.bf16.mxu0 %v8695_v60  ;;  %v4595_v59 = vld [vmem:[%s12773_s3 + $0x1d8] sm:$0xff]  ;;  %v8751_v0 = vcombine.high %v4594_v15, %v4598_v58 }
 0x3c2   : > { %5475 = vmatprep.subr.bf16.mxu1 %v8697_v62  ;;  %v4599_v60 = vld [vmem:[%s12773_s3 + $0x1f8] sm:$0xff]  ;;  %v8742_v62 = vcombine.low %v4586_v46, %v4590_v48 }
 0x3c3   : > { %5379 = vmatmul.mubr.bf16.vlgmr.msra.gmra.mrb[40].mxu0 %v10528_v29 }
 0x3c4   : > { %5422 = vmatmul.mubr.bf16.vlgmr.msra.gmra.mrb[40].mxu1 %v10528_v29  ;;  %5433 = vmatpush1.bf16.msra.mxu0 %v8694_v2  ;;  %v8753_v2 = vcombine.high %v4595_v59, %v4599_v60 }
 0x3c5   : > { %5464 = vmatprep.mubr.bf16.mxu0 %v10530_v34  ;;  %5476 = vmatpush1.bf16.msra.mxu1 %v8696_v5  ;;  %v4603_v5 = vld [vmem:[%s12773_s3 + $0x218] sm:$0xff] }
 0x3c6   : > { %5507 = vmatprep.mubr.bf16.mxu1 %v10530_v34  ;;  %5434 = vmatprep.subr.bf16.mxu0 %v8703_v7  ;;  %v8710_v34 = vcombine.low %v4554_v9, %v4558_v10  ;;  %v4607_v7 = vld [vmem:[%s12773_s3 + $0x238] sm:$0xff]  ;;  %v8750_v9 = vcombine.low %v4594_v15, %v4598_v58  ;;  %v8752_v10 = vcombine.low %v4595_v59, %v4599_v60  ;;  %v4650_v60 = vld [vmem:[%s12773_s3 + $0x390] sm:$0xff] }
 0x3c7   : > { %5477 = vmatprep.subr.bf16.mxu1 %v8705_v11  ;;  %v8759_v11 = vcombine.high %v4602_v3, %v4606_v4  ;;  %v8761_v12 = vcombine.high %v4603_v5, %v4607_v7  ;;  %v8760_v20 = vcombine.low %v4603_v5, %v4607_v7  ;;  %v4658_v7 = vld [vmem:[%s12773_s3 + $0x3d0] sm:$0xff] }
 0x3c8   : > { %5435 = vmatpush1.bf16.msra.mxu0 %v8702_v13  ;;  %v4614_v13 = vld [vmem:[%s12773_s3 + $0x270] sm:$0xff] }
 0x3c9   : > { %5478 = vmatpush1.bf16.msra.mxu1 %v8704_v14  ;;  %5436 = vmatprep.subr.bf16.mxu0 %v8711_v19  ;;  %v4611_v14 = vld [vmem:[%s12773_s3 + $0x258] sm:$0xff]  ;;  %v8767_v1 = vcombine.high %v4610_v25, %v4614_v13 }
 0x3ca   : > { %5479 = vmatprep.subr.bf16.mxu1 %v8713_v18  ;;  %v4615_v19 = vld [vmem:[%s12773_s3 + $0x278] sm:$0xff]  ;;  %v8758_v18 = vcombine.low %v4602_v3, %v4606_v4 }
 0x3cb   : > { %v8769_v23 = vcombine.high %v4611_v14, %v4615_v19  ;;  %v8768_v27 = vcombine.low %v4611_v14, %v4615_v19 }
 0x3cc   : > { %5437 = vmatpush1.bf16.msra.mxu0 %v8710_v34  ;;  %v4622_v34 = vld [vmem:[%s12773_s3 + $0x2b0] sm:$0xff] }
 0x3cd   : > { %5480 = vmatpush1.bf16.msra.mxu1 %v8712_v24  ;;  %5438 = vmatprep.subr.bf16.mxu0 %v8719_v56  ;;  %v4619_v24 = vld [vmem:[%s12773_s3 + $0x298] sm:$0xff]  ;;  %v8775_v28 = vcombine.high %v4618_v36, %v4622_v34 }
 0x3ce   : > { %5481 = vmatprep.subr.bf16.mxu1 %v8721_v26  ;;  %v4623_v56 = vld [vmem:[%s12773_s3 + $0x2b8] sm:$0xff]  ;;  %v8766_v26 = vcombine.low %v4610_v25, %v4614_v13 }
 0x3cf   : > { %v8777_v30 = vcombine.high %v4619_v24, %v4623_v56  ;;  %v8776_v38 = vcombine.low %v4619_v24, %v4623_v56  ;;  %v9627_v24 = vld [vmem:[%s12775_s5 + $0x48] sm:$0xff]  }
 0x3d0   : > { %5439 = vmatpush1.bf16.msra.mxu0 %v8718_v32  ;;  %v4630_v32 = vld [vmem:[%s12773_s3 + $0x2f0] sm:$0xff]  ;;  %v9628_v56 = vld [vmem:[%s12775_s5 + $0x8] sm:$0xff]  }
 0x3d1   : > { %5482 = vmatpush1.bf16.msra.mxu1 %v8720_v33  ;;  %5440 = vmatprep.subr.bf16.mxu0 %v8727_v61  ;;  %v4627_v33 = vld [vmem:[%s12773_s3 + $0x2d8] sm:$0xff]  ;;  %v8783_v39 = vcombine.high %v4626_v31, %v4630_v32 }
 0x3d2   : > { %5483 = vmatprep.subr.bf16.mxu1 %v8729_v35  ;;  %v4631_v61 = vld [vmem:[%s12773_s3 + $0x2f8] sm:$0xff]  ;;  %v8774_v35 = vcombine.low %v4618_v36, %v4622_v34  ;;  %v9625_v36 = vld [vmem:[%s12775_s5] sm:$0xff]   ;;  %v9626_v34 = vld [vmem:[%s12775_s5 + $0x48] sm:$0xff]  }
 0x3d3   : > { %v8785_v44 = vcombine.high %v4627_v33, %v4631_v61  ;;  %v8784_v46 = vcombine.low %v4627_v33, %v4631_v61  ;;  %v9636_v33 = vld [vmem:[%s12775_s5 + $0x18] sm:$0xff]  }
 0x3d4   : > { %5441 = vmatpush1.bf16.msra.mxu0 %v8726_v41  ;;  %v4638_v41 = vld [vmem:[%s12773_s3 + $0x330] sm:$0xff]  ;;  %v9637_v61 = vld [vmem:[%s12775_s5 + $0x18] sm:$0xff]  }
 0x3d5   : > { %5484 = vmatpush1.bf16.msra.mxu1 %v8728_v42  ;;  %5442 = vmatprep.subr.bf16.mxu0 %v8735_v43  ;;  %v4635_v42 = vld [vmem:[%s12773_s3 + $0x318] sm:$0xff]  ;;  %v8791_v48 = vcombine.high %v4634_v6, %v4638_v41 }
 0x3d6   : > { %5485 = vmatprep.subr.bf16.mxu1 %v8737_v45  ;;  %v4639_v43 = vld [vmem:[%s12773_s3 + $0x338] sm:$0xff]  ;;  %v8782_v45 = vcombine.low %v4626_v31, %v4630_v32 }
 0x3d7   : > { %v8793_v50 = vcombine.high %v4635_v42, %v4639_v43  ;;  %v8792_v15 = vcombine.low %v4635_v42, %v4639_v43  ;;  %v9634_v31 = vld [vmem:[%s12775_s5 + $0x58] sm:$0xff]  }
 0x3d8   : > { %5443 = vmatpush1.bf16.msra.mxu0 %v8734_v53  ;;  %v4646_v53 = vld [vmem:[%s12773_s3 + $0x370] sm:$0xff]  ;;  %v9635_v32 = vld [vmem:[%s12775_s5 + $0x58] sm:$0xff]  }
 0x3d9   : > { %5486 = vmatpush1.bf16.msra.mxu1 %v8736_v54  ;;  %5444 = vmatprep.subr.bf16.mxu0 %v8743_v40  ;;  %v4643_v54 = vld [vmem:[%s12773_s3 + $0x358] sm:$0xff]  ;;  %v8799_v58 = vcombine.high %v4642_v52, %v4646_v53 }
 0x3da   : > { %5487 = vmatprep.subr.bf16.mxu1 %v8745_v57  ;;  %v4647_v40 = vld [vmem:[%s12773_s3 + $0x378] sm:$0xff]  ;;  %v8790_v57 = vcombine.low %v4634_v6, %v4638_v41  ;;  %v9642_v6 = vld [vmem:[%s12775_s5 + $0x68] sm:$0xff]  }
 0x3db   : > { %v8801_v59 = vcombine.high %v4643_v54, %v4647_v40  ;;  %v8800_v3 = vcombine.low %v4643_v54, %v4647_v40  ;;  %v9643_v41 = vld [vmem:[%s12775_s5 + $0x68] sm:$0xff]  }
 0x3dc   : > { %5445 = vmatpush1.bf16.msra.mxu0 %v8742_v62  ;;  %v4654_v62 = vld [vmem:[%s12773_s3 + $0x3b0] sm:$0xff] }
 0x3dd   : > { %5488 = vmatpush1.bf16.msra.mxu1 %v8744_v63  ;;  %5446 = vmatprep.subr.bf16.mxu0 %v8751_v0  ;;  %v4651_v63 = vld [vmem:[%s12773_s3 + $0x398] sm:$0xff]  ;;  %v8807_v4 = vcombine.high %v4650_v60, %v4654_v62 }
 0x3de   : > { %5489 = vmatprep.subr.bf16.mxu1 %v8753_v2  ;;  %v4655_v0 = vld [vmem:[%s12773_s3 + $0x3b8] sm:$0xff]  ;;  %v8798_v2 = vcombine.low %v4642_v52, %v4646_v53 }
 0x3df   : > { %v8809_v5 = vcombine.high %v4651_v63, %v4655_v0  ;;  %v8808_v25 = vcombine.low %v4651_v63, %v4655_v0 }
 0x3e0   : > { %5447 = vmatpush1.bf16.msra.mxu0 %v8750_v9  ;;  %v4662_v9 = vld [vmem:[%s12773_s3 + $0x3f0] sm:$0xff] }
 0x3e1   : > { %5490 = vmatpush1.bf16.msra.mxu1 %v8752_v10  ;;  %5448 = vmatprep.subr.bf16.mxu0 %v8759_v11  ;;  %v4659_v10 = vld [vmem:[%s12773_s3 + $0x3d8] sm:$0xff]  ;;  %v8815_v13 = vcombine.high %v4658_v7, %v4662_v9  ;;  %v8814_v19 = vcombine.low %v4658_v7, %v4662_v9 }
 0x3e2   : > { %5491 = vmatprep.subr.bf16.mxu1 %v8761_v12  ;;  %v4663_v11 = vld [vmem:[%s12773_s3 + $0x3f8] sm:$0xff]  ;;  %v8806_v12 = vcombine.low %v4650_v60, %v4654_v62  ;;  %v9647_v60 = vld [vmem:[%s12775_s5 + $0x70] sm:$0xff]  }
 0x3e3   : > { %v8817_v14 = vcombine.high %v4659_v10, %v4663_v11 }
 0x3e4   : > { %5449 = vmatpush1.bf16.msra.mxu0 %v8758_v18  ;;  %v8816_v18 = vcombine.low %v4659_v10, %v4663_v11  ;;  %v9650_v11 = vld [vmem:[%s12775_s5 + $0x78] sm:$0xff]  }
 0x3e5   : > { %5492 = vmatpush1.bf16.msra.mxu1 %v8760_v20  ;;  %5450 = vmatprep.subr.bf16.mxu0 %v8767_v1  ;;  %v9622_v20 = vld [vmem:[%s12775_s5 + $0x40] sm:$0xff]  }
 0x3e6   : > { %5493 = vmatprep.subr.bf16.mxu1 %v8769_v23  ;;  %v9623_v1 = vld [vmem:[%s12775_s5 + $0x40] sm:$0xff]  }
 0x3e7   : > { %v9624_v23 = vld [vmem:[%s12775_s5] sm:$0xff]  }
 0x3e8   : > { %5451 = vmatpush1.bf16.msra.mxu0 %v8766_v26  ;;  %v9629_v26 = vld [vmem:[%s12775_s5 + $0x8] sm:$0xff]  }
 0x3e9   : > { %5494 = vmatpush1.bf16.msra.mxu1 %v8768_v27  ;;  %5452 = vmatprep.subr.bf16.mxu0 %v8775_v28  ;;  %v9630_v27 = vld [vmem:[%s12775_s5 + $0x50] sm:$0xff]  }
 0x3ea   : > { %5495 = vmatprep.subr.bf16.mxu1 %v8777_v30  ;;  %v9632_v28 = vld [vmem:[%s12775_s5 + $0x10] sm:$0xff]  }
 0x3eb   : > { %v9633_v30 = vld [vmem:[%s12775_s5 + $0x10] sm:$0xff]  }
 0x3ec   : > { %5453 = vmatpush1.bf16.msra.mxu0 %v8774_v35  ;;  %v9638_v35 = vld [vmem:[%s12775_s5 + $0x60] sm:$0xff]  }
 0x3ed   : > { %5496 = vmatpush1.bf16.msra.mxu1 %v8776_v38  ;;  %5454 = vmatprep.subr.bf16.mxu0 %v8783_v39  ;;  %v9639_v38 = vld [vmem:[%s12775_s5 + $0x60] sm:$0xff]  }
 0x3ee   : > { %5497 = vmatprep.subr.bf16.mxu1 %v8785_v44  ;;  %v9640_v39 = vld [vmem:[%s12775_s5 + $0x20] sm:$0xff]  }
 0x3ef   : > { %v9641_v44 = vld [vmem:[%s12775_s5 + $0x20] sm:$0xff]  }
 0x3f0   : > { %5455 = vmatpush1.bf16.msra.mxu0 %v8782_v45  ;;  %v9644_v45 = vld [vmem:[%s12775_s5 + $0x28] sm:$0xff]  }
 0x3f1   : > { %5498 = vmatpush1.bf16.msra.mxu1 %v8784_v46  ;;  %5456 = vmatprep.subr.bf16.mxu0 %v8791_v48  ;;  %v9645_v46 = vld [vmem:[%s12775_s5 + $0x28] sm:$0xff]   ;;  %v11950_v48 = vld [vmem:[%s12776_s6] ss:$0 sm:$0xff] }
 0x3f2   : > { %5499 = vmatprep.subr.bf16.mxu1 %v8793_v50 }
 0x3f4   : > { %5457 = vmatpush1.bf16.msra.mxu0 %v8790_v57 }
 0x3f5   : > { %5500 = vmatpush1.bf16.msra.mxu1 %v8792_v15  ;;  %5458 = vmatprep.subr.bf16.mxu0 %v8799_v58 }
 0x3f6   : > { %5501 = vmatprep.subr.bf16.mxu1 %v8801_v59  ;;  %v9646_v59 = vld [vmem:[%s12775_s5 + $0x70] sm:$0xff]  }
 0x3f8   : > { %5459 = vmatpush1.bf16.msra.mxu0 %v8798_v2 }
 0x3f9   : > { %5502 = vmatpush1.bf16.msra.mxu1 %v8800_v3  ;;  %5460 = vmatprep.subr.bf16.mxu0 %v8807_v4  ;;  %v9648_v3 = vld [vmem:[%s12775_s5 + $0x30] sm:$0xff]  }
 0x3fa   : > { %5503 = vmatprep.subr.bf16.mxu1 %v8809_v5  ;;  %v9649_v4 = vld [vmem:[%s12775_s5 + $0x30] sm:$0xff]  }
 0x3fc   : > { %5461 = vmatpush1.bf16.msra.mxu0 %v8806_v12  ;;  %v9651_v12 = vld [vmem:[%s12775_s5 + $0x78] sm:$0xff]  }
 0x3fd   : > { %5504 = vmatpush1.bf16.msra.mxu1 %v8808_v25  ;;  %5462 = vmatprep.subr.bf16.mxu0 %v8815_v13 }
 0x3fe   : > { %5505 = vmatprep.subr.bf16.mxu1 %v8817_v14 }
 0x400   : > { %5463 = vmatpush1.bf16.msra.mxu0 %v8814_v19 }
 0x401   : > { %5506 = vmatpush1.bf16.msra.mxu1 %v8816_v18  ;;  %9309 = vmatprep.subr.bf16.mxu0 %v9622_v20  ;;  %v9652_v18 = vld [vmem:[%s12775_s5 + $0x38] sm:$0xff]  }
 0x402   : > { %9331 = vmatprep.subr.bf16.mxu1 %v9623_v1  ;;  %v9653_v20 = vld [vmem:[%s12775_s5 + $0x38] sm:$0xff]  }
 0x403   : > { %5465 = vmatmul.mubr.bf16.vlgmr.msra.gmra.mrb[44].mxu0 %v10528_v29 }
 0x404   : > { %5508 = vmatmul.mubr.bf16.vlgmr.msra.gmra.mrb[44].mxu1 %v10528_v29  ;;  %9310 = vmatpush3.bf16.msra.mxu0 %v9624_v23  ;;  %v9631_v29 = vld [vmem:[%s12775_s5 + $0x50] sm:$0xff]  }
 0x405   : > { %9332 = vmatpush3.bf16.msra.mxu1 %v9625_v36  ;;  %9311 = vmatprep.subr.bf16.mxu0 %v9626_v34  ;;  %v9654_v36 = vld [vmem:[%s12775_s5 + $0x40] sm:$0xff]  }
 0x406   : > { %9333 = vmatprep.subr.bf16.mxu1 %v9627_v24  ;;  %v9655_v34 = vld [vmem:[%s12775_s5 + $0x40] sm:$0xff]  }
 0x408   : > { %9312 = vmatpush3.bf16.msra.mxu0 %v9628_v56 }
 0x409   : > { %9334 = vmatpush3.bf16.msra.mxu1 %v9629_v26  ;;  %9313 = vmatprep.subr.bf16.mxu0 %v9630_v27 }
 0x40a   : > { %9335 = vmatprep.subr.bf16.mxu1 %v9631_v29 }
 0x40c   : > { %9314 = vmatpush3.bf16.msra.mxu0 %v9632_v28 }
 0x40d   : > { %9336 = vmatpush3.bf16.msra.mxu1 %v9633_v30  ;;  %9315 = vmatprep.subr.bf16.mxu0 %v9634_v31 }
 0x40e   : > { %9337 = vmatprep.subr.bf16.mxu1 %v9635_v32 }
 0x410   : > { %9316 = vmatpush3.bf16.msra.mxu0 %v9636_v33 }
 0x411   : > { %9338 = vmatpush3.bf16.msra.mxu1 %v9637_v61  ;;  %9317 = vmatprep.subr.bf16.mxu0 %v9638_v35 }
 0x412   : > { %9339 = vmatprep.subr.bf16.mxu1 %v9639_v38 }
 0x414   : > { %9318 = vmatpush3.bf16.msra.mxu0 %v9640_v39 }
 0x415   : > { %9340 = vmatpush3.bf16.msra.mxu1 %v9641_v44  ;;  %9319 = vmatprep.subr.bf16.mxu0 %v9642_v6 }
 0x416   : > { %v9237_v42 = vpop.f32.mrb[32].mxu0  ;;  %v9259_v43 = vpop.f32.mrb[32].mxu1  ;;  %9341 = vmatprep.subr.bf16.mxu1 %v9643_v41 }
 0x417   : > { %v9238_v50 = vpop.f32.mrb[33].mxu0  ;;  %v9260_v52 = vpop.f32.mrb[33].mxu1 }
 0x418   : > { %v9239_v53 = vadd.f32 %v9238_v50, %v9237_v42  ;;  %v9261_v54 = vadd.f32 %v9260_v52, %v9259_v43  ;;  %v9240_v40 = vpop.f32.mrb[34].mxu0  ;;  %v9262_v57 = vpop.f32.mrb[34].mxu1  ;;  %9320 = vmatpush3.bf16.msra.mxu0 %v9644_v45 }
 0x419   : > { %v9241_v15 = vpop.f32.mrb[35].mxu0  ;;  %v9263_v58 = vpop.f32.mrb[35].mxu1  ;;  %9342 = vmatpush3.bf16.msra.mxu1 %v9645_v46  ;;  %9321 = vmatprep.subr.bf16.mxu0 %v9646_v59 }
 0x41a   : > { %v3914_v62 = vadd.f32 %v9239_v53, %v11950_v48  ;;  %v4112_v63 = vadd.f32 %v9261_v54, %v11950_v48  ;;  %v9242_v0 = vadd.f32 %v9241_v15, %v9240_v40  ;;  %v9264_v2 = vadd.f32 %v9263_v58, %v9262_v57  ;;  %9343 = vmatprep.subr.bf16.mxu1 %v9647_v60 }
 0x41c   : > { %v3920_v5 = vsub.f32 0.0, %v3914_v62  ;;  %v4118_v7 = vsub.f32 0.0, %v4112_v63  ;;  %v3917_v9 = vadd.f32 %v9242_v0, %v11950_v48  ;;  %v4115_v10 = vadd.f32 %v9264_v2, %v11950_v48  ;;  %9322 = vmatpush3.bf16.msra.mxu0 %v9648_v3 }
 0x41d   : > { %9344 = vmatpush3.bf16.msra.mxu1 %v9649_v4  ;;  %9323 = vmatprep.subr.bf16.mxu0 %v9650_v11 }
 0x41e   : > { %v3922_v25 = vmul.f32 1.442695, %v3920_v5  ;;  %v4120_v13 = vmul.f32 1.442695, %v4118_v7  ;;  %v3921_v14 = vsub.f32 0.0, %v3917_v9  ;;  %v4119_v19 = vsub.f32 0.0, %v4115_v10  ;;  %9345 = vmatprep.subr.bf16.mxu1 %v9651_v12 }
 0x420   : > { %9782 = vpow2.f32 %v3922_v25  ;;  %v3924_v1 = vmul.f32 1.442695, %v3921_v14  ;;  %v4122_v23 = vmul.f32 1.442695, %v4119_v19  ;;  %9324 = vmatpush3.bf16.msra.mxu0 %v9652_v18 }
 0x421   : > { %9784 = vpow2.f32 %v4120_v13  ;;  %9346 = vmatpush3.bf16.msra.mxu1 %v9653_v20  ;;  %9353 = vmatprep.subr.bf16.mxu0 %v9654_v36 }
 0x422   : > { %9786 = vpow2.f32 %v3924_v1  ;;  %9375 = vmatprep.subr.bf16.mxu1 %v9655_v34 }
 0x423   : > { %9788 = vpow2.f32 %v4122_v23 }
 0x42a   : > { %v9783_v24 = vpop.eup %9782 }
 0x42b   : > { %v9785_v56 = vpop.eup %9784  ;;  %v3926_v26 = vadd.f32 1.0, %v9783_v24 }
 0x42c   : > { %v9787_v27 = vpop.eup %9786  ;;  %v4124_v29 = vadd.f32 1.0, %v9785_v56 }
 0x42d   : > { %v9789_v28 = vpop.eup %9788  ;;  %9790 = vrcp.f32 %v3926_v26  ;;  %v3927_v30 = vadd.f32 1.0, %v9787_v27  ;;  %v12001_v26 = vld [vmem:[%s12774_s4] sm:$0xff] }
 0x42e   : > { %9792 = vrcp.f32 %v4124_v29  ;;  %v4125_v31 = vadd.f32 1.0, %v9789_v28  ;;  %v4669_v27 = vrot.slane %v12001_v26, %v10368_v16  ;;  %v4677_v29 = vrot.slane %v12001_v26, %v10383_v21 }
 0x42f   : > { %9794 = vrcp.f32 %v3927_v30  ;;  %v4673_v28 = vrot.slane %v12001_v26, %v10371_v17  ;;  %v4681_v30 = vrot.slane %v12001_v26, %v10386_v22 }
 0x430   : > { %9796 = vrcp.f32 %v4125_v31 }
 0x437   : > { %v9791_v32 = vpop.eup %9790 }
 0x438   : > { %v9793_v33 = vpop.eup %9792  ;;  %v9109_v61 = vpack.c.bf16 %v9791_v32, %v9791_v32 }
 0x439   : > { %v9795_v35 = vpop.eup %9794  ;;  %v9111_v38 = vpack.c.bf16 %v9793_v33, %v9793_v33 }
 0x43a   : > { %v9797_v39 = vpop.eup %9796  ;;  %3938 = vst [vmem:[%s11342_s12 + $0x10] sm:$0xf] %v9109_v61  ;;  %v9110_v44 = vpack.c.bf16 %v9795_v35, %v9795_v35 }
 0x43b   : > { %4136 = vst [vmem:[%s11342_s12 + $0x14] sm:$0xf] %v9111_v38  ;;  %v9112_v6 = vpack.c.bf16 %v9797_v39, %v9797_v39 }
 0x43c   : > { %3939 = vst [vmem:[%s11342_s12 + $0x50] sm:$0xf] %v9110_v44 }
 0x43d   : > { %4137 = vst [vmem:[%s11342_s12 + $0x54] sm:$0xf] %v9112_v6 }
 0x456   : > { %v9281_v41 = vpop.f32.mrb[36].mxu0 }
 0x457   : > { %v9303_v42 = vpop.f32.mrb[36].mxu1  ;;  %v9282_v43 = vpop.f32.mrb[37].mxu0 }
 0x458   : > { %v9283_v45 = vadd.f32 %v9282_v43, %v9281_v41  ;;  %v9304_v46 = vpop.f32.mrb[37].mxu1  ;;  %v9284_v50 = vpop.f32.mrb[38].mxu0 }
 0x459   : > { %v9305_v52 = vadd.f32 %v9304_v46, %v9303_v42  ;;  %v9306_v53 = vpop.f32.mrb[38].mxu1  ;;  %v9285_v54 = vpop.f32.mrb[39].mxu0 }
 0x45a   : > { %v4310_v40 = vadd.f32 %v9283_v45, %v11950_v48  ;;  %v9286_v57 = vadd.f32 %v9285_v54, %v9284_v50  ;;  %v9307_v15 = vpop.f32.mrb[39].mxu1 }
 0x45b   : > { %v4508_v58 = vadd.f32 %v9305_v52, %v11950_v48  ;;  %v9308_v59 = vadd.f32 %v9307_v15, %v9306_v53 }
 0x45c   : > { %v4316_v60 = vsub.f32 0.0, %v4310_v40  ;;  %v4313_v62 = vadd.f32 %v9286_v57, %v11950_v48 }
 0x45d   : > { %v4514_v63 = vsub.f32 0.0, %v4508_v58  ;;  %v4511_v0 = vadd.f32 %v9308_v59, %v11950_v48 }
 0x45e   : > { %v4318_v2 = vmul.f32 1.442695, %v4316_v60  ;;  %v4317_v3 = vsub.f32 0.0, %v4313_v62 }
 0x45f   : > { %v4516_v4 = vmul.f32 1.442695, %v4514_v63  ;;  %v4515_v5 = vsub.f32 0.0, %v4511_v0 }
 0x460   : > { %9798 = vpow2.f32 %v4318_v2  ;;  %v4320_v7 = vmul.f32 1.442695, %v4317_v3  ;;  %v9656_v2 = vld [vmem:[%s12775_s5] sm:$0xff]  }
 0x461   : > { %9800 = vpow2.f32 %v4516_v4  ;;  %v4518_v9 = vmul.f32 1.442695, %v4515_v5  ;;  %v9657_v4 = vld [vmem:[%s12775_s5] sm:$0xff]   ;;  %v9658_v5 = vld [vmem:[%s12775_s5 + $0x48] sm:$0xff]  }
 0x462   : > { %9802 = vpow2.f32 %v4320_v7  ;;  %v9659_v7 = vld [vmem:[%s12775_s5 + $0x48] sm:$0xff]  }
 0x463   : > { %9804 = vpow2.f32 %v4518_v9  ;;  %v9660_v9 = vld [vmem:[%s12775_s5 + $0x8] sm:$0xff]  }
 0x46a   : > { %v9799_v10 = vpop.eup %9798 }
 0x46b   : > { %v9801_v11 = vpop.eup %9800  ;;  %v4322_v12 = vadd.f32 1.0, %v9799_v10  ;;  %v9661_v10 = vld [vmem:[%s12775_s5 + $0x8] sm:$0xff]  }
 0x46c   : > { %v9803_v25 = vpop.eup %9802  ;;  %v4520_v13 = vadd.f32 1.0, %v9801_v11  ;;  %v9662_v11 = vld [vmem:[%s12775_s5 + $0x50] sm:$0xff]  }
 0x46d   : > { %v9805_v14 = vpop.eup %9804  ;;  %9806 = vrcp.f32 %v4322_v12  ;;  %v4323_v48 = vadd.f32 1.0, %v9803_v25  ;;  %v9663_v12 = vld [vmem:[%s12775_s5 + $0x50] sm:$0xff]  }
 0x46e   : > { %9808 = vrcp.f32 %v4520_v13  ;;  %v4521_v19 = vadd.f32 1.0, %v9805_v14  ;;  %v9664_v25 = vld [vmem:[%s12775_s5 + $0x10] sm:$0xff]   ;;  %v9666_v14 = vld [vmem:[%s12775_s5 + $0x58] sm:$0xff]  }
 0x46f   : > { %9810 = vrcp.f32 %v4323_v48  ;;  %v9665_v13 = vld [vmem:[%s12775_s5 + $0x10] sm:$0xff]   ;;  %v9667_v48 = vld [vmem:[%s12775_s5 + $0x58] sm:$0xff]  }
 0x470   : > { %9812 = vrcp.f32 %v4521_v19  ;;  %v9668_v19 = vld [vmem:[%s12775_s5 + $0x18] sm:$0xff]  }
 0x477   : > { %v9807_v18 = vpop.eup %9806 }
 0x478   : > { %v9809_v20 = vpop.eup %9808  ;;  %v9113_v1 = vpack.c.bf16 %v9807_v18, %v9807_v18  ;;  %v9669_v18 = vld [vmem:[%s12775_s5 + $0x18] sm:$0xff]  }
 0x479   : > { %v9811_v23 = vpop.eup %9810  ;;  %v9115_v36 = vpack.c.bf16 %v9809_v20, %v9809_v20  ;;  %v9670_v20 = vld [vmem:[%s12775_s5 + $0x60] sm:$0xff]  }
 0x47a   : > { %v9813_v34 = vpop.eup %9812  ;;  %4334 = vst [vmem:[%s11342_s12 + $0x18] sm:$0xf] %v9113_v1  ;;  %v9114_v24 = vpack.c.bf16 %v9811_v23, %v9811_v23  ;;  %v9671_v1 = vld [vmem:[%s12775_s5 + $0x60] sm:$0xff]  }
 0x47b   : > { %4532 = vst [vmem:[%s11342_s12 + $0x1c] sm:$0xf] %v9115_v36  ;;  %v9116_v56 = vpack.c.bf16 %v9813_v34, %v9813_v34  ;;  %v9672_v23 = vld [vmem:[%s12775_s5 + $0x20] sm:$0xff]   ;;  %v9674_v34 = vld [vmem:[%s12775_s5 + $0x68] sm:$0xff]  }
 0x47c   : > { %4335 = vst [vmem:[%s11342_s12 + $0x58] sm:$0xf] %v9114_v24  ;;  %v9673_v36 = vld [vmem:[%s12775_s5 + $0x20] sm:$0xff]   ;;  %v9675_v24 = vld [vmem:[%s12775_s5 + $0x68] sm:$0xff]  }
 0x47d   : > { %4533 = vst [vmem:[%s11342_s12 + $0x5c] sm:$0xf] %v9116_v56  ;;  %v9676_v56 = vld [vmem:[%s12775_s5 + $0x28] sm:$0xff]  }
 0x496   : > { %v5380_v31 = vpop.f32.mrb[40].mxu0 }
 0x497   : > { %v5381_v32 = vadd.f32 %v5380_v31, %v4669_v27  ;;  %v5423_v33 = vpop.f32.mrb[40].mxu1  ;;  %v5382_v61 = vpop.f32.mrb[41].mxu0  ;;  %v9681_v31 = vld [vmem:[%s12775_s5 + $0x30] sm:$0xff]  }
 0x498   : > { %v5424_v35 = vadd.f32 %v5423_v33, %v4677_v29  ;;  %v5383_v38 = vadd.f32 %v5382_v61, %v4673_v28  ;;  %v5425_v39 = vpop.f32.mrb[41].mxu1  ;;  %v5384_v44 = vpop.f32.mrb[42].mxu0  ;;  %v9683_v33 = vld [vmem:[%s12775_s5 + $0x78] sm:$0xff]   ;;  %v12098_v61 = vld [vmem:[%s12773_s3] sm:$0xff] }
 0x499   : > { %v5426_v6 = vadd.f32 %v5425_v39, %v4681_v30  ;;  %v5385_v41 = vadd.f32 %v5384_v44, %v4669_v27  ;;  %v5427_v42 = vpop.f32.mrb[42].mxu1  ;;  %v5386_v43 = vpop.f32.mrb[43].mxu0  ;;  %v5518_v52 = vmax.f32 %v5381_v32, 0.0  ;;  %v9677_v27 = vld [vmem:[%s12775_s5 + $0x28] sm:$0xff]   ;;  %v9682_v32 = vld [vmem:[%s12775_s5 + $0x78] sm:$0xff]  }
 0x49a   : > { %v5428_v45 = vadd.f32 %v5427_v42, %v4677_v29  ;;  %v5387_v46 = vadd.f32 %v5386_v43, %v4673_v28  ;;  %v5429_v50 = vpop.f32.mrb[43].mxu1  ;;  %v5520_v40 = vmax.f32 %v5424_v35, 0.0  ;;  %v5519_v57 = vmax.f32 %v5383_v38, 0.0  ;;  %v9678_v29 = vld [vmem:[%s12775_s5 + $0x70] sm:$0xff]   ;;  %v12103_v35 = vld [vmem:[%s12773_s3 + $0x20] sm:$0xff]  ;;  %v12108_v38 = vld [vmem:[%s12773_s3 + $0x8] sm:$0xff] }
 0x49b   : > { %v5526_v53 = vmax.f32 %v5385_v41, 0.0  ;;  %v5430_v54 = vadd.f32 %v5429_v50, %v4681_v30  ;;  %v5521_v59 = vmax.f32 %v5426_v6, 0.0  ;;  %v9679_v28 = vld [vmem:[%s12775_s5 + $0x70] sm:$0xff]   ;;  %v12113_v39 = vld [vmem:[%s12773_s3 + $0x28] sm:$0xff]  ;;  %v9684_v44 = vld [vmem:[%s12775_s5 + $0x38] sm:$0xff]   ;;  %v8895_v41 = vcombine.high %v12098_v61, %v12103_v35 }
 0x49c   : > { %v5528_v15 = vmax.f32 %v5428_v45, 0.0  ;;  %v5527_v58 = vmax.f32 %v5387_v46, 0.0  ;;  %v9680_v30 = vld [vmem:[%s12775_s5 + $0x30] sm:$0xff]   ;;  %v9685_v6 = vld [vmem:[%s12775_s5 + $0x38] sm:$0xff]   ;;  %v8897_v42 = vcombine.high %v12108_v38, %v12113_v39  ;;  %v4685_v43 = vrot.slane %v12001_v26, %v10464_v8 }
 0x49d   : > { %v5534_v60 = vpack.c.bf16 %v5526_v53, %v5518_v52  ;;  %v5529_v62 = vmax.f32 %v5430_v54, 0.0  ;;  %v4693_v45 = vrot.slane %v12001_v26, %v10493_v47  ;;  %v4689_v46 = vrot.slane %v12001_v26, %v10476_v37 }
 0x49e   : > { %v5536_v63 = vpack.c.bf16 %v5528_v15, %v5520_v40  ;;  %v5535_v0 = vpack.c.bf16 %v5527_v58, %v5519_v57  ;;  %v4697_v50 = vrot.slane %v12001_v26, %v10498_v49 }
 0x49f   : > { %v5537_v3 = vpack.c.bf16 %v5529_v62, %v5521_v59 }
 0x4a0   : > { %5719 = vmatprep.mubr.bf16.mxu0 %v5535_v0 }
 0x4a1   : > { %5917 = vmatprep.mubr.bf16.mxu1 %v5537_v3  ;;  %5720 = vmatmul.mubr.bf16.vlgmr.msra.gmra.mrb[48].mxu0 %v5534_v60 }
 0x4a2   : > { %5918 = vmatmul.mubr.bf16.vlgmr.msra.gmra.mrb[48].mxu1 %v5536_v63  ;;  %9354 = vmatpush3.bf16.msra.mxu0 %v9656_v2 }
 0x4a3   : > { %9376 = vmatpush3.bf16.msra.mxu1 %v9657_v4  ;;  %9355 = vmatprep.subr.bf16.mxu0 %v9658_v5 }
 0x4a4   : > { %9377 = vmatprep.subr.bf16.mxu1 %v9659_v7 }
 0x4a6   : > { %9356 = vmatpush3.bf16.msra.mxu0 %v9660_v9 }
 0x4a7   : > { %9378 = vmatpush3.bf16.msra.mxu1 %v9661_v10  ;;  %9357 = vmatprep.subr.bf16.mxu0 %v9662_v11 }
 0x4a8   : > { %9379 = vmatprep.subr.bf16.mxu1 %v9663_v12 }
 0x4aa   : > { %9358 = vmatpush3.bf16.msra.mxu0 %v9664_v25 }
 0x4ab   : > { %9380 = vmatpush3.bf16.msra.mxu1 %v9665_v13  ;;  %9359 = vmatprep.subr.bf16.mxu0 %v9666_v14 }
 0x4ac   : > { %9381 = vmatprep.subr.bf16.mxu1 %v9667_v48  ;;  %v6352_v48 = vld [vmem:[%s12773_s3 + $0x40] sm:$0xff] }
 0x4ae   : > { %9360 = vmatpush3.bf16.msra.mxu0 %v9668_v19  ;;  %v6356_v19 = vld [vmem:[%s12773_s3 + $0x60] sm:$0xff] }
 0x4af   : > { %9382 = vmatpush3.bf16.msra.mxu1 %v9669_v18  ;;  %9361 = vmatprep.subr.bf16.mxu0 %v9670_v20 }
 0x4b0   : > { %9383 = vmatprep.subr.bf16.mxu1 %v9671_v1  ;;  %v8894_v1 = vcombine.low %v12098_v61, %v12103_v35 }
 0x4b2   : > { %9362 = vmatpush3.bf16.msra.mxu0 %v9672_v23  ;;  %v6353_v23 = vld [vmem:[%s12773_s3 + $0x48] sm:$0xff] }
 0x4b3   : > { %9384 = vmatpush3.bf16.msra.mxu1 %v9673_v36  ;;  %9363 = vmatprep.subr.bf16.mxu0 %v9674_v34  ;;  %v6357_v36 = vld [vmem:[%s12773_s3 + $0x68] sm:$0xff] }
 0x4b4   : > { %9385 = vmatprep.subr.bf16.mxu1 %v9675_v24  ;;  %v8896_v24 = vcombine.low %v12108_v38, %v12113_v39  ;;  %v6368_v38 = vld [vmem:[%s12773_s3 + $0xc0] sm:$0xff] }
 0x4b5   : > { %v6372_v39 = vld [vmem:[%s12773_s3 + $0xe0] sm:$0xff] }
 0x4b6   : > { %9364 = vmatpush3.bf16.msra.mxu0 %v9676_v56  ;;  %v8903_v56 = vcombine.high %v6352_v48, %v6356_v19 }
 0x4b7   : > { %9386 = vmatpush3.bf16.msra.mxu1 %v9677_v27  ;;  %9365 = vmatprep.subr.bf16.mxu0 %v9678_v29  ;;  %v6360_v27 = vld [vmem:[%s12773_s3 + $0x80] sm:$0xff] }
 0x4b8   : > { %9387 = vmatprep.subr.bf16.mxu1 %v9679_v28  ;;  %v6364_v29 = vld [vmem:[%s12773_s3 + $0xa0] sm:$0xff]  ;;  %v8905_v28 = vcombine.high %v6353_v23, %v6357_v36 }
 0x4b9   : > { %v8911_v61 = vcombine.high %v6360_v27, %v6364_v29 }
 0x4ba   : > { %9366 = vmatpush3.bf16.msra.mxu0 %v9680_v30  ;;  %v6361_v30 = vld [vmem:[%s12773_s3 + $0x88] sm:$0xff] }
 0x4bb   : > { %9388 = vmatpush3.bf16.msra.mxu1 %v9681_v31  ;;  %9367 = vmatprep.subr.bf16.mxu0 %v9682_v32  ;;  %v6365_v31 = vld [vmem:[%s12773_s3 + $0xa8] sm:$0xff]  ;;  %v8902_v32 = vcombine.low %v6352_v48, %v6356_v19 }
 0x4bc   : > { %9389 = vmatprep.subr.bf16.mxu1 %v9683_v33  ;;  %v8904_v33 = vcombine.low %v6353_v23, %v6357_v36  ;;  %v8913_v35 = vcombine.high %v6361_v30, %v6365_v31  ;;  %v6405_v48 = vld [vmem:[%s12773_s3 + $0x1e8] sm:$0xff]  ;;  %v6408_v23 = vld [vmem:[%s12773_s3 + $0x200] sm:$0xff] }
 0x4bd   : > { %v6412_v36 = vld [vmem:[%s12773_s3 + $0x220] sm:$0xff] }
 0x4be   : > { %9368 = vmatpush3.bf16.msra.mxu0 %v9684_v44  ;;  %v6369_v44 = vld [vmem:[%s12773_s3 + $0xc8] sm:$0xff] }
 0x4bf   : > { %9390 = vmatpush3.bf16.msra.mxu1 %v9685_v6  ;;  %7154 = vmatprep.subr.bf16.mxu0 %v8895_v41  ;;  %v6373_v6 = vld [vmem:[%s12773_s3 + $0xe8] sm:$0xff]  ;;  %v8910_v41 = vcombine.low %v6360_v27, %v6364_v29  ;;  %v8959_v29 = vcombine.high %v6408_v23, %v6412_v36 }
 0x4c0   : > { %7197 = vmatprep.subr.bf16.mxu1 %v8897_v42  ;;  %v8912_v42 = vcombine.low %v6361_v30, %v6365_v31  ;;  %v6416_v30 = vld [vmem:[%s12773_s3 + $0x240] sm:$0xff] }
 0x4c1   : > { %v6420_v31 = vld [vmem:[%s12773_s3 + $0x260] sm:$0xff] }
 0x4d6   : > { %v5466_v52 = vpop.f32.mrb[44].mxu0 }
 0x4d7   : > { %v5467_v53 = vadd.f32 %v5466_v52, %v4685_v43  ;;  %v5509_v54 = vpop.f32.mrb[44].mxu1  ;;  %v5468_v40 = vpop.f32.mrb[45].mxu0  ;;  %v6377_v52 = vld [vmem:[%s12773_s3 + $0x108] sm:$0xff] }
 0x4d8   : > { %v5510_v57 = vadd.f32 %v5509_v54, %v4693_v45  ;;  %v5469_v15 = vadd.f32 %v5468_v40, %v4689_v46  ;;  %v5511_v58 = vpop.f32.mrb[45].mxu1  ;;  %v5470_v59 = vpop.f32.mrb[46].mxu0  ;;  %v8918_v54 = vcombine.low %v6368_v38, %v6372_v39  ;;  %v8920_v40 = vcombine.low %v6369_v44, %v6373_v6 }
 0x4d9   : > { %v5512_v60 = vadd.f32 %v5511_v58, %v4697_v50  ;;  %v5471_v62 = vadd.f32 %v5470_v59, %v4685_v43  ;;  %v5513_v63 = vpop.f32.mrb[46].mxu1  ;;  %v5472_v0 = vpop.f32.mrb[47].mxu0  ;;  %v5522_v5 = vmax.f32 %v5467_v53, 0.0  ;;  %v8919_v43 = vcombine.high %v6368_v38, %v6372_v39  ;;  %v6381_v53 = vld [vmem:[%s12773_s3 + $0x128] sm:$0xff]  ;;  %v6384_v58 = vld [vmem:[%s12773_s3 + $0x140] sm:$0xff] }
 0x4da   : > { %v5514_v2 = vadd.f32 %v5513_v63, %v4693_v45  ;;  %v5473_v3 = vadd.f32 %v5472_v0, %v4689_v46  ;;  %v5515_v4 = vpop.f32.mrb[47].mxu1  ;;  %v5524_v10 = vmax.f32 %v5510_v57, 0.0  ;;  %v5523_v26 = vmax.f32 %v5469_v15, 0.0  ;;  %v6376_v46 = vld [vmem:[%s12773_s3 + $0x100] sm:$0xff] }
 0x4db   : > { %v5530_v7 = vmax.f32 %v5471_v62, 0.0  ;;  %v5516_v9 = vadd.f32 %v5515_v4, %v4697_v50  ;;  %v5525_v25 = vmax.f32 %v5512_v60, 0.0  ;;  %v8921_v45 = vcombine.high %v6369_v44, %v6373_v6  ;;  %v6380_v50 = vld [vmem:[%s12773_s3 + $0x120] sm:$0xff]  ;;  %v6385_v60 = vld [vmem:[%s12773_s3 + $0x148] sm:$0xff] }
 0x4dc   : > { %v5532_v11 = vmax.f32 %v5514_v2, 0.0  ;;  %v5531_v12 = vmax.f32 %v5473_v3, 0.0  ;;  %v8927_v57 = vcombine.high %v6376_v46, %v6380_v50  ;;  %v8929_v15 = vcombine.high %v6377_v52, %v6381_v53  ;;  %v6388_v59 = vld [vmem:[%s12773_s3 + $0x160] sm:$0xff]  ;;  %v6389_v62 = vld [vmem:[%s12773_s3 + $0x168] sm:$0xff] }
 0x4dd   : > { %v5538_v13 = vpack.c.bf16 %v5530_v7, %v5522_v5  ;;  %v5533_v14 = vmax.f32 %v5516_v9, 0.0  ;;  %v8926_v63 = vcombine.low %v6376_v46, %v6380_v50  ;;  %v8928_v0 = vcombine.low %v6377_v52, %v6381_v53  ;;  %v6392_v4 = vld [vmem:[%s12773_s3 + $0x180] sm:$0xff]  ;;  %v6393_v7 = vld [vmem:[%s12773_s3 + $0x188] sm:$0xff] }
 0x4de   : > { %v5540_v18 = vpack.c.bf16 %v5532_v11, %v5524_v10  ;;  %v5539_v20 = vpack.c.bf16 %v5531_v12, %v5523_v26  ;;  %v8935_v2 = vcombine.high %v6384_v58, %v6388_v59  ;;  %v8937_v3 = vcombine.high %v6385_v60, %v6389_v62  ;;  %v6396_v5 = vld [vmem:[%s12773_s3 + $0x1a0] sm:$0xff]  ;;  %v6397_v9 = vld [vmem:[%s12773_s3 + $0x1a8] sm:$0xff] }
 0x4df   : > { %v5541_v34 = vpack.c.bf16 %v5533_v14, %v5525_v25  ;;  %v8934_v10 = vcombine.low %v6384_v58, %v6388_v59  ;;  %v8936_v26 = vcombine.low %v6385_v60, %v6389_v62  ;;  %v8943_v11 = vcombine.high %v6392_v4, %v6396_v5  ;;  %v6400_v25 = vld [vmem:[%s12773_s3 + $0x1c0] sm:$0xff]  ;;  %v6401_v14 = vld [vmem:[%s12773_s3 + $0x1c8] sm:$0xff] }
 0x4e0   : > { %6115 = vmatprep.mubr.bf16.mxu0 %v5539_v20  ;;  %v8945_v12 = vcombine.high %v6393_v7, %v6397_v9  ;;  %v8942_v19 = vcombine.low %v6392_v4, %v6396_v5  ;;  %v8952_v27 = vcombine.low %v6401_v14, %v6405_v48  ;;  %v8967_v38 = vcombine.high %v6416_v30, %v6420_v31  ;;  %v6424_v44 = vld [vmem:[%s12773_s3 + $0x280] sm:$0xff] }
 0x4e1   : > { %6313 = vmatprep.mubr.bf16.mxu1 %v5541_v34  ;;  %6116 = vmatmul.mubr.bf16.vlgmr.msra.gmra.mrb[52].mxu0 %v5538_v13  ;;  %v6404_v13 = vld [vmem:[%s12773_s3 + $0x1e0] sm:$0xff]  ;;  %v6409_v34 = vld [vmem:[%s12773_s3 + $0x208] sm:$0xff] }
 0x4e2   : > { %6314 = vmatmul.mubr.bf16.vlgmr.msra.gmra.mrb[52].mxu1 %v5540_v18  ;;  %7155 = vmatpush1.bf16.msra.mxu0 %v8894_v1  ;;  %v8944_v18 = vcombine.low %v6393_v7, %v6397_v9  ;;  %v8951_v20 = vcombine.high %v6400_v25, %v6404_v13  ;;  %v8953_v1 = vcombine.high %v6401_v14, %v6405_v48  ;;  %v6428_v6 = vld [vmem:[%s12773_s3 + $0x2a0] sm:$0xff] }
 0x4e3   : > { %7198 = vmatpush1.bf16.msra.mxu1 %v8896_v24  ;;  %7186 = vmatprep.mubr.bf16.mxu0 %v10549_v55  ;;  %v6413_v24 = vld [vmem:[%s12773_s3 + $0x228] sm:$0xff]  ;;  %v8975_v46 = vcombine.high %v6424_v44, %v6428_v6  ;;  %v6432_v52 = vld [vmem:[%s12773_s3 + $0x2c0] sm:$0xff] }
 0x4e4   : > { %7229 = vmatprep.mubr.bf16.mxu1 %v10549_v55  ;;  %7156 = vmatprep.subr.bf16.mxu0 %v8903_v56  ;;  %v8950_v56 = vcombine.low %v6400_v25, %v6404_v13  ;;  %v6436_v53 = vld [vmem:[%s12773_s3 + $0x2e0] sm:$0xff] }
 0x4e5   : > { %7199 = vmatprep.subr.bf16.mxu1 %v8905_v28  ;;  %v8961_v28 = vcombine.high %v6409_v34, %v6413_v24  ;;  %v8983_v58 = vcombine.high %v6432_v52, %v6436_v53  ;;  %v6440_v60 = vld [vmem:[%s12773_s3 + $0x300] sm:$0xff] }
 0x4e6   : > { %7157 = vmatpush1.bf16.msra.mxu0 %v8902_v32  ;;  %v6417_v32 = vld [vmem:[%s12773_s3 + $0x248] sm:$0xff]  ;;  %v6444_v62 = vld [vmem:[%s12773_s3 + $0x320] sm:$0xff] }
 0x4e7   : > { %7200 = vmatpush1.bf16.msra.mxu1 %v8904_v33  ;;  %7158 = vmatprep.subr.bf16.mxu0 %v8911_v61  ;;  %v6421_v33 = vld [vmem:[%s12773_s3 + $0x268] sm:$0xff]  ;;  %v8958_v61 = vcombine.low %v6408_v23, %v6412_v36  ;;  %v8991_v4 = vcombine.high %v6440_v60, %v6444_v62  ;;  %v6448_v7 = vld [vmem:[%s12773_s3 + $0x340] sm:$0xff] }
 0x4e8   : > { %7201 = vmatprep.subr.bf16.mxu1 %v8913_v35  ;;  %v8960_v35 = vcombine.low %v6409_v34, %v6413_v24  ;;  %v8969_v39 = vcombine.high %v6417_v32, %v6421_v33  ;;  %v6452_v9 = vld [vmem:[%s12773_s3 + $0x360] sm:$0xff] }
 0x4e9   : > { %v8999_v25 = vcombine.high %v6448_v7, %v6452_v9  ;;  %v6456_v14 = vld [vmem:[%s12773_s3 + $0x380] sm:$0xff] }
 0x4ea   : > { %7159 = vmatpush1.bf16.msra.mxu0 %v8910_v41  ;;  %v6425_v41 = vld [vmem:[%s12773_s3 + $0x288] sm:$0xff]  ;;  %v6460_v48 = vld [vmem:[%s12773_s3 + $0x3a0] sm:$0xff] }
 0x4eb   : > { %7202 = vmatpush1.bf16.msra.mxu1 %v8912_v42  ;;  %7160 = vmatprep.subr.bf16.mxu0 %v8919_v43  ;;  %v6429_v42 = vld [vmem:[%s12773_s3 + $0x2a8] sm:$0xff]  ;;  %v8966_v43 = vcombine.low %v6416_v30, %v6420_v31  ;;  %v9007_v23 = vcombine.high %v6456_v14, %v6460_v48  ;;  %v6464_v34 = vld [vmem:[%s12773_s3 + $0x3c0] sm:$0xff] }
 0x4ec   : > { %7203 = vmatprep.subr.bf16.mxu1 %v8921_v45  ;;  %v8968_v45 = vcombine.low %v6417_v32, %v6421_v33  ;;  %v8977_v50 = vcombine.high %v6425_v41, %v6429_v42  ;;  %v6468_v24 = vld [vmem:[%s12773_s3 + $0x3e0] sm:$0xff]  ;;  %v6346_v32 = vld [vmem:[%s12773_s3 + $0x10] sm:$0xff] }
 0x4ed   : > { %v9015_v30 = vcombine.high %v6464_v34, %v6468_v24  ;;  %v6350_v33 = vld [vmem:[%s12773_s3 + $0x30] sm:$0xff] }
 0x4ee   : > { %7161 = vmatpush1.bf16.msra.mxu0 %v8918_v54  ;;  %v6433_v54 = vld [vmem:[%s12773_s3 + $0x2c8] sm:$0xff] }
 0x4ef   : > { %7204 = vmatpush1.bf16.msra.mxu1 %v8920_v40  ;;  %7162 = vmatprep.subr.bf16.mxu0 %v8927_v57  ;;  %v6437_v40 = vld [vmem:[%s12773_s3 + $0x2e8] sm:$0xff]  ;;  %v8974_v57 = vcombine.low %v6424_v44, %v6428_v6  ;;  %v8899_v44 = vcombine.high %v6346_v32, %v6350_v33 }
 0x4f0   : > { %7205 = vmatprep.subr.bf16.mxu1 %v8929_v15  ;;  %v8976_v15 = vcombine.low %v6425_v41, %v6429_v42  ;;  %v8985_v59 = vcombine.high %v6433_v54, %v6437_v40  ;;  %v6354_v41 = vld [vmem:[%s12773_s3 + $0x50] sm:$0xff] }
 0x4f1   : > { %v6358_v42 = vld [vmem:[%s12773_s3 + $0x70] sm:$0xff] }
 0x4f2   : > { %7163 = vmatpush1.bf16.msra.mxu0 %v8926_v63  ;;  %v6441_v63 = vld [vmem:[%s12773_s3 + $0x308] sm:$0xff] }
 0x4f3   : > { %7206 = vmatpush1.bf16.msra.mxu1 %v8928_v0  ;;  %7164 = vmatprep.subr.bf16.mxu0 %v8935_v2  ;;  %v6445_v0 = vld [vmem:[%s12773_s3 + $0x328] sm:$0xff]  ;;  %v8982_v2 = vcombine.low %v6432_v52, %v6436_v53  ;;  %v8907_v52 = vcombine.high %v6354_v41, %v6358_v42  ;;  %v6362_v53 = vld [vmem:[%s12773_s3 + $0x90] sm:$0xff] }
 0x4f4   : > { %7207 = vmatprep.subr.bf16.mxu1 %v8937_v3  ;;  %v8984_v3 = vcombine.low %v6433_v54, %v6437_v40  ;;  %v8993_v5 = vcombine.high %v6441_v63, %v6445_v0  ;;  %v6366_v54 = vld [vmem:[%s12773_s3 + $0xb0] sm:$0xff] }
 0x4f6   : > { %7165 = vmatpush1.bf16.msra.mxu0 %v8934_v10  ;;  %v6449_v10 = vld [vmem:[%s12773_s3 + $0x348] sm:$0xff] }
 0x4f7   : > { %7208 = vmatpush1.bf16.msra.mxu1 %v8936_v26  ;;  %7166 = vmatprep.subr.bf16.mxu0 %v8943_v11  ;;  %v6453_v26 = vld [vmem:[%s12773_s3 + $0x368] sm:$0xff]  ;;  %v8990_v11 = vcombine.low %v6440_v60, %v6444_v62  ;;  %v8915_v60 = vcombine.high %v6362_v53, %v6366_v54 }
 0x4f8   : > { %7209 = vmatprep.subr.bf16.mxu1 %v8945_v12  ;;  %v8992_v12 = vcombine.low %v6441_v63, %v6445_v0  ;;  %v9001_v13 = vcombine.high %v6449_v10, %v6453_v26  ;;  %v6370_v63 = vld [vmem:[%s12773_s3 + $0xd0] sm:$0xff] }
 0x4f9   : > { %v6374_v0 = vld [vmem:[%s12773_s3 + $0xf0] sm:$0xff] }
 0x4fa   : > { %7167 = vmatpush1.bf16.msra.mxu0 %v8942_v19  ;;  %v6457_v19 = vld [vmem:[%s12773_s3 + $0x388] sm:$0xff] }
 0x4fb   : > { %7210 = vmatpush1.bf16.msra.mxu1 %v8944_v18  ;;  %7168 = vmatprep.subr.bf16.mxu0 %v8951_v20  ;;  %v6461_v18 = vld [vmem:[%s12773_s3 + $0x3a8] sm:$0xff]  ;;  %v8998_v20 = vcombine.low %v6448_v7, %v6452_v9  ;;  %v6378_v9 = vld [vmem:[%s12773_s3 + $0x110] sm:$0xff] }
 0x4fc   : > { %7211 = vmatprep.subr.bf16.mxu1 %v8953_v1  ;;  %v9000_v1 = vcombine.low %v6449_v10, %v6453_v26  ;;  %v9009_v36 = vcombine.high %v6457_v19, %v6461_v18  ;;  %v6382_v10 = vld [vmem:[%s12773_s3 + $0x130] sm:$0xff]  ;;  %v6379_v26 = vld [vmem:[%s12773_s3 + $0x118] sm:$0xff] }
 0x4fe   : > { %7169 = vmatpush1.bf16.msra.mxu0 %v8950_v56  ;;  %v6465_v56 = vld [vmem:[%s12773_s3 + $0x3c8] sm:$0xff] }
 0x4ff   : > { %7212 = vmatpush1.bf16.msra.mxu1 %v8952_v27  ;;  %7170 = vmatprep.subr.bf16.mxu0 %v8959_v29  ;;  %v6469_v27 = vld [vmem:[%s12773_s3 + $0x3e8] sm:$0xff]  ;;  %v9006_v29 = vcombine.low %v6456_v14, %v6460_v48  ;;  %v6386_v48 = vld [vmem:[%s12773_s3 + $0x150] sm:$0xff] }
 0x500   : > { %7213 = vmatprep.subr.bf16.mxu1 %v8961_v28  ;;  %v9008_v28 = vcombine.low %v6457_v19, %v6461_v18  ;;  %v9017_v31 = vcombine.high %v6465_v56, %v6469_v27  ;;  %v6390_v19 = vld [vmem:[%s12773_s3 + $0x170] sm:$0xff]  ;;  %v6387_v18 = vld [vmem:[%s12773_s3 + $0x158] sm:$0xff] }
 0x502   : > { %7171 = vmatpush1.bf16.msra.mxu0 %v8958_v61  ;;  %v6347_v61 = vld [vmem:[%s12773_s3 + $0x18] sm:$0xff] }
 0x503   : > { %7214 = vmatpush1.bf16.msra.mxu1 %v8960_v35  ;;  %7172 = vmatprep.subr.bf16.mxu0 %v8967_v38  ;;  %v6351_v35 = vld [vmem:[%s12773_s3 + $0x38] sm:$0xff]  ;;  %v9014_v38 = vcombine.low %v6464_v34, %v6468_v24  ;;  %v6394_v24 = vld [vmem:[%s12773_s3 + $0x190] sm:$0xff] }
 0x504   : > { %7215 = vmatprep.subr.bf16.mxu1 %v8969_v39  ;;  %v9016_v39 = vcombine.low %v6465_v56, %v6469_v27  ;;  %v8901_v6 = vcombine.high %v6347_v61, %v6351_v35  ;;  %v6398_v56 = vld [vmem:[%s12773_s3 + $0x1b0] sm:$0xff]  ;;  %v6395_v27 = vld [vmem:[%s12773_s3 + $0x198] sm:$0xff] }
 0x506   : > { %7173 = vmatpush1.bf16.msra.mxu0 %v8966_v43  ;;  %v8898_v43 = vcombine.low %v6346_v32, %v6350_v33  ;;  %v6402_v33 = vld [vmem:[%s12773_s3 + $0x1d0] sm:$0xff] }
 0x507   : > { %7216 = vmatpush1.bf16.msra.mxu1 %v8968_v45  ;;  %7174 = vmatprep.subr.bf16.mxu0 %v8975_v46  ;;  %v6355_v45 = vld [vmem:[%s12773_s3 + $0x58] sm:$0xff] }
 0x508   : > { %7217 = vmatprep.subr.bf16.mxu1 %v8977_v50  ;;  %v6359_v46 = vld [vmem:[%s12773_s3 + $0x78] sm:$0xff]  ;;  %v8900_v50 = vcombine.low %v6347_v61, %v6351_v35  ;;  %v6406_v61 = vld [vmem:[%s12773_s3 + $0x1f0] sm:$0xff] }
 0x509   : > { %v8909_v40 = vcombine.high %v6355_v45, %v6359_v46  ;;  %v6403_v35 = vld [vmem:[%s12773_s3 + $0x1d8] sm:$0xff] }
 0x50a   : > { %7175 = vmatpush1.bf16.msra.mxu0 %v8974_v57  ;;  %v6363_v57 = vld [vmem:[%s12773_s3 + $0x98] sm:$0xff] }
 0x50b   : > { %7218 = vmatpush1.bf16.msra.mxu1 %v8976_v15  ;;  %7176 = vmatprep.subr.bf16.mxu0 %v8983_v58  ;;  %v6367_v15 = vld [vmem:[%s12773_s3 + $0xb8] sm:$0xff]  ;;  %v8906_v58 = vcombine.low %v6354_v41, %v6358_v42  ;;  %v6410_v42 = vld [vmem:[%s12773_s3 + $0x210] sm:$0xff] }
 0x50c   : > { %7219 = vmatprep.subr.bf16.mxu1 %v8985_v59  ;;  %v8908_v59 = vcombine.low %v6355_v45, %v6359_v46  ;;  %v8917_v62 = vcombine.high %v6363_v57, %v6367_v15  ;;  %v6411_v45 = vld [vmem:[%s12773_s3 + $0x218] sm:$0xff] }
 0x50d   : > { %v6415_v46 = vld [vmem:[%s12773_s3 + $0x238] sm:$0xff] }
 0x50e   : > { %7177 = vmatpush1.bf16.msra.mxu0 %v8982_v2  ;;  %v6371_v2 = vld [vmem:[%s12773_s3 + $0xd8] sm:$0xff] }
 0x50f   : > { %7220 = vmatpush1.bf16.msra.mxu1 %v8984_v3  ;;  %7178 = vmatprep.subr.bf16.mxu0 %v8991_v4  ;;  %v6375_v3 = vld [vmem:[%s12773_s3 + $0xf8] sm:$0xff]  ;;  %v8916_v4 = vcombine.low %v6363_v57, %v6367_v15  ;;  %v6422_v57 = vld [vmem:[%s12773_s3 + $0x270] sm:$0xff] }
 0x510   : > { %7221 = vmatprep.subr.bf16.mxu1 %v8993_v5  ;;  %v8923_v5 = vcombine.high %v6370_v63, %v6374_v0  ;;  %v8925_v7 = vcombine.high %v6371_v2, %v6375_v3  ;;  %v6419_v15 = vld [vmem:[%s12773_s3 + $0x258] sm:$0xff] }
 0x512   : > { %7179 = vmatpush1.bf16.msra.mxu0 %v8990_v11  ;;  %v6383_v11 = vld [vmem:[%s12773_s3 + $0x138] sm:$0xff] }
 0x513   : > { %7222 = vmatpush1.bf16.msra.mxu1 %v8992_v12  ;;  %7180 = vmatprep.subr.bf16.mxu0 %v8999_v25  ;;  %v8922_v12 = vcombine.low %v6370_v63, %v6374_v0  ;;  %v8924_v25 = vcombine.low %v6371_v2, %v6375_v3  ;;  %v8933_v14 = vcombine.high %v6379_v26, %v6383_v11  ;;  %v6426_v0 = vld [vmem:[%s12773_s3 + $0x290] sm:$0xff]  ;;  %v6427_v3 = vld [vmem:[%s12773_s3 + $0x298] sm:$0xff] }
 0x514   : > { %7223 = vmatprep.subr.bf16.mxu1 %v9001_v13  ;;  %v8931_v13 = vcombine.high %v6378_v9, %v6382_v10  ;;  %v6430_v2 = vld [vmem:[%s12773_s3 + $0x2b0] sm:$0xff] }
 0x516   : > { %7181 = vmatpush1.bf16.msra.mxu0 %v8998_v20  ;;  %v6391_v20 = vld [vmem:[%s12773_s3 + $0x178] sm:$0xff] }
 0x517   : > { %7224 = vmatpush1.bf16.msra.mxu1 %v9000_v1  ;;  %7182 = vmatprep.subr.bf16.mxu0 %v9007_v23  ;;  %v8930_v1 = vcombine.low %v6378_v9, %v6382_v10  ;;  %v8932_v23 = vcombine.low %v6379_v26, %v6383_v11  ;;  %v8941_v34 = vcombine.high %v6387_v18, %v6391_v20  ;;  %v6434_v10 = vld [vmem:[%s12773_s3 + $0x2d0] sm:$0xff]  ;;  %v6435_v11 = vld [vmem:[%s12773_s3 + $0x2d8] sm:$0xff] }
 0x518   : > { %7225 = vmatprep.subr.bf16.mxu1 %v9009_v36  ;;  %v8939_v36 = vcombine.high %v6386_v48, %v6390_v19  ;;  %v6438_v26 = vld [vmem:[%s12773_s3 + $0x2f0] sm:$0xff] }
 0x51a   : > { %7183 = vmatpush1.bf16.msra.mxu0 %v9006_v29  ;;  %v6399_v29 = vld [vmem:[%s12773_s3 + $0x1b8] sm:$0xff] }
 0x51b   : > { %7226 = vmatpush1.bf16.msra.mxu1 %v9008_v28  ;;  %7184 = vmatprep.subr.bf16.mxu0 %v9015_v30  ;;  %v8938_v28 = vcombine.low %v6386_v48, %v6390_v19  ;;  %v8940_v30 = vcombine.low %v6387_v18, %v6391_v20  ;;  %v8949_v32 = vcombine.high %v6395_v27, %v6399_v29  ;;  %v6442_v19 = vld [vmem:[%s12773_s3 + $0x310] sm:$0xff]  ;;  %v6443_v20 = vld [vmem:[%s12773_s3 + $0x318] sm:$0xff] }
 0x51c   : > { %7227 = vmatprep.subr.bf16.mxu1 %v9017_v31  ;;  %v8947_v31 = vcombine.high %v6394_v24, %v6398_v56  ;;  %v6446_v18 = vld [vmem:[%s12773_s3 + $0x330] sm:$0xff] }
 0x51e   : > { %7185 = vmatpush1.bf16.msra.mxu0 %v9014_v38  ;;  %v6407_v38 = vld [vmem:[%s12773_s3 + $0x1f8] sm:$0xff] }
 0x51f   : > { %7228 = vmatpush1.bf16.msra.mxu1 %v9016_v39  ;;  %7240 = vmatprep.subr.bf16.mxu0 %v8899_v44  ;;  %v8946_v39 = vcombine.low %v6394_v24, %v6398_v56  ;;  %v8948_v44 = vcombine.low %v6395_v27, %v6399_v29  ;;  %v8957_v41 = vcombine.high %v6403_v35, %v6407_v38  ;;  %v6450_v56 = vld [vmem:[%s12773_s3 + $0x350] sm:$0xff]  ;;  %v6451_v29 = vld [vmem:[%s12773_s3 + $0x358] sm:$0xff] }
 0x520   : > { %7283 = vmatprep.subr.bf16.mxu1 %v8901_v6  ;;  %v8955_v6 = vcombine.high %v6402_v33, %v6406_v61  ;;  %v6454_v27 = vld [vmem:[%s12773_s3 + $0x370] sm:$0xff] }
 0x521   : > { %7187 = vmatmul.mubr.bf16.vlgmr.msra.gmra.mrb[56].mxu0 %v10544_v51 }
 0x522   : > { %7230 = vmatmul.mubr.bf16.vlgmr.msra.gmra.mrb[56].mxu1 %v10544_v51  ;;  %7241 = vmatpush1.bf16.msra.mxu0 %v8898_v43  ;;  %v6414_v43 = vld [vmem:[%s12773_s3 + $0x230] sm:$0xff] }
 0x523   : > { %7272 = vmatprep.mubr.bf16.mxu0 %v10549_v55  ;;  %7284 = vmatpush1.bf16.msra.mxu1 %v8900_v50  ;;  %v8954_v50 = vcombine.low %v6402_v33, %v6406_v61  ;;  %v6458_v61 = vld [vmem:[%s12773_s3 + $0x390] sm:$0xff] }
 0x524   : > { %7315 = vmatprep.mubr.bf16.mxu1 %v10549_v55  ;;  %7242 = vmatprep.subr.bf16.mxu0 %v8907_v52  ;;  %v8914_v55 = vcombine.low %v6362_v53, %v6366_v54  ;;  %v8956_v52 = vcombine.low %v6403_v35, %v6407_v38  ;;  %v8963_v53 = vcombine.high %v6410_v42, %v6414_v43  ;;  %v6462_v35 = vld [vmem:[%s12773_s3 + $0x3b0] sm:$0xff]  ;;  %v6459_v38 = vld [vmem:[%s12773_s3 + $0x398] sm:$0xff] }
 0x525   : > { %7285 = vmatprep.subr.bf16.mxu1 %v8909_v40  ;;  %v8965_v54 = vcombine.high %v6411_v45, %v6415_v46  ;;  %v6418_v40 = vld [vmem:[%s12773_s3 + $0x250] sm:$0xff] }
 0x526   : > { %7243 = vmatpush1.bf16.msra.mxu0 %v8906_v58  ;;  %v6423_v58 = vld [vmem:[%s12773_s3 + $0x278] sm:$0xff] }
 0x527   : > { %7286 = vmatpush1.bf16.msra.mxu1 %v8908_v59  ;;  %7244 = vmatprep.subr.bf16.mxu0 %v8915_v60  ;;  %v8962_v59 = vcombine.low %v6410_v42, %v6414_v43  ;;  %v8964_v60 = vcombine.low %v6411_v45, %v6415_v46  ;;  %v8973_v63 = vcombine.high %v6419_v15, %v6423_v58  ;;  %v6466_v43 = vld [vmem:[%s12773_s3 + $0x3d0] sm:$0xff]  ;;  %v6467_v46 = vld [vmem:[%s12773_s3 + $0x3d8] sm:$0xff] }
 0x528   : > { %7287 = vmatprep.subr.bf16.mxu1 %v8917_v62  ;;  %v8971_v62 = vcombine.high %v6418_v40, %v6422_v57  ;;  %v6470_v45 = vld [vmem:[%s12773_s3 + $0x3f0] sm:$0xff] }
 0x52a   : > { %7245 = vmatpush1.bf16.msra.mxu0 %v8914_v55  ;;  %v6431_v55 = vld [vmem:[%s12773_s3 + $0x2b8] sm:$0xff] }
 0x52b   : > { %7288 = vmatpush1.bf16.msra.mxu1 %v8916_v4  ;;  %7246 = vmatprep.subr.bf16.mxu0 %v8923_v5  ;;  %v8970_v4 = vcombine.low %v6418_v40, %v6422_v57  ;;  %v8972_v5 = vcombine.low %v6419_v15, %v6423_v58  ;;  %v8981_v9 = vcombine.high %v6427_v3, %v6431_v55  ;;  %v9686_v58 = vld [vmem:[%s12775_s5 + $0x40] sm:$0xff]  }
 0x52c   : > { %7289 = vmatprep.subr.bf16.mxu1 %v8925_v7  ;;  %v8979_v7 = vcombine.high %v6426_v0, %v6430_v2  ;;  %v9018_v57 = vcombine.low %v6466_v43, %v6470_v45 }
 0x52e   : > { %7247 = vmatpush1.bf16.msra.mxu0 %v8922_v12  ;;  %v6439_v12 = vld [vmem:[%s12773_s3 + $0x2f8] sm:$0xff] }
 0x52f   : > { %7290 = vmatpush1.bf16.msra.mxu1 %v8924_v25  ;;  %7248 = vmatprep.subr.bf16.mxu0 %v8931_v13  ;;  %v8978_v25 = vcombine.low %v6426_v0, %v6430_v2  ;;  %v8980_v13 = vcombine.low %v6427_v3, %v6431_v55  ;;  %v8989_v48 = vcombine.high %v6435_v11, %v6439_v12  ;;  %v9691_v0 = vld [vmem:[%s12775_s5 + $0x48] sm:$0xff]   ;;  %v9694_v55 = vld [vmem:[%s12775_s5 + $0x50] sm:$0xff]  }
 0x530   : > { %7291 = vmatprep.subr.bf16.mxu1 %v8933_v14  ;;  %v8987_v14 = vcombine.high %v6434_v10, %v6438_v26  ;;  %v9692_v2 = vld [vmem:[%s12775_s5 + $0x8] sm:$0xff]  }
 0x531   : > { %v9693_v3 = vld [vmem:[%s12775_s5 + $0x8] sm:$0xff]  }
 0x532   : > { %7249 = vmatpush1.bf16.msra.mxu0 %v8930_v1  ;;  %v6447_v1 = vld [vmem:[%s12773_s3 + $0x338] sm:$0xff] }
 0x533   : > { %7292 = vmatpush1.bf16.msra.mxu1 %v8932_v23  ;;  %7250 = vmatprep.subr.bf16.mxu0 %v8939_v36  ;;  %v8986_v23 = vcombine.low %v6434_v10, %v6438_v26  ;;  %v8988_v36 = vcombine.low %v6435_v11, %v6439_v12  ;;  %v8997_v24 = vcombine.high %v6443_v20, %v6447_v1  ;;  %v9700_v10 = vld [vmem:[%s12775_s5 + $0x18] sm:$0xff]   ;;  %v9702_v11 = vld [vmem:[%s12775_s5 + $0x60] sm:$0xff]  }
 0x534   : > { %7293 = vmatprep.subr.bf16.mxu1 %v8941_v34  ;;  %v8995_v34 = vcombine.high %v6442_v19, %v6446_v18  ;;  %v9701_v26 = vld [vmem:[%s12775_s5 + $0x18] sm:$0xff]   ;;  %v9703_v12 = vld [vmem:[%s12775_s5 + $0x60] sm:$0xff]  }
 0x536   : > { %7251 = vmatpush1.bf16.msra.mxu0 %v8938_v28  ;;  %v6455_v28 = vld [vmem:[%s12773_s3 + $0x378] sm:$0xff] }
 0x537   : > { %7294 = vmatpush1.bf16.msra.mxu1 %v8940_v30  ;;  %7252 = vmatprep.subr.bf16.mxu0 %v8947_v31  ;;  %v8994_v30 = vcombine.low %v6442_v19, %v6446_v18  ;;  %v8996_v31 = vcombine.low %v6443_v20, %v6447_v1  ;;  %v9005_v33 = vcombine.high %v6451_v29, %v6455_v28  ;;  %v9708_v18 = vld [vmem:[%s12775_s5 + $0x28] sm:$0xff]  }
 0x538   : > { %7295 = vmatprep.subr.bf16.mxu1 %v8949_v32  ;;  %v9003_v32 = vcombine.high %v6450_v56, %v6454_v27  ;;  %v9709_v20 = vld [vmem:[%s12775_s5 + $0x28] sm:$0xff]  }
 0x53a   : > { %7253 = vmatpush1.bf16.msra.mxu0 %v8946_v39  ;;  %v6463_v39 = vld [vmem:[%s12773_s3 + $0x3b8] sm:$0xff] }
 0x53b   : > { %7296 = vmatpush1.bf16.msra.mxu1 %v8948_v44  ;;  %7254 = vmatprep.subr.bf16.mxu0 %v8955_v6  ;;  %v9002_v44 = vcombine.low %v6450_v56, %v6454_v27  ;;  %v9004_v6 = vcombine.low %v6451_v29, %v6455_v28  ;;  %v9013_v42 = vcombine.high %v6459_v38, %v6463_v39 }
 0x53c   : > { %7297 = vmatprep.subr.bf16.mxu1 %v8957_v41  ;;  %v9011_v41 = vcombine.high %v6458_v61, %v6462_v35 }
 0x53e   : > { %7255 = vmatpush1.bf16.msra.mxu0 %v8954_v50  ;;  %v6471_v50 = vld [vmem:[%s12773_s3 + $0x3f8] sm:$0xff] }
 0x53f   : > { %7298 = vmatpush1.bf16.msra.mxu1 %v8956_v52  ;;  %7256 = vmatprep.subr.bf16.mxu0 %v8963_v53  ;;  %v9010_v52 = vcombine.low %v6458_v61, %v6462_v35  ;;  %v9012_v53 = vcombine.low %v6459_v38, %v6463_v39  ;;  %v9021_v40 = vcombine.high %v6467_v46, %v6471_v50  ;;  %v9712_v35 = vld [vmem:[%s12775_s5 + $0x30] sm:$0xff]  }
 0x540   : > { %7299 = vmatprep.subr.bf16.mxu1 %v8965_v54  ;;  %v9019_v54 = vcombine.high %v6466_v43, %v6470_v45  ;;  %v9020_v15 = vcombine.low %v6467_v46, %v6471_v50  ;;  %v9713_v38 = vld [vmem:[%s12775_s5 + $0x30] sm:$0xff]   ;;  %v9714_v45 = vld [vmem:[%s12775_s5 + $0x78] sm:$0xff]  }
 0x541   : > { %v9715_v46 = vld [vmem:[%s12775_s5 + $0x78] sm:$0xff]  }
 0x542   : > { %7257 = vmatpush1.bf16.msra.mxu0 %v8962_v59  ;;  %v9687_v59 = vld [vmem:[%s12775_s5 + $0x40] sm:$0xff]  }
 0x543   : > { %7300 = vmatpush1.bf16.msra.mxu1 %v8964_v60  ;;  %7258 = vmatprep.subr.bf16.mxu0 %v8971_v62  ;;  %v9688_v60 = vld [vmem:[%s12775_s5] sm:$0xff]  }
 0x544   : > { %7301 = vmatprep.subr.bf16.mxu1 %v8973_v63  ;;  %v9689_v62 = vld [vmem:[%s12775_s5] sm:$0xff]   ;;  %v9690_v63 = vld [vmem:[%s12775_s5 + $0x48] sm:$0xff]  }
 0x546   : > { %7259 = vmatpush1.bf16.msra.mxu0 %v8970_v4  ;;  %v9696_v4 = vld [vmem:[%s12775_s5 + $0x10] sm:$0xff]  }
 0x547   : > { %7302 = vmatpush1.bf16.msra.mxu1 %v8972_v5  ;;  %7260 = vmatprep.subr.bf16.mxu0 %v8979_v7  ;;  %v9697_v5 = vld [vmem:[%s12775_s5 + $0x10] sm:$0xff]   ;;  %v9698_v7 = vld [vmem:[%s12775_s5 + $0x58] sm:$0xff]  }
 0x548   : > { %7303 = vmatprep.subr.bf16.mxu1 %v8981_v9  ;;  %v9699_v9 = vld [vmem:[%s12775_s5 + $0x58] sm:$0xff]  }
 0x54a   : > { %7261 = vmatpush1.bf16.msra.mxu0 %v8978_v25  ;;  %v9704_v25 = vld [vmem:[%s12775_s5 + $0x20] sm:$0xff]  }
 0x54b   : > { %7304 = vmatpush1.bf16.msra.mxu1 %v8980_v13  ;;  %7262 = vmatprep.subr.bf16.mxu0 %v8987_v14  ;;  %v9705_v13 = vld [vmem:[%s12775_s5 + $0x20] sm:$0xff]   ;;  %v9706_v14 = vld [vmem:[%s12775_s5 + $0x68] sm:$0xff]  }
 0x54c   : > { %7305 = vmatprep.subr.bf16.mxu1 %v8989_v48  ;;  %v9707_v48 = vld [vmem:[%s12775_s5 + $0x68] sm:$0xff]  }
 0x54e   : > { %7263 = vmatpush1.bf16.msra.mxu0 %v8986_v23  ;;  %v12592_v23 = vld [vmem:[%s12776_s6] ss:$0 sm:$0xff] }
 0x54f   : > { %7306 = vmatpush1.bf16.msra.mxu1 %v8988_v36  ;;  %7264 = vmatprep.subr.bf16.mxu0 %v8995_v34 }
 0x550   : > { %7307 = vmatprep.subr.bf16.mxu1 %v8997_v24 }
 0x552   : > { %7265 = vmatpush1.bf16.msra.mxu0 %v8994_v30  ;;  %v9710_v30 = vld [vmem:[%s12775_s5 + $0x70] sm:$0xff]  }
 0x553   : > { %7308 = vmatpush1.bf16.msra.mxu1 %v8996_v31  ;;  %7266 = vmatprep.subr.bf16.mxu0 %v9003_v32  ;;  %v9711_v31 = vld [vmem:[%s12775_s5 + $0x70] sm:$0xff]  }
 0x554   : > { %7309 = vmatprep.subr.bf16.mxu1 %v9005_v33 }
 0x556   : > { %7267 = vmatpush1.bf16.msra.mxu0 %v9002_v44 }
 0x557   : > { %7310 = vmatpush1.bf16.msra.mxu1 %v9004_v6  ;;  %7268 = vmatprep.subr.bf16.mxu0 %v9011_v41 }
 0x558   : > { %7311 = vmatprep.subr.bf16.mxu1 %v9013_v42 }
 0x55a   : > { %7269 = vmatpush1.bf16.msra.mxu0 %v9010_v52 }
 0x55b   : > { %7312 = vmatpush1.bf16.msra.mxu1 %v9012_v53  ;;  %7270 = vmatprep.subr.bf16.mxu0 %v9019_v54  ;;  %v9716_v53 = vld [vmem:[%s12775_s5 + $0x38] sm:$0xff]  }
 0x55c   : > { %7313 = vmatprep.subr.bf16.mxu1 %v9021_v40  ;;  %v9717_v54 = vld [vmem:[%s12775_s5 + $0x38] sm:$0xff]  }
 0x55e   : > { %7271 = vmatpush1.bf16.msra.mxu0 %v9018_v57 }
 0x55f   : > { %7314 = vmatpush1.bf16.msra.mxu1 %v9020_v15  ;;  %9397 = vmatprep.subr.bf16.mxu0 %v9686_v58 }
 0x560   : > { %9419 = vmatprep.subr.bf16.mxu1 %v9687_v59  ;;  %v9718_v59 = vld [vmem:[%s12775_s5 + $0x40] sm:$0xff]  }
 0x561   : > { %7273 = vmatmul.mubr.bf16.vlgmr.msra.gmra.mrb[60].mxu0 %v10544_v51 }
 0x562   : > { %7316 = vmatmul.mubr.bf16.vlgmr.msra.gmra.mrb[60].mxu1 %v10544_v51  ;;  %9398 = vmatpush3.bf16.msra.mxu0 %v9688_v60  ;;  %v9695_v51 = vld [vmem:[%s12775_s5 + $0x50] sm:$0xff]   ;;  %v9719_v60 = vld [vmem:[%s12775_s5 + $0x40] sm:$0xff]  }
 0x563   : > { %9420 = vmatpush3.bf16.msra.mxu1 %v9689_v62  ;;  %9399 = vmatprep.subr.bf16.mxu0 %v9690_v63 }
 0x564   : > { %9421 = vmatprep.subr.bf16.mxu1 %v9691_v0 }
 0x566   : > { %9400 = vmatpush3.bf16.msra.mxu0 %v9692_v2 }
 0x567   : > { %9422 = vmatpush3.bf16.msra.mxu1 %v9693_v3  ;;  %9401 = vmatprep.subr.bf16.mxu0 %v9694_v55 }
 0x568   : > { %9423 = vmatprep.subr.bf16.mxu1 %v9695_v51 }
 0x56a   : > { %9402 = vmatpush3.bf16.msra.mxu0 %v9696_v4 }
 0x56b   : > { %9424 = vmatpush3.bf16.msra.mxu1 %v9697_v5  ;;  %9403 = vmatprep.subr.bf16.mxu0 %v9698_v7 }
 0x56c   : > { %9425 = vmatprep.subr.bf16.mxu1 %v9699_v9 }
 0x56e   : > { %9404 = vmatpush3.bf16.msra.mxu0 %v9700_v10 }
 0x56f   : > { %9426 = vmatpush3.bf16.msra.mxu1 %v9701_v26  ;;  %9405 = vmatprep.subr.bf16.mxu0 %v9702_v11 }
 0x570   : > { %9427 = vmatprep.subr.bf16.mxu1 %v9703_v12 }
 0x572   : > { %9406 = vmatpush3.bf16.msra.mxu0 %v9704_v25 }
 0x573   : > { %9428 = vmatpush3.bf16.msra.mxu1 %v9705_v13  ;;  %9407 = vmatprep.subr.bf16.mxu0 %v9706_v14 }
 0x574   : > { %v9325_v19 = vpop.f32.mrb[48].mxu0  ;;  %9429 = vmatprep.subr.bf16.mxu1 %v9707_v48 }
 0x575   : > { %v9347_v1 = vpop.f32.mrb[48].mxu1  ;;  %v9326_v36 = vpop.f32.mrb[49].mxu0 }
 0x576   : > { %v9327_v34 = vadd.f32 %v9326_v36, %v9325_v19  ;;  %v9348_v24 = vpop.f32.mrb[49].mxu1  ;;  %v9328_v56 = vpop.f32.mrb[50].mxu0  ;;  %9408 = vmatpush3.bf16.msra.mxu0 %v9708_v18 }
 0x577   : > { %v9349_v27 = vadd.f32 %v9348_v24, %v9347_v1  ;;  %v9350_v29 = vpop.f32.mrb[50].mxu1  ;;  %v9329_v28 = vpop.f32.mrb[51].mxu0  ;;  %9430 = vmatpush3.bf16.msra.mxu1 %v9709_v20  ;;  %9409 = vmatprep.subr.bf16.mxu0 %v9710_v30 }
 0x578   : > { %v5722_v32 = vadd.f32 %v9327_v34, %v12592_v23  ;;  %v9330_v33 = vadd.f32 %v9329_v28, %v9328_v56  ;;  %v9351_v61 = vpop.f32.mrb[51].mxu1  ;;  %9431 = vmatprep.subr.bf16.mxu1 %v9711_v31 }
 0x579   : > { %v5920_v39 = vadd.f32 %v9349_v27, %v12592_v23  ;;  %v9352_v44 = vadd.f32 %v9351_v61, %v9350_v29 }
 0x57a   : > { %v5728_v6 = vsub.f32 0.0, %v5722_v32  ;;  %v5725_v41 = vadd.f32 %v9330_v33, %v12592_v23  ;;  %9410 = vmatpush3.bf16.msra.mxu0 %v9712_v35 }
 0x57b   : > { %v5926_v42 = vsub.f32 0.0, %v5920_v39  ;;  %v5923_v43 = vadd.f32 %v9352_v44, %v12592_v23  ;;  %9432 = vmatpush3.bf16.msra.mxu1 %v9713_v38  ;;  %9411 = vmatprep.subr.bf16.mxu0 %v9714_v45 }
 0x57c   : > { %v5730_v50 = vmul.f32 1.442695, %v5728_v6  ;;  %v5729_v52 = vsub.f32 0.0, %v5725_v41  ;;  %9433 = vmatprep.subr.bf16.mxu1 %v9715_v46 }
 0x57d   : > { %v5928_v40 = vmul.f32 1.442695, %v5926_v42  ;;  %v5927_v57 = vsub.f32 0.0, %v5923_v43 }
 0x57e   : > { %9814 = vpow2.f32 %v5730_v50  ;;  %v5732_v15 = vmul.f32 1.442695, %v5729_v52  ;;  %9412 = vmatpush3.bf16.msra.mxu0 %v9716_v53 }
 0x57f   : > { %9816 = vpow2.f32 %v5928_v40  ;;  %v5930_v58 = vmul.f32 1.442695, %v5927_v57  ;;  %9434 = vmatpush3.bf16.msra.mxu1 %v9717_v54  ;;  %9441 = vmatprep.subr.bf16.mxu0 %v9718_v59 }
 0x580   : > { %9818 = vpow2.f32 %v5732_v15  ;;  %9463 = vmatprep.subr.bf16.mxu1 %v9719_v60 }
 0x581   : > { %9820 = vpow2.f32 %v5930_v58 }
 0x588   : > { %v9815_v62 = vpop.eup %9814 }
 0x589   : > { %v9817_v63 = vpop.eup %9816  ;;  %v5734_v0 = vadd.f32 1.0, %v9815_v62 }
 0x58a   : > { %v9819_v2 = vpop.eup %9818  ;;  %v5932_v3 = vadd.f32 1.0, %v9817_v63  ;;  %v12643_v63 = vld [vmem:[%s12774_s4] sm:$0xff] }
 0x58b   : > { %v9821_v55 = vpop.eup %9820  ;;  %9822 = vrcp.f32 %v5734_v0  ;;  %v5735_v51 = vadd.f32 1.0, %v9819_v2  ;;  %v6477_v0 = vrot.slane %v12643_v63, %v10368_v16  ;;  %v6485_v2 = vrot.slane %v12643_v63, %v10383_v21 }
 0x58c   : > { %9824 = vrcp.f32 %v5932_v3  ;;  %v5933_v4 = vadd.f32 1.0, %v9821_v55  ;;  %v6481_v3 = vrot.slane %v12643_v63, %v10371_v17  ;;  %v6489_v55 = vrot.slane %v12643_v63, %v10386_v22 }
 0x58d   : > { %9826 = vrcp.f32 %v5735_v51 }
 0x58e   : > { %9828 = vrcp.f32 %v5933_v4 }
 0x595   : > { %v9823_v5 = vpop.eup %9822 }
 0x596   : > { %v9825_v7 = vpop.eup %9824  ;;  %v9117_v9 = vpack.c.bf16 %v9823_v5, %v9823_v5 }
 0x597   : > { %v9827_v10 = vpop.eup %9826  ;;  %v9119_v26 = vpack.c.bf16 %v9825_v7, %v9825_v7 }
 0x598   : > { %v9829_v11 = vpop.eup %9828  ;;  %5746 = vst [vmem:[%s11342_s12 + $0x20] sm:$0xf] %v9117_v9  ;;  %v9118_v12 = vpack.c.bf16 %v9827_v10, %v9827_v10 }
 0x599   : > { %5944 = vst [vmem:[%s11342_s12 + $0x24] sm:$0xf] %v9119_v26  ;;  %v9120_v25 = vpack.c.bf16 %v9829_v11, %v9829_v11 }
 0x59a   : > { %5747 = vst [vmem:[%s11342_s12 + $0x60] sm:$0xf] %v9118_v12 }
 0x59b   : > { %5945 = vst [vmem:[%s11342_s12 + $0x64] sm:$0xf] %v9120_v25 }
 0x5b4   : > { %v9369_v13 = vpop.f32.mrb[52].mxu0 }
 0x5b5   : > { %v9391_v14 = vpop.f32.mrb[52].mxu1  ;;  %v9370_v48 = vpop.f32.mrb[53].mxu0 }
 0x5b6   : > { %v9371_v19 = vadd.f32 %v9370_v48, %v9369_v13  ;;  %v9392_v18 = vpop.f32.mrb[53].mxu1  ;;  %v9372_v20 = vpop.f32.mrb[54].mxu0 }
 0x5b7   : > { %v9393_v1 = vadd.f32 %v9392_v18, %v9391_v14  ;;  %v9394_v36 = vpop.f32.mrb[54].mxu1  ;;  %v9373_v34 = vpop.f32.mrb[55].mxu0 }
 0x5b8   : > { %v6118_v24 = vadd.f32 %v9371_v19, %v12592_v23  ;;  %v9374_v56 = vadd.f32 %v9373_v34, %v9372_v20  ;;  %v9395_v27 = vpop.f32.mrb[55].mxu1 }
 0x5b9   : > { %v6316_v29 = vadd.f32 %v9393_v1, %v12592_v23  ;;  %v9396_v28 = vadd.f32 %v9395_v27, %v9394_v36 }
 0x5ba   : > { %v6124_v30 = vsub.f32 0.0, %v6118_v24  ;;  %v6121_v31 = vadd.f32 %v9374_v56, %v12592_v23 }
 0x5bb   : > { %v6322_v32 = vsub.f32 0.0, %v6316_v29  ;;  %v6319_v33 = vadd.f32 %v9396_v28, %v12592_v23  ;;  %v9720_v28 = vld [vmem:[%s12775_s5] sm:$0xff]  }
 0x5bc   : > { %v6126_v61 = vmul.f32 1.442695, %v6124_v30  ;;  %v6125_v35 = vsub.f32 0.0, %v6121_v31  ;;  %v9721_v31 = vld [vmem:[%s12775_s5] sm:$0xff]  }
 0x5bd   : > { %v6324_v38 = vmul.f32 1.442695, %v6322_v32  ;;  %v6323_v39 = vsub.f32 0.0, %v6319_v33  ;;  %v9722_v32 = vld [vmem:[%s12775_s5 + $0x48] sm:$0xff]  }
 0x5be   : > { %9830 = vpow2.f32 %v6126_v61  ;;  %v6128_v44 = vmul.f32 1.442695, %v6125_v35  ;;  %v9723_v33 = vld [vmem:[%s12775_s5 + $0x48] sm:$0xff]  }
 0x5bf   : > { %9832 = vpow2.f32 %v6324_v38  ;;  %v6326_v6 = vmul.f32 1.442695, %v6323_v39  ;;  %v9724_v61 = vld [vmem:[%s12775_s5 + $0x8] sm:$0xff]   ;;  %v9726_v38 = vld [vmem:[%s12775_s5 + $0x50] sm:$0xff]  }
 0x5c0   : > { %9834 = vpow2.f32 %v6128_v44  ;;  %v9725_v35 = vld [vmem:[%s12775_s5 + $0x8] sm:$0xff]   ;;  %v9727_v39 = vld [vmem:[%s12775_s5 + $0x50] sm:$0xff]  }
 0x5c1   : > { %9836 = vpow2.f32 %v6326_v6  ;;  %v9728_v44 = vld [vmem:[%s12775_s5 + $0x10] sm:$0xff]  }
 0x5c2   : > { %v9729_v6 = vld [vmem:[%s12775_s5 + $0x10] sm:$0xff]  }
 0x5c8   : > { %v9831_v41 = vpop.eup %9830 }
 0x5c9   : > { %v9833_v42 = vpop.eup %9832  ;;  %v6130_v43 = vadd.f32 1.0, %v9831_v41  ;;  %v9730_v41 = vld [vmem:[%s12775_s5 + $0x58] sm:$0xff]  }
 0x5ca   : > { %v9835_v45 = vpop.eup %9834  ;;  %v6328_v46 = vadd.f32 1.0, %v9833_v42  ;;  %v9731_v42 = vld [vmem:[%s12775_s5 + $0x58] sm:$0xff]  }
 0x5cb   : > { %v9837_v50 = vpop.eup %9836  ;;  %9838 = vrcp.f32 %v6130_v43  ;;  %v6131_v52 = vadd.f32 1.0, %v9835_v45  ;;  %v9732_v43 = vld [vmem:[%s12775_s5 + $0x18] sm:$0xff]  }
 0x5cc   : > { %9840 = vrcp.f32 %v6328_v46  ;;  %v6329_v53 = vadd.f32 1.0, %v9837_v50  ;;  %v9733_v45 = vld [vmem:[%s12775_s5 + $0x18] sm:$0xff]   ;;  %v9734_v46 = vld [vmem:[%s12775_s5 + $0x60] sm:$0xff]  }
 0x5cd   : > { %9842 = vrcp.f32 %v6131_v52  ;;  %v9735_v50 = vld [vmem:[%s12775_s5 + $0x60] sm:$0xff]  }
 0x5ce   : > { %9844 = vrcp.f32 %v6329_v53  ;;  %v9736_v52 = vld [vmem:[%s12775_s5 + $0x20] sm:$0xff]  }
 0x5cf   : > { %v9737_v53 = vld [vmem:[%s12775_s5 + $0x20] sm:$0xff]  }
 0x5d5   : > { %v9839_v54 = vpop.eup %9838 }
 0x5d6   : > { %v9841_v40 = vpop.eup %9840  ;;  %v9121_v57 = vpack.c.bf16 %v9839_v54, %v9839_v54  ;;  %v9738_v54 = vld [vmem:[%s12775_s5 + $0x68] sm:$0xff]  }
 0x5d7   : > { %v9843_v15 = vpop.eup %9842  ;;  %v9123_v58 = vpack.c.bf16 %v9841_v40, %v9841_v40  ;;  %v9739_v40 = vld [vmem:[%s12775_s5 + $0x68] sm:$0xff]  }
 0x5d8   : > { %v9845_v59 = vpop.eup %9844  ;;  %6142 = vst [vmem:[%s11342_s12 + $0x28] sm:$0xf] %v9121_v57  ;;  %v9122_v60 = vpack.c.bf16 %v9843_v15, %v9843_v15  ;;  %v9740_v57 = vld [vmem:[%s12775_s5 + $0x28] sm:$0xff]  }
 0x5d9   : > { %6340 = vst [vmem:[%s11342_s12 + $0x2c] sm:$0xf] %v9123_v58  ;;  %v9124_v62 = vpack.c.bf16 %v9845_v59, %v9845_v59  ;;  %v9741_v15 = vld [vmem:[%s12775_s5 + $0x28] sm:$0xff]   ;;  %v9742_v58 = vld [vmem:[%s12775_s5 + $0x70] sm:$0xff]  }
 0x5da   : > { %6143 = vst [vmem:[%s11342_s12 + $0x68] sm:$0xf] %v9122_v60  ;;  %v9743_v59 = vld [vmem:[%s12775_s5 + $0x70] sm:$0xff]  }
 0x5db   : > { %6341 = vst [vmem:[%s11342_s12 + $0x6c] sm:$0xf] %v9124_v62  ;;  %v9744_v60 = vld [vmem:[%s12775_s5 + $0x30] sm:$0xff]  }
 0x5dc   : > { %v9745_v62 = vld [vmem:[%s12775_s5 + $0x30] sm:$0xff]  }
 0x5f4   : > { %v7188_v51 = vpop.f32.mrb[56].mxu0 }
 0x5f5   : > { %v7189_v4 = vadd.f32 %v7188_v51, %v6477_v0  ;;  %v7231_v5 = vpop.f32.mrb[56].mxu1  ;;  %v7190_v7 = vpop.f32.mrb[57].mxu0  ;;  %v6493_v51 = vrot.slane %v12643_v63, %v10464_v8 }
 0x5f6   : > { %v7232_v9 = vadd.f32 %v7231_v5, %v6485_v2  ;;  %v7191_v10 = vadd.f32 %v7190_v7, %v6481_v3  ;;  %v7233_v26 = vpop.f32.mrb[57].mxu1  ;;  %v7192_v11 = vpop.f32.mrb[58].mxu0  ;;  %v6497_v5 = vrot.slane %v12643_v63, %v10476_v37  ;;  %v6505_v7 = vrot.slane %v12643_v63, %v10498_v49 }
 0x5f7   : > { %v7234_v12 = vadd.f32 %v7233_v26, %v6489_v55  ;;  %v7193_v25 = vadd.f32 %v7192_v11, %v6477_v0  ;;  %v7235_v16 = vpop.f32.mrb[58].mxu1  ;;  %v7194_v13 = vpop.f32.mrb[59].mxu0  ;;  %v7326_v19 = vmax.f32 %v7189_v4, 0.0  ;;  %v9746_v0 = vld [vmem:[%s12775_s5 + $0x78] sm:$0xff]   ;;  %v6501_v4 = vrot.slane %v12643_v63, %v10493_v47 }
 0x5f8   : > { %v7236_v14 = vadd.f32 %v7235_v16, %v6485_v2  ;;  %v7195_v21 = vadd.f32 %v7194_v13, %v6481_v3  ;;  %v7237_v48 = vpop.f32.mrb[59].mxu1  ;;  %v7328_v20 = vmax.f32 %v7232_v9, 0.0  ;;  %v7327_v22 = vmax.f32 %v7191_v10, 0.0  ;;  %v9747_v2 = vld [vmem:[%s12775_s5 + $0x78] sm:$0xff]  }
 0x5f9   : > { %v7334_v17 = vmax.f32 %v7193_v25, 0.0  ;;  %v7238_v18 = vadd.f32 %v7237_v48, %v6489_v55  ;;  %v7329_v34 = vmax.f32 %v7234_v12, 0.0  ;;  %v9748_v3 = vld [vmem:[%s12775_s5 + $0x38] sm:$0xff]  }
 0x5fa   : > { %v7336_v1 = vmax.f32 %v7236_v14, 0.0  ;;  %v7335_v36 = vmax.f32 %v7195_v21, 0.0  ;;  %v9749_v55 = vld [vmem:[%s12775_s5 + $0x38] sm:$0xff]  }
 0x5fb   : > { %v7342_v24 = vpack.c.bf16 %v7334_v17, %v7326_v19  ;;  %v7337_v56 = vmax.f32 %v7238_v18, 0.0 }
 0x5fc   : > { %v7344_v27 = vpack.c.bf16 %v7336_v1, %v7328_v20  ;;  %v7343_v29 = vpack.c.bf16 %v7335_v36, %v7327_v22 }
 0x5fd   : > { %v7345_v30 = vpack.c.bf16 %v7337_v56, %v7329_v34 }
 0x5fe   : > { %7527 = vmatprep.mubr.bf16.mxu0 %v7343_v29 }
 0x5ff   : > { %7725 = vmatprep.mubr.bf16.mxu1 %v7345_v30  ;;  %7528 = vmatmul.mubr.bf16.vlgmr.msra.gmra.mrb[64].mxu0 %v7342_v24 }
 0x600   : > { %7726 = vmatmul.mubr.bf16.vlgmr.msra.gmra.mrb[64].mxu1 %v7344_v27  ;;  %9442 = vmatpush3.bf16.msra.mxu0 %v9720_v28 }
 0x601   : > { %9464 = vmatpush3.bf16.msra.mxu1 %v9721_v31  ;;  %9443 = vmatprep.subr.bf16.mxu0 %v9722_v32 }
 0x602   : > { %9465 = vmatprep.subr.bf16.mxu1 %v9723_v33 }
 0x604   : > { %9444 = vmatpush3.bf16.msra.mxu0 %v9724_v61 }
 0x605   : > { %9466 = vmatpush3.bf16.msra.mxu1 %v9725_v35  ;;  %9445 = vmatprep.subr.bf16.mxu0 %v9726_v38 }
 0x606   : > { %9467 = vmatprep.subr.bf16.mxu1 %v9727_v39 }
 0x608   : > { %9446 = vmatpush3.bf16.msra.mxu0 %v9728_v44 }
 0x609   : > { %9468 = vmatpush3.bf16.msra.mxu1 %v9729_v6  ;;  %9447 = vmatprep.subr.bf16.mxu0 %v9730_v41 }
 0x60a   : > { %9469 = vmatprep.subr.bf16.mxu1 %v9731_v42 }
 0x60c   : > { %9448 = vmatpush3.bf16.msra.mxu0 %v9732_v43 }
 0x60d   : > { %9470 = vmatpush3.bf16.msra.mxu1 %v9733_v45  ;;  %9449 = vmatprep.subr.bf16.mxu0 %v9734_v46 }
 0x60e   : > { %9471 = vmatprep.subr.bf16.mxu1 %v9735_v50 }
 0x610   : > { %9450 = vmatpush3.bf16.msra.mxu0 %v9736_v52 }
 0x611   : > { %9472 = vmatpush3.bf16.msra.mxu1 %v9737_v53  ;;  %9451 = vmatprep.subr.bf16.mxu0 %v9738_v54 }
 0x612   : > { %9473 = vmatprep.subr.bf16.mxu1 %v9739_v40 }
 0x614   : > { %9452 = vmatpush3.bf16.msra.mxu0 %v9740_v57 }
 0x615   : > { %9474 = vmatpush3.bf16.msra.mxu1 %v9741_v15  ;;  %9453 = vmatprep.subr.bf16.mxu0 %v9742_v58 }
 0x616   : > { %9475 = vmatprep.subr.bf16.mxu1 %v9743_v59 }
 0x618   : > { %9454 = vmatpush3.bf16.msra.mxu0 %v9744_v60 }
 0x619   : > { %9476 = vmatpush3.bf16.msra.mxu1 %v9745_v62  ;;  %9455 = vmatprep.subr.bf16.mxu0 %v9746_v0 }
 0x61a   : > { %9477 = vmatprep.subr.bf16.mxu1 %v9747_v2 }
 0x61c   : > { %9456 = vmatpush3.bf16.msra.mxu0 %v9748_v3 }
 0x61d   : > { %9478 = vmatpush3.bf16.msra.mxu1 %v9749_v55 }
 0x634   : > { %v7274_v9 = vpop.f32.mrb[60].mxu0 }
 0x635   : > { %v7275_v10 = vadd.f32 %v7274_v9, %v6493_v51  ;;  %v7317_v26 = vpop.f32.mrb[60].mxu1  ;;  %v7276_v11 = vpop.f32.mrb[61].mxu0 }
 0x636   : > { %v7318_v12 = vadd.f32 %v7317_v26, %v6501_v4  ;;  %v7277_v25 = vadd.f32 %v7276_v11, %v6497_v5  ;;  %v7319_v16 = vpop.f32.mrb[61].mxu1  ;;  %v7278_v13 = vpop.f32.mrb[62].mxu0 }
 0x637   : > { %v7320_v14 = vadd.f32 %v7319_v16, %v6505_v7  ;;  %v7279_v21 = vadd.f32 %v7278_v13, %v6493_v51  ;;  %v7321_v8 = vpop.f32.mrb[62].mxu1  ;;  %v7280_v48 = vpop.f32.mrb[63].mxu0  ;;  %v7330_v18 = vmax.f32 %v7275_v10, 0.0 }
 0x638   : > { %v7322_v19 = vadd.f32 %v7321_v8, %v6501_v4  ;;  %v7281_v47 = vadd.f32 %v7280_v48, %v6497_v5  ;;  %v7323_v17 = vpop.f32.mrb[63].mxu1  ;;  %v7332_v22 = vmax.f32 %v7318_v12, 0.0  ;;  %v7331_v49 = vmax.f32 %v7277_v25, 0.0 }
 0x639   : > { %v7338_v37 = vmax.f32 %v7279_v21, 0.0  ;;  %v7324_v20 = vadd.f32 %v7323_v17, %v6505_v7  ;;  %v7333_v36 = vmax.f32 %v7320_v14, 0.0 }
 0x63a   : > { %v7340_v63 = vmax.f32 %v7322_v19, 0.0  ;;  %v7339_v1 = vmax.f32 %v7281_v47, 0.0 }
 0x63b   : > { %v7346_v34 = vpack.c.bf16 %v7338_v37, %v7330_v18  ;;  %v7341_v24 = vmax.f32 %v7324_v20, 0.0 }
 0x63c   : > { %v7348_v56 = vpack.c.bf16 %v7340_v63, %v7332_v22  ;;  %v7347_v27 = vpack.c.bf16 %v7339_v1, %v7331_v49 }
 0x63d   : > { %v7349_v29 = vpack.c.bf16 %v7341_v24, %v7333_v36 }
 0x63e   : > { %7923 = vmatprep.mubr.bf16.mxu0 %v7347_v27 }
 0x63f   : > { %8121 = vmatprep.mubr.bf16.mxu1 %v7349_v29  ;;  %7924 = vmatmul.mubr.bf16.vlgmr.msra.gmra.mrb[68].mxu0 %v7346_v34 }
 0x640   : > { %8122 = vmatmul.mubr.bf16.vlgmr.msra.gmra.mrb[68].mxu1 %v7348_v56 }
 0x6d2   : > { %v9413_v28 = vpop.f32.mrb[64].mxu0 }
 0x6d3   : > { %v9435_v30 = vpop.f32.mrb[64].mxu1  ;;  %v9414_v31 = vpop.f32.mrb[65].mxu0 }
 0x6d4   : > { %v9415_v32 = vadd.f32 %v9414_v31, %v9413_v28  ;;  %v9436_v33 = vpop.f32.mrb[65].mxu1  ;;  %v9416_v61 = vpop.f32.mrb[66].mxu0 }
 0x6d5   : > { %v9437_v35 = vadd.f32 %v9436_v33, %v9435_v30  ;;  %v9438_v38 = vpop.f32.mrb[66].mxu1  ;;  %v9417_v39 = vpop.f32.mrb[67].mxu0 }
 0x6d6   : > { %v7530_v44 = vadd.f32 %v9415_v32, %v12592_v23  ;;  %v9418_v6 = vadd.f32 %v9417_v39, %v9416_v61  ;;  %v9439_v41 = vpop.f32.mrb[67].mxu1 }
 0x6d7   : > { %v7728_v42 = vadd.f32 %v9437_v35, %v12592_v23  ;;  %v9440_v43 = vadd.f32 %v9439_v41, %v9438_v38 }
 0x6d8   : > { %v7536_v45 = vsub.f32 0.0, %v7530_v44  ;;  %v7533_v46 = vadd.f32 %v9418_v6, %v12592_v23 }
 0x6d9   : > { %v7734_v50 = vsub.f32 0.0, %v7728_v42  ;;  %v7731_v52 = vadd.f32 %v9440_v43, %v12592_v23 }
 0x6da   : > { %v7538_v53 = vmul.f32 1.442695, %v7536_v45  ;;  %v7537_v54 = vsub.f32 0.0, %v7533_v46 }
 0x6db   : > { %v7736_v40 = vmul.f32 1.442695, %v7734_v50  ;;  %v7735_v57 = vsub.f32 0.0, %v7731_v52 }
 0x6dc   : > { %9846 = vpow2.f32 %v7538_v53  ;;  %v7540_v15 = vmul.f32 1.442695, %v7537_v54 }
 0x6dd   : > { %9848 = vpow2.f32 %v7736_v40  ;;  %v7738_v58 = vmul.f32 1.442695, %v7735_v57 }
 0x6de   : > { %9850 = vpow2.f32 %v7540_v15 }
 0x6df   : > { %9852 = vpow2.f32 %v7738_v58 }
 0x6e6   : > { %v9847_v59 = vpop.eup %9846 }
 0x6e7   : > { %v9849_v60 = vpop.eup %9848  ;;  %v7542_v62 = vadd.f32 1.0, %v9847_v59 }
 0x6e8   : > { %v9851_v0 = vpop.eup %9850  ;;  %v7740_v2 = vadd.f32 1.0, %v9849_v60 }
 0x6e9   : > { %v9853_v3 = vpop.eup %9852  ;;  %9854 = vrcp.f32 %v7542_v62  ;;  %v7543_v55 = vadd.f32 1.0, %v9851_v0 }
 0x6ea   : > { %9856 = vrcp.f32 %v7740_v2  ;;  %v7741_v51 = vadd.f32 1.0, %v9853_v3 }
 0x6eb   : > { %9858 = vrcp.f32 %v7543_v55 }
 0x6ec   : > { %9860 = vrcp.f32 %v7741_v51 }
 0x6f3   : > { %v9855_v4 = vpop.eup %9854 }
 0x6f4   : > { %v9857_v5 = vpop.eup %9856  ;;  %v9125_v7 = vpack.c.bf16 %v9855_v4, %v9855_v4 }
 0x6f5   : > { %v9859_v9 = vpop.eup %9858  ;;  %v9127_v10 = vpack.c.bf16 %v9857_v5, %v9857_v5 }
 0x6f6   : > { %v9861_v26 = vpop.eup %9860  ;;  %7554 = vst [vmem:[%s11342_s12 + $0x30] sm:$0xf] %v9125_v7  ;;  %v9126_v11 = vpack.c.bf16 %v9859_v9, %v9859_v9 }
 0x6f7   : > { %7752 = vst [vmem:[%s11342_s12 + $0x34] sm:$0xf] %v9127_v10  ;;  %v9128_v12 = vpack.c.bf16 %v9861_v26, %v9861_v26 }
 0x6f8   : > { %7555 = vst [vmem:[%s11342_s12 + $0x70] sm:$0xf] %v9126_v11 }
 0x6f9   : > { %7753 = vst [vmem:[%s11342_s12 + $0x74] sm:$0xf] %v9128_v12 }
 0x712   : > { %v9457_v25 = vpop.f32.mrb[68].mxu0 }
 0x713   : > { %v9479_v16 = vpop.f32.mrb[68].mxu1  ;;  %v9458_v13 = vpop.f32.mrb[69].mxu0 }
 0x714   : > { %v9459_v14 = vadd.f32 %v9458_v13, %v9457_v25  ;;  %v9480_v21 = vpop.f32.mrb[69].mxu1  ;;  %v9460_v8 = vpop.f32.mrb[70].mxu0 }
 0x715   : > { %v9481_v48 = vadd.f32 %v9480_v21, %v9479_v16  ;;  %v9482_v19 = vpop.f32.mrb[70].mxu1  ;;  %v9461_v47 = vpop.f32.mrb[71].mxu0 }
 0x716   : > { %v7926_v17 = vadd.f32 %v9459_v14, %v12592_v23  ;;  %v9462_v18 = vadd.f32 %v9461_v47, %v9460_v8  ;;  %v9483_v37 = vpop.f32.mrb[71].mxu1 }
 0x717   : > { %v8124_v20 = vadd.f32 %v9481_v48, %v12592_v23  ;;  %v9484_v22 = vadd.f32 %v9483_v37, %v9482_v19 }
 0x718   : > { %v7932_v49 = vsub.f32 0.0, %v7926_v17  ;;  %v7929_v63 = vadd.f32 %v9462_v18, %v12592_v23 }
 0x719   : > { %v8130_v1 = vsub.f32 0.0, %v8124_v20  ;;  %v8127_v36 = vadd.f32 %v9484_v22, %v12592_v23 }
 0x71a   : > { %v7934_v34 = vmul.f32 1.442695, %v7932_v49  ;;  %v7933_v24 = vsub.f32 0.0, %v7929_v63 }
 0x71b   : > { %v8132_v56 = vmul.f32 1.442695, %v8130_v1  ;;  %v8131_v27 = vsub.f32 0.0, %v8127_v36 }
 0x71c   : > { %9862 = vpow2.f32 %v7934_v34  ;;  %v7936_v29 = vmul.f32 1.442695, %v7933_v24 }
 0x71d   : > { %9864 = vpow2.f32 %v8132_v56  ;;  %v8134_v28 = vmul.f32 1.442695, %v8131_v27 }
 0x71e   : > { %9866 = vpow2.f32 %v7936_v29 }
 0x71f   : > { %9868 = vpow2.f32 %v8134_v28 }
 0x726   : > { %v9863_v30 = vpop.eup %9862 }
 0x727   : > { %v9865_v31 = vpop.eup %9864  ;;  %v7938_v32 = vadd.f32 1.0, %v9863_v30 }
 0x728   : > { %v9867_v33 = vpop.eup %9866  ;;  %v8136_v61 = vadd.f32 1.0, %v9865_v31 }
 0x729   : > { %v9869_v35 = vpop.eup %9868  ;;  %9870 = vrcp.f32 %v7938_v32  ;;  %v7939_v23 = vadd.f32 1.0, %v9867_v33 }
 0x72a   : > { %9872 = vrcp.f32 %v8136_v61  ;;  %v8137_v38 = vadd.f32 1.0, %v9869_v35 }
 0x72b   : > { %9874 = vrcp.f32 %v7939_v23 }
 0x72c   : > { %9876 = vrcp.f32 %v8137_v38 }
 0x733   : > { %v9871_v39 = vpop.eup %9870 }
 0x734   : > { %v9873_v44 = vpop.eup %9872  ;;  %v9129_v6 = vpack.c.bf16 %v9871_v39, %v9871_v39 }
 0x735   : > { %v9875_v41 = vpop.eup %9874  ;;  %v9131_v42 = vpack.c.bf16 %v9873_v44, %v9873_v44 }
 0x736   : > { %v9877_v43 = vpop.eup %9876  ;;  %7950 = vst [vmem:[%s11342_s12 + $0x38] sm:$0xf] %v9129_v6  ;;  %v9130_v45 = vpack.c.bf16 %v9875_v41, %v9875_v41 }
 0x737   : > { %8148 = vst [vmem:[%s11342_s12 + $0x3c] sm:$0xf] %v9131_v42  ;;  %v9132_v46 = vpack.c.bf16 %v9877_v43, %v9877_v43 }
 0x738   : > { %7951 = vst [vmem:[%s11342_s12 + $0x78] sm:$0xf] %v9130_v45 }
 0x739   : > { %8149 = vst [vmem:[%s11342_s12 + $0x7c] sm:$0xf] %v9132_v46 }
 0x73a PF: > { %s17_s24 = sadd.s32 1, %s9884_s24  }
 0x73b   : > { %p14_p4 = scmp.ge.s32.totalorder %s17_s24, 10  }
 0x73d   :  { %16 = sbr.rel (!%p14_p4) target bundleno = 1 (0x1), region = 78 }

</bundles_post_ra>
